<compile_context>
chip_gen: v6e
topology: v6e:2x2x1
jax: 0.10.0
libtpu: 0.0.40
codegen_flags: <defaults>
</compile_context>

<pallas_src>
import functools

import jax
import jax.numpy as jnp
from jax import lax
from jax.experimental import pallas as pl
from jax.experimental.pallas import tpu as pltpu

EPS = 1e-5


# ----------------------------------------------------------------------------
# Shared in-kernel helper: binary conv (per-tap MXU dots) + batch-stat BN
# folded with alpha into a per-channel affine.
# ----------------------------------------------------------------------------
def _conv_bn_affine(xp_ref, w_ref, a_ref, g_ref, b_ref, *, N, H, W, Cin, Cout):
    # xp_ref : (N, H+2, W+2, Cin) bf16, +-1 binarized, zero-padded border
    # w_ref  : (9*Cin, Cout)      bf16, +-1 binarized weights, rows (kh, kw, cin)
    # a/g/b  : (1, Cout)          f32, alpha / gamma / beta
    M = N * H * W
    acc = None
    for kh in range(3):
        for kw in range(3):
            t = kh * 3 + kw
            lhs = xp_ref[:, kh:kh + H, kw:kw + W, :].reshape(M, Cin)     # bf16 +-1/0
            d = jnp.dot(lhs, w_ref[t * Cin:(t + 1) * Cin, :],
                        preferred_element_type=jnp.float32)
            acc = d if acc is None else acc + d                          # (M, Cout) f32

    # Batch-statistics BatchNorm on conv = alpha * acc, folded exactly:
    #   y = gamma*(alpha*c - mean(alpha*c))/sqrt(var(alpha*c)+eps) + beta
    inv_m = 1.0 / M
    mean = jnp.sum(acc, axis=0, keepdims=True) * inv_m                   # (1, Cout)
    var = jnp.sum(acc * acc, axis=0, keepdims=True) * inv_m - mean * mean
    alpha = a_ref[...]
    gamma = g_ref[...]
    beta = b_ref[...]
    scale = gamma * alpha / jnp.sqrt(alpha * alpha * var + EPS)
    shift = beta - scale * mean
    return acc, acc * scale + shift


def _stage1_kernel(xp_ref, w_ref, a_ref, g_ref, b_ref, ba_ref, c_ref,
                   *, N, H, W, Cin, Cout):
    c, y = _conv_bn_affine(xp_ref, w_ref, a_ref, g_ref, b_ref,
                           N=N, H=H, W=W, Cin=Cin, Cout=Cout)
    c_ref[...] = c                                     # raw +-1 conv (validation)
    # hardtanh then sign() for the next binary conv; clip preserves the sign.
    ba_ref[...] = jnp.where(y >= 0.0, 1.0, -1.0).astype(ba_ref.dtype)


def _stage2_kernel(xp_ref, w_ref, a_ref, g_ref, b_ref, r_ref, o_ref,
                   *, N, H, W, Cin, Cout):
    _, y = _conv_bn_affine(xp_ref, w_ref, a_ref, g_ref, b_ref,
                           N=N, H=H, W=W, Cin=Cin, Cout=Cout)
    o_ref[...] = jnp.clip(y + r_ref[...], -1.0, 1.0).astype(o_ref.dtype)


# ----------------------------------------------------------------------------
# pallas_call wrappers (single grid step, whole batch resident in VMEM;
# total per-call footprint < 1 MiB, well under every generation's scoped VMEM)
# ----------------------------------------------------------------------------
def _run_stage1(xpad, w_mat, alpha, gamma, beta, *, N, H, W, Cin, Cout):
    M = N * H * W
    kernel = functools.partial(_stage1_kernel, N=N, H=H, W=W, Cin=Cin, Cout=Cout)
    return pl.pallas_call(
        kernel,
        grid=(1,),
        in_specs=[
            pl.BlockSpec((N, H + 2, W + 2, Cin), lambda i: (0, 0, 0, 0)),
            pl.BlockSpec((9 * Cin, Cout), lambda i: (0, 0)),
            pl.BlockSpec((1, Cout), lambda i: (0, 0)),
            pl.BlockSpec((1, Cout), lambda i: (0, 0)),
            pl.BlockSpec((1, Cout), lambda i: (0, 0)),
        ],
        out_specs=(
            pl.BlockSpec((M, Cout), lambda i: (0, 0)),
            pl.BlockSpec((M, Cout), lambda i: (0, 0)),
        ),
        out_shape=(
            jax.ShapeDtypeStruct((M, Cout), jnp.bfloat16),   # binarized activation
            jax.ShapeDtypeStruct((M, Cout), jnp.float32),    # raw conv (debug)
        ),
        compiler_params=pltpu.CompilerParams(dimension_semantics=("arbitrary",)),
    )(xpad, w_mat, alpha, gamma, beta)


def _run_stage2(xpad, w_mat, alpha, gamma, beta, residual, *, N, H, W, Cin, Cout):
    M = N * H * W
    kernel = functools.partial(_stage2_kernel, N=N, H=H, W=W, Cin=Cin, Cout=Cout)
    return pl.pallas_call(
        kernel,
        grid=(1,),
        in_specs=[
            pl.BlockSpec((N, H + 2, W + 2, Cin), lambda i: (0, 0, 0, 0)),
            pl.BlockSpec((9 * Cin, Cout), lambda i: (0, 0)),
            pl.BlockSpec((1, Cout), lambda i: (0, 0)),
            pl.BlockSpec((1, Cout), lambda i: (0, 0)),
            pl.BlockSpec((1, Cout), lambda i: (0, 0)),
            pl.BlockSpec((M, Cout), lambda i: (0, 0)),
        ],
        out_specs=pl.BlockSpec((M, Cout), lambda i: (0, 0)),
        out_shape=jax.ShapeDtypeStruct((M, Cout), jnp.float32),
        compiler_params=pltpu.CompilerParams(dimension_semantics=("arbitrary",)),
    )(xpad, w_mat, alpha, gamma, beta, residual)


# ----------------------------------------------------------------------------
# Tiny wrapper-side preprocessing (weights + input binarization / padding)
# ----------------------------------------------------------------------------
def _prep_weight(w_oihw):
    """sign(w - per-out-channel mean) -> (9*Cin, Cout) bf16 +-1, rows (kh, kw, cin)."""
    cout, cin = w_oihw.shape[0], w_oihw.shape[1]
    wm = jnp.mean(w_oihw, axis=(1, 2, 3), keepdims=True)
    bw = jnp.where(w_oihw - wm >= 0.0, 1.0, -1.0)
    return jnp.transpose(bw, (2, 3, 1, 0)).reshape(9 * cin, cout).astype(jnp.bfloat16)


def _binarize_pad(x_nhwc):
    """sign(x) (+-1, bf16) with 1-pixel zero padding (padding contributes 0)."""
    ba = jnp.where(x_nhwc >= 0.0, 1.0, -1.0).astype(jnp.bfloat16)
    return jnp.pad(ba, ((0, 0), (1, 1), (1, 1), (0, 0)))


def init_params(key, in_planes, planes):
    k1, k2, k3, k4 = jax.random.split(key, 4)
    s1 = (1.0 / (in_planes * 9)) ** 0.5
    s2 = (1.0 / (planes * 9)) ** 0.5
    return {
        "w1": jax.random.normal(k1, (planes, in_planes, 3, 3), jnp.float32) * s1,
        "w2": jax.random.normal(k2, (planes, planes, 3, 3), jnp.float32) * s2,
        "alpha1": jax.random.uniform(k3, (planes,), jnp.float32, 0.1, 1.0),
        "alpha2": jax.random.uniform(k4, (planes,), jnp.float32, 0.1, 1.0),
        "gamma1": jnp.ones((planes,), jnp.float32),
        "beta1": jnp.zeros((planes,), jnp.float32),
        "gamma2": jnp.ones((planes,), jnp.float32),
        "beta2": jnp.zeros((planes,), jnp.float32),
    }


def basic_block_1w1a(x_nchw, params, *, return_debug=False):
    """Forward pass of BasicBlock_1w1a (stride=1, identity shortcut, no Threshold3D)."""
    N, C, H, W = x_nchw.shape
    planes = params["w1"].shape[0]
    assert params["w1"].shape[1] == C and planes == C, "identity-shortcut config only"
    M = N * H * W
    x = jnp.transpose(x_nchw, (0, 2, 3, 1)).astype(jnp.float32)      # NCHW -> NHWC

    def row(v):
        return v.reshape(1, -1).astype(jnp.float32)

    # ---- stage 1: conv1 (binary) + bn1 (batch stats) + hardtanh + sign ------
    ba, c1 = _run_stage1(
        _binarize_pad(x), _prep_weight(params["w1"]),
        row(params["alpha1"]), row(params["gamma1"]), row(params["beta1"]),
        N=N, H=H, W=W, Cin=C, Cout=planes)

    # ---- stage 2: conv2 (binary) + bn2 + identity shortcut + hardtanh -------
    xpad2 = jnp.pad(ba.reshape(N, H, W, planes), ((0, 0), (1, 1), (1, 1), (0, 0)))
    out = _run_stage2(
        xpad2, _prep_weight(params["w2"]),
        row(params["alpha2"]), row(params["gamma2"]), row(params["beta2"]),
        x.reshape(M, C),
        N=N, H=H, W=W, Cin=planes, Cout=planes)

    out_nchw = jnp.transpose(out.reshape(N, H, W, planes), (0, 3, 1, 2))
    if return_debug:
        return out_nchw, {"conv1_pm1": c1.reshape(N, H, W, planes)}
    return out_nchw


# ----------------------------------------------------------------------------
# Pure-JAX reference (for correctness check)
# ----------------------------------------------------------------------------
def _ref_stage(x_nhwc, w_oihw, alpha, gamma, beta, residual=None):
    ba = jnp.where(x_nhwc >= 0.0, 1.0, -1.0)
    wm = jnp.mean(w_oihw, axis=(1, 2, 3), keepdims=True)
    bw = jnp.where(w_oihw - wm >= 0.0, 1.0, -1.0) * alpha[:, None, None, None]
    conv = lax.conv_general_dilated(
        ba, jnp.transpose(bw, (2, 3, 1, 0)), (1, 1), "SAME",
        dimension_numbers=("NHWC", "HWIO", "NHWC"))
    mean = jnp.mean(conv, axis=(0, 1, 2), keepdims=True)
    var = jnp.mean((conv - mean) ** 2, axis=(0, 1, 2), keepdims=True)
    y = gamma.reshape(1, 1, 1, -1) * (conv - mean) / jnp.sqrt(var + EPS) \
        + beta.reshape(1, 1, 1, -1)
    if residual is not None:
        y = y + residual
    return jnp.clip(y, -1.0, 1.0)


def _ref_block(x_nchw, params):
    x = jnp.transpose(x_nchw, (0, 2, 3, 1))
    out = _ref_stage(x, params["w1"], params["alpha1"], params["gamma1"], params["beta1"])
    out = _ref_stage(out, params["w2"], params["alpha2"], params["gamma2"],
                     params["beta2"], residual=x)
    return jnp.transpose(out, (0, 3, 1, 2))


if __name__ == "__main__":
    key = jax.random.PRNGKey(0)
    kx, kp = jax.random.split(key)

    # in_planes == planes == 128 (a real ReCU cifar ResNet-18 block width), 8x8 spatial.
    N, C, H, W = 2, 128, 8, 8
    x = jax.random.normal(kx, (N, C, H, W), jnp.float32)
    params = init_params(kp, C, C)

    fwd = jax.jit(lambda xv, pv: basic_block_1w1a(xv, pv, return_debug=True))
    out, dbg = fwd(x, params)
    out = jax.block_until_ready(out)
    assert out.shape == (N, C, H, W), out.shape

    # --- check 1 (strict): the binary conv itself vs. an XLA conv (exact ints) ---
    x_nhwc = jnp.transpose(x, (0, 2, 3, 1))
    ba = jnp.where(x_nhwc >= 0.0, 1.0, -1.0)
    wm = jnp.mean(params["w1"], axis=(1, 2, 3), keepdims=True)
    bw = jnp.where(params["w1"] - wm >= 0.0, 1.0, -1.0)
    conv_ref = lax.conv_general_dilated(
        ba, jnp.transpose(bw, (2, 3, 1, 0)), (1, 1), "SAME",
        dimension_numbers=("NHWC", "HWIO", "NHWC"))
    conv_err = float(jnp.max(jnp.abs(dbg["conv1_pm1"] - conv_ref)))
    assert conv_err < 1e-3, f"conv1 max abs error vs reference: {conv_err}"

    # --- check 2: full block vs. the pure-JAX reference --------------------------
    ref = _ref_block(x, params)
    err = jnp.abs(out - ref)
    max_err = float(jnp.max(err))
    if max_err >= 1e-3:
        # The sign() handoff between the two conv stages is discontinuous: a ~1e-6
        # numerical difference in bn1 between the fused kernels and the reference
        # can flip isolated binarized activations. Such deviations must be rare
        # and the aggregate error tiny; anything structural would fail this too.
        frac_bad = float(jnp.mean((err > 1e-3).astype(jnp.float32)))
        mean_err = float(jnp.mean(err))
        assert frac_bad < 5e-3 and mean_err < 1e-3, (max_err, frac_bad, mean_err)

    print("KERNEL_OK")
</pallas_src>

<mosaic_0001>
module attributes {stable_mosaic.version = 11 : i64} {
  func.func @_stage1_kernel(%arg0: i32, %arg1: memref<2x10x10x128xbf16, #tpu.memory_space<vmem>>, %arg2: memref<1152x128xbf16, #tpu.memory_space<vmem>>, %arg3: memref<1x128xf32, #tpu.memory_space<vmem>>, %arg4: memref<1x128xf32, #tpu.memory_space<vmem>>, %arg5: memref<1x128xf32, #tpu.memory_space<vmem>>, %arg6: memref<128x128xbf16, #tpu.memory_space<vmem>>, %arg7: memref<128x128xf32, #tpu.memory_space<vmem>>) attributes {dimension_semantics = [#tpu.dimension_semantics<arbitrary>], iteration_bounds = array<i64: 1>, scalar_prefetch = 0 : i64, scratch_operands = 0 : i64, tpu.core_type = #tpu.core_type<tc>, window_params = [{pipeline_mode = #tpu.pipeline_mode<synchronous>, transform_indices = @transform_0, window_bounds = array<i64: 2, 10, 10, 128>}, {pipeline_mode = #tpu.pipeline_mode<synchronous>, transform_indices = @transform_1, window_bounds = array<i64: 1152, 128>}, {pipeline_mode = #tpu.pipeline_mode<synchronous>, transform_indices = @transform_2, window_bounds = array<i64: 1, 128>}, {pipeline_mode = #tpu.pipeline_mode<synchronous>, transform_indices = @transform_3, window_bounds = array<i64: 1, 128>}, {pipeline_mode = #tpu.pipeline_mode<synchronous>, transform_indices = @transform_4, window_bounds = array<i64: 1, 128>}, {pipeline_mode = #tpu.pipeline_mode<synchronous>, transform_indices = @transform_5, window_bounds = array<i64: 128, 128>}, {pipeline_mode = #tpu.pipeline_mode<synchronous>, transform_indices = @transform_6, window_bounds = array<i64: 128, 128>}]} {
    %c0 = arith.constant 0 : index
    %c0_0 = arith.constant 0 : index
    %c0_1 = arith.constant 0 : index
    %c0_2 = arith.constant 0 : index
    %0 = vector.load %arg1[%c0, %c0_0, %c0_1, %c0_2] : memref<2x10x10x128xbf16, #tpu.memory_space<vmem>>, vector<2x8x8x128xbf16>
    %1 = vector.shape_cast %0 : vector<2x8x8x128xbf16> to vector<128x128xbf16>
    %c0_3 = arith.constant 0 : index
    %c0_4 = arith.constant 0 : index
    %2 = vector.load %arg2[%c0_3, %c0_4] : memref<1152x128xbf16, #tpu.memory_space<vmem>>, vector<128x128xbf16>
    %cst = arith.constant dense<0.000000e+00> : vector<128x128xf32>
    %3 = tpu.matmul %1, %2, %cst {dimension_numbers = #tpu.dot_dimension_numbers<[1], [0], [0], [1], [0, 0, 1, 1], [], []>} : vector<128x128xbf16>, vector<128x128xbf16>, vector<128x128xf32> -> vector<128x128xf32>
    %c0_5 = arith.constant 0 : index
    %c0_6 = arith.constant 0 : index
    %c1 = arith.constant 1 : index
    %c0_7 = arith.constant 0 : index
    %4 = vector.load %arg1[%c0_5, %c0_6, %c1, %c0_7] : memref<2x10x10x128xbf16, #tpu.memory_space<vmem>>, vector<2x8x8x128xbf16>
    %5 = vector.shape_cast %4 : vector<2x8x8x128xbf16> to vector<128x128xbf16>
    %c128 = arith.constant 128 : index
    %c0_8 = arith.constant 0 : index
    %6 = vector.load %arg2[%c128, %c0_8] : memref<1152x128xbf16, #tpu.memory_space<vmem>>, vector<128x128xbf16>
    %cst_9 = arith.constant dense<0.000000e+00> : vector<128x128xf32>
    %7 = tpu.matmul %5, %6, %cst_9 {dimension_numbers = #tpu.dot_dimension_numbers<[1], [0], [0], [1], [0, 0, 1, 1], [], []>} : vector<128x128xbf16>, vector<128x128xbf16>, vector<128x128xf32> -> vector<128x128xf32>
    %8 = arith.addf %3, %7 : vector<128x128xf32>
    %c0_10 = arith.constant 0 : index
    %c0_11 = arith.constant 0 : index
    %c2 = arith.constant 2 : index
    %c0_12 = arith.constant 0 : index
    %9 = vector.load %arg1[%c0_10, %c0_11, %c2, %c0_12] : memref<2x10x10x128xbf16, #tpu.memory_space<vmem>>, vector<2x8x8x128xbf16>
    %10 = vector.shape_cast %9 : vector<2x8x8x128xbf16> to vector<128x128xbf16>
    %c256 = arith.constant 256 : index
    %c0_13 = arith.constant 0 : index
    %11 = vector.load %arg2[%c256, %c0_13] : memref<1152x128xbf16, #tpu.memory_space<vmem>>, vector<128x128xbf16>
    %cst_14 = arith.constant dense<0.000000e+00> : vector<128x128xf32>
    %12 = tpu.matmul %10, %11, %cst_14 {dimension_numbers = #tpu.dot_dimension_numbers<[1], [0], [0], [1], [0, 0, 1, 1], [], []>} : vector<128x128xbf16>, vector<128x128xbf16>, vector<128x128xf32> -> vector<128x128xf32>
    %13 = arith.addf %8, %12 : vector<128x128xf32>
    %c0_15 = arith.constant 0 : index
    %c1_16 = arith.constant 1 : index
    %c0_17 = arith.constant 0 : index
    %c0_18 = arith.constant 0 : index
    %14 = vector.load %arg1[%c0_15, %c1_16, %c0_17, %c0_18] : memref<2x10x10x128xbf16, #tpu.memory_space<vmem>>, vector<2x8x8x128xbf16>
    %15 = vector.shape_cast %14 : vector<2x8x8x128xbf16> to vector<128x128xbf16>
    %c384 = arith.constant 384 : index
    %c0_19 = arith.constant 0 : index
    %16 = vector.load %arg2[%c384, %c0_19] : memref<1152x128xbf16, #tpu.memory_space<vmem>>, vector<128x128xbf16>
    %cst_20 = arith.constant dense<0.000000e+00> : vector<128x128xf32>
    %17 = tpu.matmul %15, %16, %cst_20 {dimension_numbers = #tpu.dot_dimension_numbers<[1], [0], [0], [1], [0, 0, 1, 1], [], []>} : vector<128x128xbf16>, vector<128x128xbf16>, vector<128x128xf32> -> vector<128x128xf32>
    %18 = arith.addf %13, %17 : vector<128x128xf32>
    %c0_21 = arith.constant 0 : index
    %c1_22 = arith.constant 1 : index
    %c1_23 = arith.constant 1 : index
    %c0_24 = arith.constant 0 : index
    %19 = vector.load %arg1[%c0_21, %c1_22, %c1_23, %c0_24] : memref<2x10x10x128xbf16, #tpu.memory_space<vmem>>, vector<2x8x8x128xbf16>
    %20 = vector.shape_cast %19 : vector<2x8x8x128xbf16> to vector<128x128xbf16>
    %c512 = arith.constant 512 : index
    %c0_25 = arith.constant 0 : index
    %21 = vector.load %arg2[%c512, %c0_25] : memref<1152x128xbf16, #tpu.memory_space<vmem>>, vector<128x128xbf16>
    %cst_26 = arith.constant dense<0.000000e+00> : vector<128x128xf32>
    %22 = tpu.matmul %20, %21, %cst_26 {dimension_numbers = #tpu.dot_dimension_numbers<[1], [0], [0], [1], [0, 0, 1, 1], [], []>} : vector<128x128xbf16>, vector<128x128xbf16>, vector<128x128xf32> -> vector<128x128xf32>
    %23 = arith.addf %18, %22 : vector<128x128xf32>
    %c0_27 = arith.constant 0 : index
    %c1_28 = arith.constant 1 : index
    %c2_29 = arith.constant 2 : index
    %c0_30 = arith.constant 0 : index
    %24 = vector.load %arg1[%c0_27, %c1_28, %c2_29, %c0_30] : memref<2x10x10x128xbf16, #tpu.memory_space<vmem>>, vector<2x8x8x128xbf16>
    %25 = vector.shape_cast %24 : vector<2x8x8x128xbf16> to vector<128x128xbf16>
    %c640 = arith.constant 640 : index
    %c0_31 = arith.constant 0 : index
    %26 = vector.load %arg2[%c640, %c0_31] : memref<1152x128xbf16, #tpu.memory_space<vmem>>, vector<128x128xbf16>
    %cst_32 = arith.constant dense<0.000000e+00> : vector<128x128xf32>
    %27 = tpu.matmul %25, %26, %cst_32 {dimension_numbers = #tpu.dot_dimension_numbers<[1], [0], [0], [1], [0, 0, 1, 1], [], []>} : vector<128x128xbf16>, vector<128x128xbf16>, vector<128x128xf32> -> vector<128x128xf32>
    %28 = arith.addf %23, %27 : vector<128x128xf32>
    %c0_33 = arith.constant 0 : index
    %c2_34 = arith.constant 2 : index
    %c0_35 = arith.constant 0 : index
    %c0_36 = arith.constant 0 : index
    %29 = vector.load %arg1[%c0_33, %c2_34, %c0_35, %c0_36] : memref<2x10x10x128xbf16, #tpu.memory_space<vmem>>, vector<2x8x8x128xbf16>
    %30 = vector.shape_cast %29 : vector<2x8x8x128xbf16> to vector<128x128xbf16>
    %c768 = arith.constant 768 : index
    %c0_37 = arith.constant 0 : index
    %31 = vector.load %arg2[%c768, %c0_37] : memref<1152x128xbf16, #tpu.memory_space<vmem>>, vector<128x128xbf16>
    %cst_38 = arith.constant dense<0.000000e+00> : vector<128x128xf32>
    %32 = tpu.matmul %30, %31, %cst_38 {dimension_numbers = #tpu.dot_dimension_numbers<[1], [0], [0], [1], [0, 0, 1, 1], [], []>} : vector<128x128xbf16>, vector<128x128xbf16>, vector<128x128xf32> -> vector<128x128xf32>
    %33 = arith.addf %28, %32 : vector<128x128xf32>
    %c0_39 = arith.constant 0 : index
    %c2_40 = arith.constant 2 : index
    %c1_41 = arith.constant 1 : index
    %c0_42 = arith.constant 0 : index
    %34 = vector.load %arg1[%c0_39, %c2_40, %c1_41, %c0_42] : memref<2x10x10x128xbf16, #tpu.memory_space<vmem>>, vector<2x8x8x128xbf16>
    %35 = vector.shape_cast %34 : vector<2x8x8x128xbf16> to vector<128x128xbf16>
    %c896 = arith.constant 896 : index
    %c0_43 = arith.constant 0 : index
    %36 = vector.load %arg2[%c896, %c0_43] : memref<1152x128xbf16, #tpu.memory_space<vmem>>, vector<128x128xbf16>
    %cst_44 = arith.constant dense<0.000000e+00> : vector<128x128xf32>
    %37 = tpu.matmul %35, %36, %cst_44 {dimension_numbers = #tpu.dot_dimension_numbers<[1], [0], [0], [1], [0, 0, 1, 1], [], []>} : vector<128x128xbf16>, vector<128x128xbf16>, vector<128x128xf32> -> vector<128x128xf32>
    %38 = arith.addf %33, %37 : vector<128x128xf32>
    %c0_45 = arith.constant 0 : index
    %c2_46 = arith.constant 2 : index
    %c2_47 = arith.constant 2 : index
    %c0_48 = arith.constant 0 : index
    %39 = vector.load %arg1[%c0_45, %c2_46, %c2_47, %c0_48] : memref<2x10x10x128xbf16, #tpu.memory_space<vmem>>, vector<2x8x8x128xbf16>
    %40 = vector.shape_cast %39 : vector<2x8x8x128xbf16> to vector<128x128xbf16>
    %c1024 = arith.constant 1024 : index
    %c0_49 = arith.constant 0 : index
    %41 = vector.load %arg2[%c1024, %c0_49] : memref<1152x128xbf16, #tpu.memory_space<vmem>>, vector<128x128xbf16>
    %cst_50 = arith.constant dense<0.000000e+00> : vector<128x128xf32>
    %42 = tpu.matmul %40, %41, %cst_50 {dimension_numbers = #tpu.dot_dimension_numbers<[1], [0], [0], [1], [0, 0, 1, 1], [], []>} : vector<128x128xbf16>, vector<128x128xbf16>, vector<128x128xf32> -> vector<128x128xf32>
    %43 = arith.addf %38, %42 : vector<128x128xf32>
    %cst_51 = arith.constant dense<0.000000e+00> : vector<128xf32>
    %44 = vector.multi_reduction <add>, %43, %cst_51 [0] : vector<128x128xf32> to vector<128xf32>
    %45 = vector.shape_cast %44 : vector<128xf32> to vector<1x128xf32>
    %cst_52 = arith.constant 7.812500e-03 : f32
    %46 = vector.broadcast %cst_52 : f32 to vector<1x128xf32>
    %47 = arith.mulf %45, %46 : vector<1x128xf32>
    %48 = arith.mulf %43, %43 : vector<128x128xf32>
    %cst_53 = arith.constant dense<0.000000e+00> : vector<128xf32>
    %49 = vector.multi_reduction <add>, %48, %cst_53 [0] : vector<128x128xf32> to vector<128xf32>
    %50 = vector.shape_cast %49 : vector<128xf32> to vector<1x128xf32>
    %cst_54 = arith.constant 7.812500e-03 : f32
    %51 = vector.broadcast %cst_54 : f32 to vector<1x128xf32>
    %52 = arith.mulf %50, %51 : vector<1x128xf32>
    %53 = arith.mulf %47, %47 : vector<1x128xf32>
    %54 = arith.subf %52, %53 : vector<1x128xf32>
    %c0_55 = arith.constant 0 : index
    %c0_56 = arith.constant 0 : index
    %55 = vector.load %arg3[%c0_55, %c0_56] : memref<1x128xf32, #tpu.memory_space<vmem>>, vector<1x128xf32>
    %c0_57 = arith.constant 0 : index
    %c0_58 = arith.constant 0 : index
    %56 = vector.load %arg4[%c0_57, %c0_58] : memref<1x128xf32, #tpu.memory_space<vmem>>, vector<1x128xf32>
    %c0_59 = arith.constant 0 : index
    %c0_60 = arith.constant 0 : index
    %57 = vector.load %arg5[%c0_59, %c0_60] : memref<1x128xf32, #tpu.memory_space<vmem>>, vector<1x128xf32>
    %58 = arith.mulf %56, %55 : vector<1x128xf32>
    %59 = arith.mulf %55, %55 : vector<1x128xf32>
    %60 = arith.mulf %59, %54 : vector<1x128xf32>
    %cst_61 = arith.constant 9.99999974E-6 : f32
    %61 = vector.broadcast %cst_61 : f32 to vector<1x128xf32>
    %62 = arith.addf %60, %61 : vector<1x128xf32>
    %63 = math.sqrt %62 : vector<1x128xf32>
    %64 = arith.divf %58, %63 : vector<1x128xf32>
    %65 = arith.mulf %64, %47 : vector<1x128xf32>
    %66 = arith.subf %57, %65 : vector<1x128xf32>
    %67 = vector.broadcast %64 : vector<1x128xf32> to vector<128x128xf32>
    %68 = arith.mulf %43, %67 : vector<128x128xf32>
    %69 = vector.broadcast %66 : vector<1x128xf32> to vector<128x128xf32>
    %70 = arith.addf %68, %69 : vector<128x128xf32>
    %c0_62 = arith.constant 0 : index
    %c0_63 = arith.constant 0 : index
    %71 = vector.load %arg7[%c0_62, %c0_63] : memref<128x128xf32, #tpu.memory_space<vmem>>, vector<128x128xf32>
    tpu.vector_store %arg7[%c0_62, %c0_63], %43 {strides = array<i32>} : memref<128x128xf32, #tpu.memory_space<vmem>>, vector<128x128xf32>,
    %cst_64 = arith.constant 0.000000e+00 : f32
    %72 = vector.broadcast %cst_64 : f32 to vector<128x128xf32>
    %73 = arith.cmpf oge, %70, %72 : vector<128x128xf32>
    %cst_65 = arith.constant 1.000000e+00 : f32
    %cst_66 = arith.constant -1.000000e+00 : f32
    %74 = vector.broadcast %cst_65 : f32 to vector<128x128xf32>
    %75 = vector.broadcast %cst_66 : f32 to vector<128x128xf32>
    %76 = arith.select %73, %74, %75 : vector<128x128xi1>, vector<128x128xf32>
    %77 = arith.truncf %76 : vector<128x128xf32> to vector<128x128xbf16>
    %c0_67 = arith.constant 0 : index
    %c0_68 = arith.constant 0 : index
    %78 = vector.load %arg6[%c0_67, %c0_68] : memref<128x128xbf16, #tpu.memory_space<vmem>>, vector<128x128xbf16>
    tpu.vector_store %arg6[%c0_67, %c0_68], %77 {strides = array<i32>} : memref<128x128xbf16, #tpu.memory_space<vmem>>, vector<128x128xbf16>,
    return
  }
  func.func @transform_0(%arg0: i32) -> (i32, i32, i32, i32) {
    %c0_i32 = arith.constant 0 : i32
    %c0_i32_0 = arith.constant 0 : i32
    %c0_i32_1 = arith.constant 0 : i32
    %c0_i32_2 = arith.constant 0 : i32
    %c0_i32_3 = arith.constant 0 : i32
    return %c0_i32, %c0_i32_0, %c0_i32_1, %c0_i32_2 : i32, i32, i32, i32
  }
  func.func @transform_1(%arg0: i32) -> (i32, i32) {
    %c0_i32 = arith.constant 0 : i32
    %c0_i32_0 = arith.constant 0 : i32
    %c0_i32_1 = arith.constant 0 : i32
    return %c0_i32, %c0_i32_0 : i32, i32
  }
  func.func @transform_2(%arg0: i32) -> (i32, i32) {
    %c0_i32 = arith.constant 0 : i32
    %c0_i32_0 = arith.constant 0 : i32
    %c0_i32_1 = arith.constant 0 : i32
    return %c0_i32, %c0_i32_0 : i32, i32
  }
  func.func @transform_3(%arg0: i32) -> (i32, i32) {
    %c0_i32 = arith.constant 0 : i32
    %c0_i32_0 = arith.constant 0 : i32
    %c0_i32_1 = arith.constant 0 : i32
    return %c0_i32, %c0_i32_0 : i32, i32
  }
  func.func @transform_4(%arg0: i32) -> (i32, i32) {
    %c0_i32 = arith.constant 0 : i32
    %c0_i32_0 = arith.constant 0 : i32
    %c0_i32_1 = arith.constant 0 : i32
    return %c0_i32, %c0_i32_0 : i32, i32
  }
  func.func @transform_5(%arg0: i32) -> (i32, i32) {
    %c0_i32 = arith.constant 0 : i32
    %c0_i32_0 = arith.constant 0 : i32
    %c0_i32_1 = arith.constant 0 : i32
    return %c0_i32, %c0_i32_0 : i32, i32
  }
  func.func @transform_6(%arg0: i32) -> (i32, i32) {
    %c0_i32 = arith.constant 0 : i32
    %c0_i32_0 = arith.constant 0 : i32
    %c0_i32_1 = arith.constant 0 : i32
    return %c0_i32, %c0_i32_0 : i32, i32
  }
}

module attributes {stable_mosaic.version = 11 : i64} {
  func.func @_stage2_kernel(%arg0: i32, %arg1: memref<2x10x10x128xbf16, #tpu.memory_space<vmem>>, %arg2: memref<1152x128xbf16, #tpu.memory_space<vmem>>, %arg3: memref<1x128xf32, #tpu.memory_space<vmem>>, %arg4: memref<1x128xf32, #tpu.memory_space<vmem>>, %arg5: memref<1x128xf32, #tpu.memory_space<vmem>>, %arg6: memref<128x128xf32, #tpu.memory_space<vmem>>, %arg7: memref<128x128xf32, #tpu.memory_space<vmem>>) attributes {dimension_semantics = [#tpu.dimension_semantics<arbitrary>], iteration_bounds = array<i64: 1>, scalar_prefetch = 0 : i64, scratch_operands = 0 : i64, tpu.core_type = #tpu.core_type<tc>, window_params = [{pipeline_mode = #tpu.pipeline_mode<synchronous>, transform_indices = @transform_0, window_bounds = array<i64: 2, 10, 10, 128>}, {pipeline_mode = #tpu.pipeline_mode<synchronous>, transform_indices = @transform_1, window_bounds = array<i64: 1152, 128>}, {pipeline_mode = #tpu.pipeline_mode<synchronous>, transform_indices = @transform_2, window_bounds = array<i64: 1, 128>}, {pipeline_mode = #tpu.pipeline_mode<synchronous>, transform_indices = @transform_3, window_bounds = array<i64: 1, 128>}, {pipeline_mode = #tpu.pipeline_mode<synchronous>, transform_indices = @transform_4, window_bounds = array<i64: 1, 128>}, {pipeline_mode = #tpu.pipeline_mode<synchronous>, transform_indices = @transform_5, window_bounds = array<i64: 128, 128>}, {pipeline_mode = #tpu.pipeline_mode<synchronous>, transform_indices = @transform_6, window_bounds = array<i64: 128, 128>}]} {
    %c0 = arith.constant 0 : index
    %c0_0 = arith.constant 0 : index
    %c0_1 = arith.constant 0 : index
    %c0_2 = arith.constant 0 : index
    %0 = vector.load %arg1[%c0, %c0_0, %c0_1, %c0_2] : memref<2x10x10x128xbf16, #tpu.memory_space<vmem>>, vector<2x8x8x128xbf16>
    %1 = vector.shape_cast %0 : vector<2x8x8x128xbf16> to vector<128x128xbf16>
    %c0_3 = arith.constant 0 : index
    %c0_4 = arith.constant 0 : index
    %2 = vector.load %arg2[%c0_3, %c0_4] : memref<1152x128xbf16, #tpu.memory_space<vmem>>, vector<128x128xbf16>
    %cst = arith.constant dense<0.000000e+00> : vector<128x128xf32>
    %3 = tpu.matmul %1, %2, %cst {dimension_numbers = #tpu.dot_dimension_numbers<[1], [0], [0], [1], [0, 0, 1, 1], [], []>} : vector<128x128xbf16>, vector<128x128xbf16>, vector<128x128xf32> -> vector<128x128xf32>
    %c0_5 = arith.constant 0 : index
    %c0_6 = arith.constant 0 : index
    %c1 = arith.constant 1 : index
    %c0_7 = arith.constant 0 : index
    %4 = vector.load %arg1[%c0_5, %c0_6, %c1, %c0_7] : memref<2x10x10x128xbf16, #tpu.memory_space<vmem>>, vector<2x8x8x128xbf16>
    %5 = vector.shape_cast %4 : vector<2x8x8x128xbf16> to vector<128x128xbf16>
    %c128 = arith.constant 128 : index
    %c0_8 = arith.constant 0 : index
    %6 = vector.load %arg2[%c128, %c0_8] : memref<1152x128xbf16, #tpu.memory_space<vmem>>, vector<128x128xbf16>
    %cst_9 = arith.constant dense<0.000000e+00> : vector<128x128xf32>
    %7 = tpu.matmul %5, %6, %cst_9 {dimension_numbers = #tpu.dot_dimension_numbers<[1], [0], [0], [1], [0, 0, 1, 1], [], []>} : vector<128x128xbf16>, vector<128x128xbf16>, vector<128x128xf32> -> vector<128x128xf32>
    %8 = arith.addf %3, %7 : vector<128x128xf32>
    %c0_10 = arith.constant 0 : index
    %c0_11 = arith.constant 0 : index
    %c2 = arith.constant 2 : index
    %c0_12 = arith.constant 0 : index
    %9 = vector.load %arg1[%c0_10, %c0_11, %c2, %c0_12] : memref<2x10x10x128xbf16, #tpu.memory_space<vmem>>, vector<2x8x8x128xbf16>
    %10 = vector.shape_cast %9 : vector<2x8x8x128xbf16> to vector<128x128xbf16>
    %c256 = arith.constant 256 : index
    %c0_13 = arith.constant 0 : index
    %11 = vector.load %arg2[%c256, %c0_13] : memref<1152x128xbf16, #tpu.memory_space<vmem>>, vector<128x128xbf16>
    %cst_14 = arith.constant dense<0.000000e+00> : vector<128x128xf32>
    %12 = tpu.matmul %10, %11, %cst_14 {dimension_numbers = #tpu.dot_dimension_numbers<[1], [0], [0], [1], [0, 0, 1, 1], [], []>} : vector<128x128xbf16>, vector<128x128xbf16>, vector<128x128xf32> -> vector<128x128xf32>
    %13 = arith.addf %8, %12 : vector<128x128xf32>
    %c0_15 = arith.constant 0 : index
    %c1_16 = arith.constant 1 : index
    %c0_17 = arith.constant 0 : index
    %c0_18 = arith.constant 0 : index
    %14 = vector.load %arg1[%c0_15, %c1_16, %c0_17, %c0_18] : memref<2x10x10x128xbf16, #tpu.memory_space<vmem>>, vector<2x8x8x128xbf16>
    %15 = vector.shape_cast %14 : vector<2x8x8x128xbf16> to vector<128x128xbf16>
    %c384 = arith.constant 384 : index
    %c0_19 = arith.constant 0 : index
    %16 = vector.load %arg2[%c384, %c0_19] : memref<1152x128xbf16, #tpu.memory_space<vmem>>, vector<128x128xbf16>
    %cst_20 = arith.constant dense<0.000000e+00> : vector<128x128xf32>
    %17 = tpu.matmul %15, %16, %cst_20 {dimension_numbers = #tpu.dot_dimension_numbers<[1], [0], [0], [1], [0, 0, 1, 1], [], []>} : vector<128x128xbf16>, vector<128x128xbf16>, vector<128x128xf32> -> vector<128x128xf32>
    %18 = arith.addf %13, %17 : vector<128x128xf32>
    %c0_21 = arith.constant 0 : index
    %c1_22 = arith.constant 1 : index
    %c1_23 = arith.constant 1 : index
    %c0_24 = arith.constant 0 : index
    %19 = vector.load %arg1[%c0_21, %c1_22, %c1_23, %c0_24] : memref<2x10x10x128xbf16, #tpu.memory_space<vmem>>, vector<2x8x8x128xbf16>
    %20 = vector.shape_cast %19 : vector<2x8x8x128xbf16> to vector<128x128xbf16>
    %c512 = arith.constant 512 : index
    %c0_25 = arith.constant 0 : index
    %21 = vector.load %arg2[%c512, %c0_25] : memref<1152x128xbf16, #tpu.memory_space<vmem>>, vector<128x128xbf16>
    %cst_26 = arith.constant dense<0.000000e+00> : vector<128x128xf32>
    %22 = tpu.matmul %20, %21, %cst_26 {dimension_numbers = #tpu.dot_dimension_numbers<[1], [0], [0], [1], [0, 0, 1, 1], [], []>} : vector<128x128xbf16>, vector<128x128xbf16>, vector<128x128xf32> -> vector<128x128xf32>
    %23 = arith.addf %18, %22 : vector<128x128xf32>
    %c0_27 = arith.constant 0 : index
    %c1_28 = arith.constant 1 : index
    %c2_29 = arith.constant 2 : index
    %c0_30 = arith.constant 0 : index
    %24 = vector.load %arg1[%c0_27, %c1_28, %c2_29, %c0_30] : memref<2x10x10x128xbf16, #tpu.memory_space<vmem>>, vector<2x8x8x128xbf16>
    %25 = vector.shape_cast %24 : vector<2x8x8x128xbf16> to vector<128x128xbf16>
    %c640 = arith.constant 640 : index
    %c0_31 = arith.constant 0 : index
    %26 = vector.load %arg2[%c640, %c0_31] : memref<1152x128xbf16, #tpu.memory_space<vmem>>, vector<128x128xbf16>
    %cst_32 = arith.constant dense<0.000000e+00> : vector<128x128xf32>
    %27 = tpu.matmul %25, %26, %cst_32 {dimension_numbers = #tpu.dot_dimension_numbers<[1], [0], [0], [1], [0, 0, 1, 1], [], []>} : vector<128x128xbf16>, vector<128x128xbf16>, vector<128x128xf32> -> vector<128x128xf32>
    %28 = arith.addf %23, %27 : vector<128x128xf32>
    %c0_33 = arith.constant 0 : index
    %c2_34 = arith.constant 2 : index
    %c0_35 = arith.constant 0 : index
    %c0_36 = arith.constant 0 : index
    %29 = vector.load %arg1[%c0_33, %c2_34, %c0_35, %c0_36] : memref<2x10x10x128xbf16, #tpu.memory_space<vmem>>, vector<2x8x8x128xbf16>
    %30 = vector.shape_cast %29 : vector<2x8x8x128xbf16> to vector<128x128xbf16>
    %c768 = arith.constant 768 : index
    %c0_37 = arith.constant 0 : index
    %31 = vector.load %arg2[%c768, %c0_37] : memref<1152x128xbf16, #tpu.memory_space<vmem>>, vector<128x128xbf16>
    %cst_38 = arith.constant dense<0.000000e+00> : vector<128x128xf32>
    %32 = tpu.matmul %30, %31, %cst_38 {dimension_numbers = #tpu.dot_dimension_numbers<[1], [0], [0], [1], [0, 0, 1, 1], [], []>} : vector<128x128xbf16>, vector<128x128xbf16>, vector<128x128xf32> -> vector<128x128xf32>
    %33 = arith.addf %28, %32 : vector<128x128xf32>
    %c0_39 = arith.constant 0 : index
    %c2_40 = arith.constant 2 : index
    %c1_41 = arith.constant 1 : index
    %c0_42 = arith.constant 0 : index
    %34 = vector.load %arg1[%c0_39, %c2_40, %c1_41, %c0_42] : memref<2x10x10x128xbf16, #tpu.memory_space<vmem>>, vector<2x8x8x128xbf16>
    %35 = vector.shape_cast %34 : vector<2x8x8x128xbf16> to vector<128x128xbf16>
    %c896 = arith.constant 896 : index
    %c0_43 = arith.constant 0 : index
    %36 = vector.load %arg2[%c896, %c0_43] : memref<1152x128xbf16, #tpu.memory_space<vmem>>, vector<128x128xbf16>
    %cst_44 = arith.constant dense<0.000000e+00> : vector<128x128xf32>
    %37 = tpu.matmul %35, %36, %cst_44 {dimension_numbers = #tpu.dot_dimension_numbers<[1], [0], [0], [1], [0, 0, 1, 1], [], []>} : vector<128x128xbf16>, vector<128x128xbf16>, vector<128x128xf32> -> vector<128x128xf32>
    %38 = arith.addf %33, %37 : vector<128x128xf32>
    %c0_45 = arith.constant 0 : index
    %c2_46 = arith.constant 2 : index
    %c2_47 = arith.constant 2 : index
    %c0_48 = arith.constant 0 : index
    %39 = vector.load %arg1[%c0_45, %c2_46, %c2_47, %c0_48] : memref<2x10x10x128xbf16, #tpu.memory_space<vmem>>, vector<2x8x8x128xbf16>
    %40 = vector.shape_cast %39 : vector<2x8x8x128xbf16> to vector<128x128xbf16>
    %c1024 = arith.constant 1024 : index
    %c0_49 = arith.constant 0 : index
    %41 = vector.load %arg2[%c1024, %c0_49] : memref<1152x128xbf16, #tpu.memory_space<vmem>>, vector<128x128xbf16>
    %cst_50 = arith.constant dense<0.000000e+00> : vector<128x128xf32>
    %42 = tpu.matmul %40, %41, %cst_50 {dimension_numbers = #tpu.dot_dimension_numbers<[1], [0], [0], [1], [0, 0, 1, 1], [], []>} : vector<128x128xbf16>, vector<128x128xbf16>, vector<128x128xf32> -> vector<128x128xf32>
    %43 = arith.addf %38, %42 : vector<128x128xf32>
    %cst_51 = arith.constant dense<0.000000e+00> : vector<128xf32>
    %44 = vector.multi_reduction <add>, %43, %cst_51 [0] : vector<128x128xf32> to vector<128xf32>
    %45 = vector.shape_cast %44 : vector<128xf32> to vector<1x128xf32>
    %cst_52 = arith.constant 7.812500e-03 : f32
    %46 = vector.broadcast %cst_52 : f32 to vector<1x128xf32>
    %47 = arith.mulf %45, %46 : vector<1x128xf32>
    %48 = arith.mulf %43, %43 : vector<128x128xf32>
    %cst_53 = arith.constant dense<0.000000e+00> : vector<128xf32>
    %49 = vector.multi_reduction <add>, %48, %cst_53 [0] : vector<128x128xf32> to vector<128xf32>
    %50 = vector.shape_cast %49 : vector<128xf32> to vector<1x128xf32>
    %cst_54 = arith.constant 7.812500e-03 : f32
    %51 = vector.broadcast %cst_54 : f32 to vector<1x128xf32>
    %52 = arith.mulf %50, %51 : vector<1x128xf32>
    %53 = arith.mulf %47, %47 : vector<1x128xf32>
    %54 = arith.subf %52, %53 : vector<1x128xf32>
    %c0_55 = arith.constant 0 : index
    %c0_56 = arith.constant 0 : index
    %55 = vector.load %arg3[%c0_55, %c0_56] : memref<1x128xf32, #tpu.memory_space<vmem>>, vector<1x128xf32>
    %c0_57 = arith.constant 0 : index
    %c0_58 = arith.constant 0 : index
    %56 = vector.load %arg4[%c0_57, %c0_58] : memref<1x128xf32, #tpu.memory_space<vmem>>, vector<1x128xf32>
    %c0_59 = arith.constant 0 : index
    %c0_60 = arith.constant 0 : index
    %57 = vector.load %arg5[%c0_59, %c0_60] : memref<1x128xf32, #tpu.memory_space<vmem>>, vector<1x128xf32>
    %58 = arith.mulf %56, %55 : vector<1x128xf32>
    %59 = arith.mulf %55, %55 : vector<1x128xf32>
    %60 = arith.mulf %59, %54 : vector<1x128xf32>
    %cst_61 = arith.constant 9.99999974E-6 : f32
    %61 = vector.broadcast %cst_61 : f32 to vector<1x128xf32>
    %62 = arith.addf %60, %61 : vector<1x128xf32>
    %63 = math.sqrt %62 : vector<1x128xf32>
    %64 = arith.divf %58, %63 : vector<1x128xf32>
    %65 = arith.mulf %64, %47 : vector<1x128xf32>
    %66 = arith.subf %57, %65 : vector<1x128xf32>
    %67 = vector.broadcast %64 : vector<1x128xf32> to vector<128x128xf32>
    %68 = arith.mulf %43, %67 : vector<128x128xf32>
    %69 = vector.broadcast %66 : vector<1x128xf32> to vector<128x128xf32>
    %70 = arith.addf %68, %69 : vector<128x128xf32>
    %c0_62 = arith.constant 0 : index
    %c0_63 = arith.constant 0 : index
    %71 = vector.load %arg6[%c0_62, %c0_63] : memref<128x128xf32, #tpu.memory_space<vmem>>, vector<128x128xf32>
    %72 = arith.addf %70, %71 : vector<128x128xf32>
    %cst_64 = arith.constant -1.000000e+00 : f32
    %cst_65 = arith.constant 1.000000e+00 : f32
    %73 = vector.broadcast %cst_64 : f32 to vector<128x128xf32>
    %74 = arith.maximumf %73, %72 : vector<128x128xf32>
    %75 = vector.broadcast %cst_65 : f32 to vector<128x128xf32>
    %76 = arith.minimumf %75, %74 : vector<128x128xf32>
    %c0_66 = arith.constant 0 : index
    %c0_67 = arith.constant 0 : index
    %77 = vector.load %arg7[%c0_66, %c0_67] : memref<128x128xf32, #tpu.memory_space<vmem>>, vector<128x128xf32>
    tpu.vector_store %arg7[%c0_66, %c0_67], %76 {strides = array<i32>} : memref<128x128xf32, #tpu.memory_space<vmem>>, vector<128x128xf32>,
    return
  }
  func.func @transform_0(%arg0: i32) -> (i32, i32, i32, i32) {
    %c0_i32 = arith.constant 0 : i32
    %c0_i32_0 = arith.constant 0 : i32
    %c0_i32_1 = arith.constant 0 : i32
    %c0_i32_2 = arith.constant 0 : i32
    %c0_i32_3 = arith.constant 0 : i32
    return %c0_i32, %c0_i32_0, %c0_i32_1, %c0_i32_2 : i32, i32, i32, i32
  }
  func.func @transform_1(%arg0: i32) -> (i32, i32) {
    %c0_i32 = arith.constant 0 : i32
    %c0_i32_0 = arith.constant 0 : i32
    %c0_i32_1 = arith.constant 0 : i32
    return %c0_i32, %c0_i32_0 : i32, i32
  }
  func.func @transform_2(%arg0: i32) -> (i32, i32) {
    %c0_i32 = arith.constant 0 : i32
    %c0_i32_0 = arith.constant 0 : i32
    %c0_i32_1 = arith.constant 0 : i32
    return %c0_i32, %c0_i32_0 : i32, i32
  }
  func.func @transform_3(%arg0: i32) -> (i32, i32) {
    %c0_i32 = arith.constant 0 : i32
    %c0_i32_0 = arith.constant 0 : i32
    %c0_i32_1 = arith.constant 0 : i32
    return %c0_i32, %c0_i32_0 : i32, i32
  }
  func.func @transform_4(%arg0: i32) -> (i32, i32) {
    %c0_i32 = arith.constant 0 : i32
    %c0_i32_0 = arith.constant 0 : i32
    %c0_i32_1 = arith.constant 0 : i32
    return %c0_i32, %c0_i32_0 : i32, i32
  }
  func.func @transform_5(%arg0: i32) -> (i32, i32) {
    %c0_i32 = arith.constant 0 : i32
    %c0_i32_0 = arith.constant 0 : i32
    %c0_i32_1 = arith.constant 0 : i32
    return %c0_i32, %c0_i32_0 : i32, i32
  }
  func.func @transform_6(%arg0: i32) -> (i32, i32) {
    %c0_i32 = arith.constant 0 : i32
    %c0_i32_0 = arith.constant 0 : i32
    %c0_i32_1 = arith.constant 0 : i32
    return %c0_i32, %c0_i32_0 : i32, i32
  }
}

</mosaic_0001>

<bundles_post_ra>
// kernel: _lambda_.2
= control target key start
LH: loop header
LB: loop body
LE: loop exit
PB: predicated region body
PF: predicated region fallthrough
CT: control target
= control target key end

     0   :  { %vm72_vm0 = vsmask.f32 3328  ;;  %vm73_vm1 = vsmask.f32 7440  ;;  %vm733_vm3 = vcmask 1042432   ;;  %vm734_vm4 = vcmask 1046532   ;;  %s5775_s0 = inlined_call_operand.vmem [shape: bf16[2,10,10,128], index: 0, kind: input, shape index: {}]   ;;  %s5776_s1 = inlined_call_operand.vmem [shape: bf16[1152,128], index: 1, kind: input, shape index: {}]   ;;  %s5777_s2 = inlined_call_operand.vmem [shape: f32[1,128], index: 2, kind: input, shape index: {}]   ;;  %s5778_s3 = inlined_call_operand.vmem [shape: f32[1,128], index: 3, kind: input, shape index: {}]   ;;  %s5779_s4 = inlined_call_operand.vmem [shape: f32[1,128], index: 4, kind: input, shape index: {}]   ;;  %s5780_s5 = inlined_call_operand.vmem [shape: bf16[128,128], index: 5, kind: output, shape index: {0}]   ;;  %s5781_s6 = inlined_call_operand.hbm [shape: f32[128,128], index: 6, kind: output, shape index: {1}]  }
   0x1   :  { %v4172_v0 = vld [vmem:[%s5776_s1 + $0x78] sm:$0xff]   ;;  %v4174_v2 = vld [vmem:[%s5776_s1 + $0x70] sm:$0xff]   ;;  %v4176_v4 = vld [vmem:[%s5776_s1 + $0x68] sm:$0xff]  }
   0x2   :  { %v4173_v1 = vld [vmem:[%s5776_s1 + $0x38] sm:$0xff]   ;;  %3864 = vmatprep.subr.bf16.mxu0 %v4172_v0  ;;  %v4175_v3 = vld [vmem:[%s5776_s1 + $0x30] sm:$0xff]   ;;  %v4177_v5 = vld [vmem:[%s5776_s1 + $0x28] sm:$0xff]  }
   0x3   :  { %3896 = vmatprep.subr.bf16.mxu1 %v4173_v1  ;;  %3865 = vmatpush3.bf16.msra.mxu0 %v4172_v0  ;;  %v4178_v6 = vld [vmem:[%s5776_s1 + $0x60] sm:$0xff]   ;;  %v4180_v8 = vld [vmem:[%s5776_s1 + $0x58] sm:$0xff]   ;;  %v4182_v10 = vld [vmem:[%s5776_s1 + $0x50] sm:$0xff]  }
   0x4   :  { %3897 = vmatpush3.bf16.msra.mxu1 %v4173_v1  ;;  %3866 = vmatprep.subr.bf16.mxu0 %v4174_v2  ;;  %v4179_v7 = vld [vmem:[%s5776_s1 + $0x20] sm:$0xff]   ;;  %v4181_v9 = vld [vmem:[%s5776_s1 + $0x18] sm:$0xff]   ;;  %v25_v12 = vld [vmem:[%s5775_s0 + $0x8] sm:$0xf] }
   0x5   :  { %3898 = vmatprep.subr.bf16.mxu1 %v4175_v3  ;;  %v24_v11 = vld [vmem:[%s5775_s0] sm:$0xf]  ;;  %v4375_v13 = vld [vmem:[%s5775_s0 + $0x4] sm:$0x1]  ;;  %v4183_v14 = vld [vmem:[%s5776_s1 + $0x10] sm:$0xff]   ;;  %v90_v21 = vshrl.u32 %v25_v12, 16 }
   0x6   :  { %v4383_v15 = vld [vmem:[%s5775_s0 + $0xc] sm:$0x1]  ;;  %v3353_v16 = vcombine.low %v24_v11, %v25_v12  ;;  %v76_v18 = vshrl.u32 %v24_v11, 16  ;;  %v79_v19 = vshll.u32 %v24_v11, 16  ;;  %v85_v20 = vshll.u32 %v4375_v13, 16  ;;  %v4186_v41 = vld [vmem:[%s5776_s1 + $0x40] sm:$0xff]   ;;  %vm4423_vm2 = vmor %vm72_vm0, %vm73_vm1 }
   0x7   :  { %3867 = vmatpush3.bf16.msra.mxu0 %v4174_v2  ;;  %v4184_v17 = vld [vmem:[%s5776_s1 + $0x48] sm:$0xff]   ;;  %v4392_v22 = vld [vmem:[%s5775_s0 + $0x10] sm:$0xf]  ;;  %v93_v24 = vshll.u32 %v25_v12, 16  ;;  %v99_v25 = vshll.u32 %v4383_v15, 16  ;;  %v92_v30 = vrot.slane %v90_v21, 4  ;;  %vm4644_vm5 = vmor %vm733_vm3, %vm734_vm4 }
   0x8   :  { %3899 = vmatpush3.bf16.msra.mxu1 %v4175_v3  ;;  %3868 = vmatprep.subr.bf16.mxu0 %v4176_v4  ;;  %v4185_v23 = vld [vmem:[%s5776_s1 + $0x8] sm:$0xff]   ;;  %v4401_v26 = vld [vmem:[%s5775_s0 + $0x18] sm:$0xf]  ;;  %v78_v27 = vrot.slane %v76_v18, 4  ;;  %v81_v28 = vrot.slane %v79_v19, 5  ;;  %v87_v29 = vrot.slane %v85_v20, 5 }
   0x9   :  { %3900 = vmatprep.subr.bf16.mxu1 %v4177_v5  ;;  %3912 = vmatprep.mubr.bf16.mxu1 %v3353_v16  ;;  %v4406_v31 = vld [vmem:[%s5775_s0 + $0x14] sm:$0x1]  ;;  %v95_v32 = vrot.slane %v93_v24, 5  ;;  %v101_v33 = vrot.slane %v99_v25, 5  ;;  %v4411_v34 = vld [vmem:[%s5775_s0 + $0x1c] sm:$0x1]  ;;  %v3354_v2 = vcombine.low %v4392_v22, %v4401_v26 }
   0xa   :  { %v104_v35 = vshrl.u32 %v4392_v22, 16  ;;  %v107_v36 = vshll.u32 %v4392_v22, 16  ;;  %v82_v37 = vor.u32 %v81_v28, %v78_v27  ;;  %v113_v38 = vshll.u32 %v4406_v31, 16  ;;  %v4187_v51 = vld [vmem:[%s5776_s1] sm:$0xff]   ;;  %v4190_v59 = vld [vmem:[%s5776_s1 + $0xb8] sm:$0xff]   ;;  %v4192_v19 = vld [vmem:[%s5776_s1 + $0xb0] sm:$0xff]  }
   0xb   :  { %3869 = vmatpush3.bf16.msra.mxu0 %v4176_v4  ;;  %v118_v39 = vshrl.u32 %v4401_v26, 16  ;;  %v121_v40 = vshll.u32 %v4401_v26, 16  ;;  %v96_v43 = vor.u32 %v95_v32, %v92_v30  ;;  %v127_v46 = vshll.u32 %v4411_v34, 16  ;;  %v4191_v62 = vld [vmem:[%s5776_s1 + $0xf8] sm:$0xff]   ;;  %v28_v3 = vld [vmem:[%s5775_s0 + $0x20] sm:$0xf] }
   0xc   :  { %3901 = vmatpush3.bf16.msra.mxu1 %v4177_v5  ;;  %3870 = vmatprep.subr.bf16.mxu0 %v4178_v6  ;;  %v106_v44 = vrot.slane %v104_v35, 4  ;;  %v109_v45 = vrot.slane %v107_v36, 5  ;;  %v83_v47 = vrot.slane %v82_v37, 4  ;;  %v738_v48 = vrot.slane %v4375_v13, 5  ;;  %v29_v4 = vld [vmem:[%s5775_s0 + $0x28] sm:$0xf] }
   0xd   :  { %3902 = vmatprep.subr.bf16.mxu1 %v4179_v7  ;;  %v120_v49 = vrot.slane %v118_v39, 4  ;;  %v123_v50 = vrot.slane %v121_v40, 5  ;;  %v97_v52 = vrot.slane %v96_v43, 4  ;;  %v742_v53 = vrot.slane %v4383_v15, 5  ;;  %v4484_v27 = vld [vmem:[%s5775_s0 + $0x34] sm:$0x1] }
   0xe   :  { %v110_v54 = vor.u32 %v109_v45, %v106_v44  ;;  %v115_v55 = vrot.slane %v113_v38, 5  ;;  %v88_v56 = vsel %vm4423_vm2, %v83_v47, %v87_v29  ;;  %v129_v58 = vrot.slane %v127_v46, 5  ;;  %v4193_v29 = vld [vmem:[%s5776_s1 + $0xf0] sm:$0xff]   ;;  %v4196_v45 = vld [vmem:[%s5776_s1 + $0xa8] sm:$0xff]   ;;  %v4213_v13 = vld [vmem:[%s5775_s0 + $0x18] ss:$8 sps:$4 sm:$0xff]  }
   0xf   :  { %3871 = vmatpush3.bf16.msra.mxu0 %v4178_v6  ;;  %v124_v57 = vor.u32 %v123_v50, %v120_v49  ;;  %v102_v60 = vsel %vm4423_vm2, %v97_v52, %v101_v33  ;;  %v746_v1 = vrot.slane %v4406_v31, 5  ;;  %v4457_v6 = vld [vmem:[%s5775_s0 + $0x24] sm:$0x1]  ;;  %v149_v16 = vshll.u32 %v29_v4, 16  ;;  %v4493_v33 = vld [vmem:[%s5775_s0 + $0x3c] sm:$0x1] }
  0x10   :  { %3903 = vmatpush3.bf16.msra.mxu1 %v4179_v7  ;;  %3872 = vmatprep.subr.bf16.mxu0 %v4180_v8  ;;  %v111_v61 = vrot.slane %v110_v54, 4  ;;  %v3337_v63 = vcombine.low %v88_v56, %v102_v60  ;;  %v4462_v7 = vld [vmem:[%s5775_s0 + $0x2c] sm:$0x1]  ;;  %v141_v12 = vshll.u32 %v4457_v6, 16  ;;  %v169_v36 = vshll.u32 %v4484_v27, 16  ;;  %v4217_v15 = vld [vmem:[%s5776_s1 + $0x170] sm:$0xff]  }
  0x11   :  { %3904 = vmatprep.subr.bf16.mxu1 %v4181_v9  ;;  %v125_v0 = vrot.slane %v124_v57, 4  ;;  %v155_v22 = vshll.u32 %v4462_v7, 16  ;;  %v151_v26 = vrot.slane %v149_v16, 5  ;;  %v183_v44 = vshll.u32 %v4493_v33, 16  ;;  %v4197_v50 = vld [vmem:[%s5776_s1 + $0xe8] sm:$0xff]  }
  0x12   :  { %v116_v5 = vsel %vm4423_vm2, %v111_v61, %v115_v55  ;;  %3880 = vmatprep.mubr.bf16.mxu0 %v3337_v63  ;;  %v143_v24 = vrot.slane %v141_v12, 5  ;;  %v171_v54 = vrot.slane %v169_v36, 5  ;;  %v4198_v61 = vld [vmem:[%s5776_s1 + $0xa0] sm:$0xff]   ;;  %v33_v63 = vld [vmem:[%s5775_s0 + $0x58] sm:$0xf]  ;;  %v762_v31 = vrot.slane %v4484_v27, 5 }
  0x13   :  { %3873 = vmatpush3.bf16.msra.mxu0 %v4180_v8  ;;  %v132_v8 = vshrl.u32 %v28_v3, 16  ;;  %v130_v11 = vsel %vm4423_vm2, %v125_v0, %v129_v58  ;;  %v157_v32 = vrot.slane %v155_v22, 5  ;;  %v185_v55 = vrot.slane %v183_v44, 5  ;;  %v3621_v42 = vld [vmem:[%s5775_s0 + $0x80] sm:$0xe] }
  0x14   :  { %3905 = vmatpush3.bf16.msra.mxu1 %v4181_v9  ;;  %3874 = vmatprep.subr.bf16.mxu0 %v4182_v10  ;;  %v135_v9 = vshll.u32 %v28_v3, 16  ;;  %v3338_v18 = vcombine.low %v116_v5, %v130_v11  ;;  %v202_v12 = vshrl.u32 %v33_v63, 16 }
  0x15   :  { %3906 = vmatprep.subr.bf16.mxu1 %v4183_v14  ;;  %v134_v20 = vrot.slane %v132_v8, 4 }
  0x16   :  { %v137_v21 = vrot.slane %v135_v9, 5  ;;  %v4199_v9 = vld [vmem:[%s5776_s1 + $0xe0] sm:$0xff]  }
  0x17   :  { %3875 = vmatpush3.bf16.msra.mxu0 %v4182_v10  ;;  %v3355_v10 = vcombine.low %v28_v3, %v29_v4  ;;  %v4529_v3 = vld [vmem:[%s5775_s0 + $0x5c] sm:$0x1] }
  0x18   :  { %3907 = vmatpush3.bf16.msra.mxu1 %v4183_v14  ;;  %3876 = vmatprep.subr.bf16.mxu0 %v4184_v17  ;;  %v146_v14 = vshrl.u32 %v29_v4, 16  ;;  %v138_v30 = vor.u32 %v137_v21, %v134_v20  ;;  %v35_v20 = vld [vmem:[%s5775_s0 + $0x68] sm:$0xf] }
  0x19   :  { %3908 = vmatprep.subr.bf16.mxu1 %v4185_v23 }
  0x1a   :  { %v148_v25 = vrot.slane %v146_v14, 4  ;;  %v34_v14 = vld [vmem:[%s5775_s0 + $0x60] sm:$0xf] }
  0x1b   :  { %3877 = vmatpush3.bf16.msra.mxu0 %v4184_v17  ;;  %v4470_v17 = vld [vmem:[%s5775_s0 + $0x30] sm:$0xf] }
  0x1c   :  { %3909 = vmatpush3.bf16.msra.mxu1 %v4185_v23  ;;  %3878 = vmatprep.subr.bf16.mxu0 %v4186_v41  ;;  %v4479_v23 = vld [vmem:[%s5775_s0 + $0x38] sm:$0xf]  ;;  %v160_v28 = vshrl.u32 %v4470_v17, 16  ;;  %v163_v35 = vshll.u32 %v4470_v17, 16  ;;  %v152_v37 = vor.u32 %v151_v26, %v148_v25  ;;  %v4549_v25 = vld [vmem:[%s5775_s0 + $0x64] sm:$0x1] }
  0x1d   :  { %3910 = vmatprep.subr.bf16.mxu1 %v4187_v51  ;;  %v174_v39 = vshrl.u32 %v4479_v23, 16  ;;  %v177_v40 = vshll.u32 %v4479_v23, 16  ;;  %v3356_v60 = vcombine.low %v4470_v17, %v4479_v23  ;;  %v4202_v26 = vld [vmem:[%s5776_s1 + $0x98] sm:$0xff]  }
  0x1e   :  { %v162_v38 = vrot.slane %v160_v28, 4  ;;  %v165_v43 = vrot.slane %v163_v35, 5  ;;  %v153_v46 = vrot.slane %v152_v37, 4  ;;  %v219_v35 = vshll.u32 %v34_v14, 16 }
  0x1f   :  { %3879 = vmatpush3.bf16.msra.mxu0 %v4186_v41  ;;  %v139_v41 = vrot.slane %v138_v30, 4  ;;  %v176_v47 = vrot.slane %v174_v39, 4  ;;  %v179_v49 = vrot.slane %v177_v40, 5  ;;  %v4557_v30 = vld [vmem:[%s5775_s0 + $0x6c] sm:$0x1]  ;;  %v225_v37 = vshll.u32 %v4549_v25, 16 }
  0x20   :  { %3911 = vmatpush3.bf16.msra.mxu1 %v4187_v51  ;;  %3928 = vmatprep.subr.bf16.mxu0 %v4190_v59  ;;  %v166_v52 = vor.u32 %v165_v43, %v162_v38  ;;  %v158_v56 = vsel %vm4423_vm2, %v153_v46, %v157_v32  ;;  %v216_v32 = vshrl.u32 %v34_v14, 16  ;;  %v230_v38 = vshrl.u32 %v35_v20, 16  ;;  %v4203_v40 = vld [vmem:[%s5776_s1 + $0xd8] sm:$0xff]   ;;  %v4204_v46 = vld [vmem:[%s5776_s1 + $0x90] sm:$0xff]  }
  0x21   :  { %3960 = vmatprep.subr.bf16.mxu1 %v4191_v62  ;;  %v144_v51 = vsel %vm4423_vm2, %v139_v41, %v143_v24  ;;  %v180_v57 = vor.u32 %v179_v49, %v176_v47  ;;  %v204_v24 = vrot.slane %v202_v12, 4  ;;  %v233_v39 = vshll.u32 %v35_v20, 16 }
  0x22   :  { %3881 = vmatmul.mubr.bf16.vlgmr.msra.gmra.mxu0 %v3338_v18  ;;  %v3339_v58 = vcombine.low %v144_v51, %v158_v56  ;;  %v205_v18 = vshll.u32 %v33_v63, 16  ;;  %v218_v43 = vrot.slane %v216_v32, 4  ;;  %v221_v44 = vrot.slane %v219_v35, 5 }
  0x23   :  { %3913 = vmatmul.mubr.bf16.vlgmr.msra.gmra.mxu1 %v3354_v2  ;;  %3929 = vmatpush3.bf16.msra.mxu0 %v4190_v59  ;;  %v167_v59 = vrot.slane %v166_v52, 4  ;;  %v181_v0 = vrot.slane %v180_v57, 4  ;;  %v4524_v2 = vld [vmem:[%s5775_s0 + $0x54] sm:$0x1]  ;;  %v227_v49 = vrot.slane %v225_v37, 5  ;;  %v235_v51 = vrot.slane %v233_v39, 5 }
  0x24   :  { %3961 = vmatpush3.bf16.msra.mxu1 %v4191_v62  ;;  %3930 = vmatprep.subr.bf16.mxu0 %v4192_v19  ;;  %v32_v62 = vld [vmem:[%s5775_s0 + $0x50] sm:$0xf]  ;;  %v197_v11 = vshll.u32 %v4524_v2, 16  ;;  %v207_v28 = vrot.slane %v205_v18, 5  ;;  %v3358_v57 = vcombine.low %v34_v14, %v35_v20  ;;  %v38_v18 = vld [vmem:[%s5775_s0 + $0x80] sm:$0xf] }
  0x25   :  { %3962 = vmatprep.subr.bf16.mxu1 %v4193_v29  ;;  %3916 = vmatprep.mubr.bf16.mxu1 %v3355_v10  ;;  %v188_v4 = vshrl.u32 %v32_v62, 16  ;;  %v3357_v5 = vcombine.low %v32_v62, %v33_v63  ;;  %v172_v8 = vsel %vm4423_vm2, %v167_v59, %v171_v54  ;;  %v191_v10 = vshll.u32 %v32_v62, 16  ;;  %v4205_v52 = vld [vmem:[%s5776_s1 + $0xd0] sm:$0xff]   ;;  %v4617_v39 = vld [vmem:[%s5775_s0 + $0x8c] sm:$0x1] }
  0x26   :  { %3884 = vmatprep.mubr.bf16.mxu0 %v3339_v58  ;;  %v186_v16 = vsel %vm4423_vm2, %v181_v0, %v185_v55  ;;  %v199_v23 = vrot.slane %v197_v11, 5  ;;  %v208_v41 = vor.u32 %v207_v28, %v204_v24  ;;  %v222_v55 = vor.u32 %v221_v44, %v218_v43  ;;  %v36_v63 = vld [vmem:[%s5775_s0 + $0x70] sm:$0xf]  ;;  %v37_v0 = vld [vmem:[%s5775_s0 + $0x78] sm:$0xf] }
  0x27   :  { %3931 = vmatpush3.bf16.msra.mxu0 %v4192_v19  ;;  %v190_v17 = vrot.slane %v188_v4, 4  ;;  %v211_v19 = vshll.u32 %v4529_v3, 16  ;;  %v3340_v21 = vcombine.low %v172_v8, %v186_v16  ;;  %v193_v22 = vrot.slane %v191_v10, 5  ;;  %v4584_v8 = vld [vmem:[%s5775_s0 + $0x74] sm:$0x1] }
  0x28   :  { %3963 = vmatpush3.bf16.msra.mxu1 %v4193_v29  ;;  %3932 = vmatprep.subr.bf16.mxu0 %v4196_v45  ;;  %v209_v54 = vrot.slane %v208_v41, 4  ;;  %v223_v62 = vrot.slane %v222_v55, 4  ;;  %v244_v10 = vshrl.u32 %v36_v63, 16  ;;  %v3359_v11 = vcombine.low %v36_v63, %v37_v0  ;;  %v39_v24 = vld [vmem:[%s5775_s0 + $0x88] sm:$0xf] }
  0x29   :  { %3964 = vmatprep.subr.bf16.mxu1 %v4197_v50  ;;  %v213_v29 = vrot.slane %v211_v19, 5  ;;  %v194_v36 = vor.u32 %v193_v22, %v190_v17  ;;  %v247_v14 = vshll.u32 %v36_v63, 16  ;;  %v253_v16 = vshll.u32 %v4584_v8, 16  ;;  %v4208_v19 = vld [vmem:[%s5776_s1 + $0x88] sm:$0xff]  }
  0x2a   :  { %3885 = vmatmul.mubr.bf16.gmra.mxu0 %v3340_v21  ;;  %v228_v12 = vsel %vm4423_vm2, %v223_v62, %v227_v49  ;;  %v258_v17 = vshrl.u32 %v37_v0, 16  ;;  %v246_v21 = vrot.slane %v244_v10, 4  ;;  %v261_v22 = vshll.u32 %v37_v0, 16  ;;  %v4630_v0 = vld [vmem:[%s5776_s1 + $0x138] sm:$0xff]  }
  0x2b   :  { %3917 = vmatmul.mubr.bf16.gmra.mxu1 %v3356_v60  ;;  %3933 = vmatpush3.bf16.msra.mxu0 %v4196_v45  ;;  %v239_v45 = vshll.u32 %v4557_v30, 16  ;;  %v195_v47 = vrot.slane %v194_v36, 4  ;;  %v750_v60 = vrot.slane %v4411_v34, 5  ;;  %v255_v32 = vrot.slane %v253_v16, 5  ;;  %v4612_v36 = vld [vmem:[%s5775_s0 + $0x84] sm:$0x1] }
  0x2c   :  { %3965 = vmatpush3.bf16.msra.mxu1 %v4197_v50  ;;  %3934 = vmatprep.subr.bf16.mxu0 %v4198_v61  ;;  %v232_v50 = vrot.slane %v230_v38, 4  ;;  %v260_v35 = vrot.slane %v258_v17, 4  ;;  %v263_v37 = vrot.slane %v261_v22, 5  ;;  %v275_v41 = vshll.u32 %v38_v18, 16  ;;  %v4215_v22 = vld [vmem:[%s5776_s1 + $0x178] sm:$0xff]  }
  0x2d   :  { %3966 = vmatprep.subr.bf16.mxu1 %v4199_v9  ;;  %3920 = vmatprep.mubr.bf16.mxu1 %v3357_v5  ;;  %v241_v56 = vrot.slane %v239_v45, 5  ;;  %v200_v58 = vsel %vm4423_vm2, %v195_v47, %v199_v23  ;;  %v281_v44 = vshll.u32 %v4612_v36, 16  ;;  %v286_v45 = vshrl.u32 %v39_v24, 16 }
  0x2e   :  { %v236_v59 = vor.u32 %v235_v51, %v232_v50  ;;  %v289_v47 = vshll.u32 %v39_v24, 16  ;;  %v264_v49 = vor.u32 %v263_v37, %v260_v35  ;;  %v277_v51 = vrot.slane %v275_v41, 5 }
  0x2f   :  { %3935 = vmatpush3.bf16.msra.mxu0 %v4198_v61  ;;  %v214_v61 = vsel %vm4423_vm2, %v209_v54, %v213_v29  ;;  %v249_v29 = vrot.slane %v247_v14, 5  ;;  %v295_v54 = vshll.u32 %v4617_v39, 16  ;;  %v3360_v63 = vcombine.low %v38_v18, %v39_v24  ;;  %v686_v14 = vld [vmem:[%s5775_s0 + $0x8] sm:$0xe] }
  0x30   :  { %3967 = vmatpush3.bf16.msra.mxu1 %v4199_v9  ;;  %3936 = vmatprep.subr.bf16.mxu0 %v4202_v26  ;;  %v3341_v4 = vcombine.low %v200_v58, %v214_v61  ;;  %v237_v5 = vrot.slane %v236_v59, 4  ;;  %v4589_v9 = vld [vmem:[%s5775_s0 + $0x7c] sm:$0x1]  ;;  %v291_v58 = vrot.slane %v289_v47, 5  ;;  %v265_v59 = vrot.slane %v264_v49, 4 }
  0x31   :  { %3968 = vmatprep.subr.bf16.mxu1 %v4203_v40  ;;  %v267_v23 = vshll.u32 %v4589_v9, 16  ;;  %v250_v43 = vor.u32 %v249_v29, %v246_v21  ;;  %v297_v62 = vrot.slane %v295_v54, 5  ;;  %v754_v17 = vrot.slane %v4457_v6, 5  ;;  %v4212_v24 = vld [vmem:[%s5775_s0 + $0x8] ss:$8 sps:$4 sm:$0xff]  }
  0x32   :  { %3888 = vmatprep.mubr.bf16.mxu0 %v3341_v4  ;;  %v242_v20 = vsel %vm4423_vm2, %v237_v5, %v241_v56  ;;  %v283_v56 = vrot.slane %v281_v44, 5  ;;  %v3370_v21 = vrot.slane %v686_v14, 9  ;;  %v687_v6 = vld [vmem:[%s5775_s0 + $0x10] sm:$0xe] }
  0x33   :  { %3921 = vmatmul.mubr.bf16.gmra.mxu1 %v3358_v57  ;;  %3937 = vmatpush3.bf16.msra.mxu0 %v4202_v26  ;;  %v4209_v26 = vld [vmem:[%s5776_s1 + $0xc8] sm:$0xff]   ;;  %v3342_v28 = vcombine.low %v228_v12, %v242_v20  ;;  %v269_v38 = vrot.slane %v267_v23, 5  ;;  %v251_v55 = vrot.slane %v250_v43, 4  ;;  %v288_v57 = vrot.slane %v286_v45, 4  ;;  %v685_v12 = vld [vmem:[%s5775_s0] sm:$0xe] }
  0x34   :  { %3969 = vmatpush3.bf16.msra.mxu1 %v4203_v40  ;;  %3938 = vmatprep.subr.bf16.mxu0 %v4204_v46  ;;  %v272_v40 = vshrl.u32 %v38_v18, 16  ;;  %v3369_v20 = vrot.slane %v685_v12, 9  ;;  %v743_v29 = vsel %vm4644_vm5, %v3370_v21, %v742_v53  ;;  %v3371_v35 = vrot.slane %v687_v6, 9  ;;  %v689_v43 = vld [vmem:[%s5775_s0 + $0x20] sm:$0xe] }
  0x35   :  { %3970 = vmatprep.subr.bf16.mxu1 %v4205_v52  ;;  %3924 = vmatprep.mubr.bf16.mxu1 %v3359_v11  ;;  %v256_v4 = vsel %vm4423_vm2, %v251_v55, %v255_v32  ;;  %v292_v5 = vor.u32 %v291_v58, %v288_v57  ;;  %v270_v10 = vsel %vm4423_vm2, %v265_v59, %v269_v38  ;;  %v688_v32 = vld [vmem:[%s5775_s0 + $0x18] sm:$0xe]  ;;  %v3373_v44 = vrot.slane %v689_v43, 9  ;;  %v691_v49 = vld [vmem:[%s5775_s0 + $0x30] sm:$0xe]  ;;  %v4220_v59 = vld [vmem:[%s5776_s1 + $0x128] sm:$0xff]  }
  0x36   :  { %3889 = vmatmul.mubr.bf16.gmra.mxu0 %v3342_v28  ;;  %v274_v50 = vrot.slane %v272_v40, 4  ;;  %v3343_v18 = vcombine.low %v256_v4, %v270_v10  ;;  %v739_v28 = vsel %vm4644_vm5, %v3369_v20, %v738_v48  ;;  %v3372_v40 = vrot.slane %v688_v32, 9  ;;  %v698_v32 = vld [vmem:[%s5775_s0 + $0x78] sm:$0xe] }
  0x37   :  { %3939 = vmatpush3.bf16.msra.mxu0 %v4204_v46  ;;  %v4210_v46 = vld [vmem:[%s5776_s1 + $0x80] sm:$0xff]   ;;  %v3385_v38 = vcombine.low %v739_v28, %v743_v29  ;;  %v758_v48 = vrot.slane %v4462_v7, 5  ;;  %v747_v53 = vsel %vm4644_vm5, %v3371_v35, %v746_v1  ;;  %v690_v7 = vld [vmem:[%s5775_s0 + $0x28] sm:$0xe]  ;;  %v766_v45 = vrot.slane %v4493_v33, 5 }
  0x38   :  { %3971 = vmatpush3.bf16.msra.mxu1 %v4205_v52  ;;  %3940 = vmatprep.subr.bf16.mxu0 %v4208_v19  ;;  %v4211_v52 = vld [vmem:[%s5776_s1 + $0xc0] sm:$0xff]   ;;  %v278_v61 = vor.u32 %v277_v51, %v274_v50  ;;  %v751_v41 = vsel %vm4644_vm5, %v3372_v40, %v750_v60  ;;  %v4221_v1 = vld [vmem:[%s5776_s1 + $0x168] sm:$0xff]   ;;  %v3374_v34 = vrot.slane %v690_v7, 9  ;;  %v755_v27 = vsel %vm4644_vm5, %v3373_v44, %v754_v17  ;;  %v692_v50 = vld [vmem:[%s5775_s0 + $0x38] sm:$0xe] }
  0x39   :  { %3972 = vmatprep.subr.bf16.mxu1 %v4209_v26  ;;  %3892 = vmatprep.mubr.bf16.mxu0 %v3343_v18  ;;  %v4218_v60 = vld [vmem:[%s5775_s0 + $0x28] ss:$8 sps:$4 sm:$0xff]   ;;  %v3386_v47 = vcombine.low %v747_v53, %v751_v41  ;;  %v3375_v51 = vrot.slane %v691_v49, 9  ;;  %v3376_v54 = vrot.slane %v692_v50, 9  ;;  %v770_v4 = vrot.slane %v4524_v2, 5  ;;  %v4222_v17 = vld [vmem:[%s5776_s1 + $0x120] sm:$0xff]  }
  0x3a   :  { %v279_v11 = vrot.slane %v278_v61, 4  ;;  %v759_v33 = vsel %vm4644_vm5, %v3374_v34, %v758_v48  ;;  %v693_v61 = vld [vmem:[%s5775_s0 + $0x50] sm:$0xe]  ;;  %v778_v10 = vrot.slane %v4549_v25, 5  ;;  %v782_v12 = vrot.slane %v4557_v30, 5 }
  0x3b   :  { %3941 = vmatpush3.bf16.msra.mxu0 %v4208_v19  ;;  %3925 = vmatmul.mubr.bf16.gmra.mxu1 %v3360_v63  ;;  %v293_v19 = vrot.slane %v292_v5, 4  ;;  %v3387_v55 = vcombine.low %v755_v27, %v759_v33  ;;  %v763_v57 = vsel %vm4644_vm5, %v3375_v51, %v762_v31  ;;  %v767_v58 = vsel %vm4644_vm5, %v3376_v54, %v766_v45  ;;  %v4224_v2 = vld [vmem:[%s5775_s0 + $0x58] ss:$8 sps:$4 sm:$0xff]   ;;  %v696_v25 = vld [vmem:[%s5775_s0 + $0x68] sm:$0xe]  ;;  %v4228_v53 = vld [vmem:[%s5776_s1 + $0x110] sm:$0xff]  }
  0x3c   :  { %3973 = vmatpush3.bf16.msra.mxu1 %v4209_v26  ;;  %3942 = vmatprep.subr.bf16.mxu0 %v4210_v46  ;;  %v284_v23 = vsel %vm4423_vm2, %v279_v11, %v283_v56  ;;  %v4223_v56 = vld [vmem:[%s5776_s1 + $0x160] sm:$0xff]   ;;  %v3377_v63 = vrot.slane %v693_v61, 9  ;;  %v774_v5 = vrot.slane %v4529_v3, 5  ;;  %v3388_v30 = vcombine.low %v763_v57, %v767_v58  ;;  %v697_v28 = vld [vmem:[%s5775_s0 + $0x70] sm:$0xe] }
  0x3d   :  { %3974 = vmatprep.subr.bf16.mxu1 %v4211_v52  ;;  %v298_v26 = vsel %vm4423_vm2, %v293_v19, %v297_v62  ;;  %3976 = vmatprep.mubr.bf16.mxu1 %v4212_v24  ;;  %v694_v62 = vld [vmem:[%s5775_s0 + $0x58] sm:$0xe]  ;;  %v695_v3 = vld [vmem:[%s5775_s0 + $0x60] sm:$0xe]  ;;  %v3380_v20 = vrot.slane %v696_v25, 9  ;;  %v790_v29 = vrot.slane %v4589_v9, 5 }
  0x3e   :  { %v3344_v37 = vcombine.low %v284_v23, %v298_v26  ;;  %v3378_v11 = vrot.slane %v694_v62, 9  ;;  %v771_v14 = vsel %vm4644_vm5, %v3377_v63, %v770_v4  ;;  %v3379_v19 = vrot.slane %v695_v3, 9  ;;  %v4229_v26 = vld [vmem:[%s5776_s1 + $0x150] sm:$0xff]   ;;  %v700_v48 = vld [vmem:[%s5775_s0 + $0x88] sm:$0xe]  ;;  %v4235_v45 = vld [vmem:[%s5776_s1 + $0x140] sm:$0xff]  }
  0x3f   :  { %3943 = vmatpush3.bf16.msra.mxu0 %v4210_v46  ;;  %v4216_v46 = vld [vmem:[%s5776_s1 + $0x130] sm:$0xff]   ;;  %v786_v23 = vrot.slane %v4584_v8, 5  ;;  %v783_v6 = vsel %vm4644_vm5, %v3380_v20, %v782_v12  ;;  %v4226_v8 = vld [vmem:[%s5776_s1 + $0x118] sm:$0xff]   ;;  %v3381_v35 = vrot.slane %v697_v28, 9  ;;  %v794_v9 = vrot.slane %v4612_v36, 5 }
  0x40   :  { %3975 = vmatpush3.bf16.msra.mxu1 %v4211_v52  ;;  %3992 = vmatprep.subr.bf16.mxu0 %v4630_v0  ;;  %v4219_v52 = vld [vmem:[%s5775_s0 + $0x38] ss:$8 sps:$4 sm:$0xff]   ;;  %v775_v18 = vsel %vm4644_vm5, %v3378_v11, %v774_v5  ;;  %v779_v24 = vsel %vm4644_vm5, %v3379_v19, %v778_v10  ;;  %v3384_v43 = vrot.slane %v700_v48, 9  ;;  %v798_v7 = vrot.slane %v4617_v39, 5  ;;  %v4231_v31 = vld [vmem:[%s5775_s0 + $0x88] ss:$8 sps:$4 sm:$0xff]  }
  0x41   :  { %4024 = vmatprep.subr.bf16.mxu1 %v4215_v22  ;;  %3893 = vmatmul.mubr.bf16.gmra.mxu0 %v3344_v37  ;;  %v3389_v21 = vcombine.low %v771_v14, %v775_v18  ;;  %v3382_v37 = vrot.slane %v698_v32, 9  ;;  %v3390_v40 = vcombine.low %v779_v24, %v783_v6  ;;  %v4232_v39 = vld [vmem:[%s5776_s1 + $0x108] sm:$0xff]   ;;  %v3435_v27 = vld [vmem:[%s5775_s0 + $0x10] sm:$0xf]  ;;  %v3436_v49 = vld [vmem:[%s5775_s0 + $0x14] sm:$0x1] }
  0x42   :  { %3944 = vmatprep.mubr.bf16.mxu0 %v3385_v38  ;;  %v4230_v38 = vld [vmem:[%s5775_s0 + $0x78] ss:$8 sps:$4 sm:$0xff]   ;;  %v1298_v54 = vshrl.u32 %v3435_v27, 16  ;;  %v3481_v57 = vld [vmem:[%s5775_s0 + $0x8] sm:$0xe]  ;;  %v1770_v25 = vrot.slane %v3436_v49, 5 }
  0x43   :  { %3977 = vmatmul.mubr.bf16.vlgmr.msra.gmra.mxu1 %v4213_v13  ;;  %v787_v13 = vsel %vm4644_vm5, %v3381_v35, %v786_v23  ;;  %v791_v36 = vsel %vm4644_vm5, %v3382_v37, %v790_v29  ;;  %v3482_v58 = vld [vmem:[%s5775_s0 + $0x10] sm:$0xe]  ;;  %v3437_v5 = vld [vmem:[%s5775_s0 + $0x18] sm:$0xf]  ;;  %v3497_v12 = vrot.slane %v3481_v57, 9 }
  0x44   :  { %4025 = vmatpush3.bf16.msra.mxu1 %v4215_v22  ;;  %3980 = vmatprep.mubr.bf16.mxu1 %v4218_v60  ;;  %v4225_v22 = vld [vmem:[%s5775_s0 + $0x68] ss:$8 sps:$4 sm:$0xff]   ;;  %v3391_v44 = vcombine.low %v787_v13, %v791_v36  ;;  %v799_v60 = vsel %vm4644_vm5, %v3384_v43, %v798_v7  ;;  %v1300_v4 = vrot.slane %v1298_v54, 4  ;;  %v3438_v14 = vld [vmem:[%s5775_s0 + $0x1c] sm:$0x1]  ;;  %v3498_v3 = vrot.slane %v3482_v58, 9 }
  0x45   :  { %4026 = vmatprep.subr.bf16.mxu1 %v4217_v15  ;;  %v1312_v20 = vshrl.u32 %v3437_v5, 16  ;;  %v3484_v23 = vld [vmem:[%s5775_s0 + $0x20] sm:$0xe]  ;;  %v4237_v37 = vld [vmem:[%s5776_s1 + $0x1f8] sm:$0xff]  }
  0x46   :  { %v1771_v6 = vsel %vm4644_vm5, %v3498_v3, %v1770_v25  ;;  %v4241_v3 = vld [vmem:[%s5776_s1 + $0x1e8] sm:$0xff]  }
  0x47   :  { %v1314_v32 = vrot.slane %v1312_v20, 4  ;;  %v3447_v20 = vld [vmem:[%s5775_s0 + $0x40] sm:$0xf] }
  0x48   :  { %4027 = vmatpush3.bf16.msra.mxu1 %v4217_v15  ;;  %v699_v15 = vld [vmem:[%s5775_s0 + $0x80] sm:$0xe] }
  0x49   :  { %3945 = vmatmul.mubr.bf16.vlgmr.msra.gmra.mxu0 %v3386_v47  ;;  %4028 = vmatprep.subr.bf16.mxu1 %v4221_v1  ;;  %v3383_v41 = vrot.slane %v699_v15, 9  ;;  %v3433_v47 = vld [vmem:[%s5775_s0 + $0x8] sm:$0xf]  ;;  %v4865_v15 = vld [vmem:[%s5776_s1 + $0x1b8] sm:$0xff]  }
  0x4a   :  { %3993 = vmatpush3.bf16.msra.mxu0 %v4630_v0  ;;  %3948 = vmatprep.mubr.bf16.mxu0 %v3387_v55  ;;  %v4227_v0 = vld [vmem:[%s5776_s1 + $0x158] sm:$0xff]   ;;  %v1284_v50 = vshrl.u32 %v3433_v47, 16  ;;  %v1287_v33 = vshll.u32 %v3433_v47, 16  ;;  %v1301_v55 = vshll.u32 %v3435_v27, 16  ;;  %v3441_v47 = vld [vmem:[%s5775_s0 + $0x28] sm:$0xf] }
  0x4b   :  { %3994 = vmatprep.subr.bf16.mxu0 %v4216_v46  ;;  %3981 = vmatmul.mubr.bf16.gmra.mxu1 %v4219_v52  ;;  %v795_v34 = vsel %vm4644_vm5, %v3383_v41, %v794_v9  ;;  %v1343_v54 = vshll.u32 %v3441_v47, 16 }
  0x4c   :  { %4029 = vmatpush3.bf16.msra.mxu1 %v4221_v1  ;;  %3984 = vmatprep.mubr.bf16.mxu1 %v4224_v2  ;;  %v4233_v1 = vld [vmem:[%s5776_s1 + $0x148] sm:$0xff]   ;;  %v3392_v52 = vcombine.low %v795_v34, %v799_v60  ;;  %v1286_v61 = vrot.slane %v1284_v50, 4  ;;  %v1289_v62 = vrot.slane %v1287_v33, 5  ;;  %v1303_v10 = vrot.slane %v1301_v55, 5  ;;  %v3443_v50 = vld [vmem:[%s5775_s0 + $0x30] sm:$0xf] }
  0x4d   :  { %4030 = vmatprep.subr.bf16.mxu1 %v4223_v56  ;;  %v3444_v33 = vld [vmem:[%s5775_s0 + $0x34] sm:$0x1]  ;;  %v1354_v58 = vshrl.u32 %v3443_v50, 16 }
  0x4e   :  { %3995 = vmatpush3.bf16.msra.mxu0 %v4216_v46  ;;  %v3434_v46 = vld [vmem:[%s5775_s0 + $0xc] sm:$0x1]  ;;  %v1290_v2 = vor.u32 %v1289_v62, %v1286_v61  ;;  %v1304_v18 = vor.u32 %v1303_v10, %v1300_v4  ;;  %v4238_v61 = vld [vmem:[%s5776_s1 + $0x1b0] sm:$0xff]   ;;  %v1357_v4 = vshll.u32 %v3443_v50, 16 }
  0x4f   :  { %3996 = vmatprep.subr.bf16.mxu0 %v4220_v59  ;;  %v1293_v51 = vshll.u32 %v3434_v46, 16  ;;  %v3486_v10 = vld [vmem:[%s5775_s0 + $0x30] sm:$0xe] }
  0x50   :  { %4031 = vmatpush3.bf16.msra.mxu1 %v4223_v56  ;;  %v1307_v56 = vshll.u32 %v3436_v49, 16  ;;  %v1291_v24 = vrot.slane %v1290_v2, 4  ;;  %v1305_v29 = vrot.slane %v1304_v18, 4  ;;  %v3445_v2 = vld [vmem:[%s5775_s0 + $0x38] sm:$0xf] }
  0x51   :  { %3949 = vmatmul.mubr.bf16.gmra.mxu0 %v3388_v30  ;;  %4032 = vmatprep.subr.bf16.mxu1 %v4227_v0  ;;  %v1295_v63 = vrot.slane %v1293_v51, 5  ;;  %v3439_v30 = vld [vmem:[%s5775_s0 + $0x20] sm:$0xf]  ;;  %v1340_v51 = vshrl.u32 %v3441_v47, 16 }
  0x52   :  { %3997 = vmatpush3.bf16.msra.mxu0 %v4220_v59  ;;  %3952 = vmatprep.mubr.bf16.mxu0 %v3389_v21  ;;  %v4234_v59 = vld [vmem:[%s5776_s1 + $0x100] sm:$0xff]   ;;  %v1309_v11 = vrot.slane %v1307_v56, 5  ;;  %v1315_v21 = vshll.u32 %v3437_v5, 16  ;;  %v1326_v28 = vshrl.u32 %v3439_v30, 16  ;;  %v1329_v13 = vshll.u32 %v3439_v30, 16  ;;  %v4239_v56 = vld [vmem:[%s5776_s1 + $0x1f0] sm:$0xff]  }
  0x53   :  { %3998 = vmatprep.subr.bf16.mxu0 %v4222_v17  ;;  %3985 = vmatmul.mubr.bf16.gmra.mxu1 %v4225_v22  ;;  %v3483_v22 = vld [vmem:[%s5775_s0 + $0x18] sm:$0xe]  ;;  %v1342_v62 = vrot.slane %v1340_v51, 4  ;;  %v1363_v5 = vshll.u32 %v3444_v33, 16 }
  0x54   :  { %4033 = vmatpush3.bf16.msra.mxu1 %v4227_v0  ;;  %3988 = vmatprep.mubr.bf16.mxu1 %v4230_v38  ;;  %v1766_v0 = vrot.slane %v3434_v46, 5  ;;  %v1317_v35 = vrot.slane %v1315_v21, 5  ;;  %v1296_v38 = vsel %vm4423_vm2, %v1291_v24, %v1295_v63  ;;  %v1310_v48 = vsel %vm4423_vm2, %v1305_v29, %v1309_v11  ;;  %v3442_v46 = vld [vmem:[%s5775_s0 + $0x2c] sm:$0x1]  ;;  %v3448_v24 = vld [vmem:[%s5775_s0 + $0x44] sm:$0x1] }
  0x55   :  { %4034 = vmatprep.subr.bf16.mxu1 %v4229_v26  ;;  %v3499_v41 = vrot.slane %v3483_v22, 9  ;;  %v3465_v43 = vcombine.low %v1296_v38, %v1310_v48  ;;  %v1331_v7 = vrot.slane %v1329_v13, 5  ;;  %v1349_v57 = vshll.u32 %v3442_v46, 16  ;;  %v3488_v13 = vld [vmem:[%s5775_s0 + $0x40] sm:$0xe] }
  0x56   :  { %3999 = vmatpush3.bf16.msra.mxu0 %v4222_v17  ;;  %v3440_v17 = vld [vmem:[%s5775_s0 + $0x24] sm:$0x1]  ;;  %v1767_v19 = vsel %vm4644_vm5, %v3497_v12, %v1766_v0  ;;  %v1345_v63 = vrot.slane %v1343_v54, 5  ;;  %v1356_v0 = vrot.slane %v1354_v58, 4  ;;  %v1365_v18 = vrot.slane %v1363_v5, 5  ;;  %v4244_v5 = vld [vmem:[%s5776_s1 + $0x198] sm:$0xff]  }
  0x57   :  { %4000 = vmatprep.subr.bf16.mxu0 %v4226_v8  ;;  %v1335_v36 = vshll.u32 %v3440_v17, 16  ;;  %v1778_v60 = vrot.slane %v3440_v17, 5  ;;  %v1351_v12 = vrot.slane %v1349_v57, 5  ;;  %v1359_v17 = vrot.slane %v1357_v4, 5  ;;  %v4243_v48 = vld [vmem:[%s5776_s1 + $0x1e0] sm:$0xff]  }
  0x58   :  { %4035 = vmatpush3.bf16.msra.mxu1 %v4229_v26  ;;  %v1321_v26 = vshll.u32 %v3438_v14, 16  ;;  %v1346_v30 = vor.u32 %v1345_v63, %v1342_v62  ;;  %v1782_v21 = vrot.slane %v3442_v46, 5  ;;  %v3502_v22 = vrot.slane %v3486_v10, 9  ;;  %v3449_v54 = vld [vmem:[%s5775_s0 + $0x58] sm:$0xf] }
  0x59   :  { %3953 = vmatmul.mubr.bf16.gmra.mxu0 %v3390_v40  ;;  %4036 = vmatprep.subr.bf16.mxu1 %v4233_v1  ;;  %v1328_v40 = vrot.slane %v1326_v28, 4  ;;  %v1337_v34 = vrot.slane %v1335_v36, 5  ;;  %v1360_v28 = vor.u32 %v1359_v17, %v1356_v0  ;;  %v1371_v29 = vshll.u32 %v3445_v2, 16  ;;  %v3452_v57 = vld [vmem:[%s5775_s0 + $0x64] sm:$0x1] }
  0x5a   :  { %4001 = vmatpush3.bf16.msra.mxu0 %v4226_v8  ;;  %3956 = vmatprep.mubr.bf16.mxu0 %v3391_v44  ;;  %v3513_v8 = vcombine.low %v1767_v19, %v1771_v6  ;;  %v1323_v9 = vrot.slane %v1321_v26, 5  ;;  %v1774_v44 = vrot.slane %v3438_v14, 5  ;;  %v3446_v19 = vld [vmem:[%s5775_s0 + $0x3c] sm:$0x1]  ;;  %v1368_v6 = vshrl.u32 %v3445_v2, 16 }
  0x5b   :  { %4002 = vmatprep.subr.bf16.mxu0 %v4228_v53  ;;  %3989 = vmatmul.mubr.bf16.gmra.mxu1 %v4231_v31  ;;  %v3500_v31 = vrot.slane %v3484_v23, 9  ;;  %v1786_v23 = vrot.slane %v3444_v33, 5  ;;  %v1347_v26 = vrot.slane %v1346_v30, 4  ;;  %v1794_v51 = vrot.slane %v3448_v24, 5  ;;  %v3489_v63 = vld [vmem:[%s5775_s0 + $0x58] sm:$0xe] }
  0x5c   :  { %4037 = vmatpush3.bf16.msra.mxu1 %v4233_v1  ;;  %4040 = vmatprep.mubr.bf16.mxu1 %v3513_v8  ;;  %v1377_v8 = vshll.u32 %v3446_v19, 16  ;;  %v1399_v62 = vshll.u32 %v3449_v54, 16  ;;  %v3490_v4 = vld [vmem:[%s5775_s0 + $0x60] sm:$0xe]  ;;  %v4245_v2 = vld [vmem:[%s5776_s1 + $0x1d8] sm:$0xff]   ;;  %v1419_v17 = vshll.u32 %v3452_v57, 16 }
  0x5d   :  { %4038 = vmatprep.subr.bf16.mxu1 %v4235_v45  ;;  %v1779_v49 = vsel %vm4644_vm5, %v3500_v31, %v1778_v60  ;;  %v1787_v38 = vsel %vm4644_vm5, %v3502_v22, %v1786_v23  ;;  %v1391_v31 = vshll.u32 %v3448_v24, 16  ;;  %v3505_v22 = vrot.slane %v3489_v63, 9  ;;  %v3455_v23 = vld [vmem:[%s5775_s0 + $0x70] sm:$0xf]  ;;  %v3459_v63 = vld [vmem:[%s5775_s0 + $0x80] sm:$0xf] }
  0x5e   :  { %4003 = vmatpush3.bf16.msra.mxu0 %v4228_v53  ;;  %v1318_v53 = vor.u32 %v1317_v35, %v1314_v32  ;;  %v3487_v32 = vld [vmem:[%s5775_s0 + $0x38] sm:$0xe]  ;;  %v4240_v35 = vld [vmem:[%s5776_s1 + $0x1a8] sm:$0xff]  }
  0x5f   :  { %4004 = vmatprep.subr.bf16.mxu0 %v4232_v39  ;;  %v3503_v60 = vrot.slane %v3487_v32, 9  ;;  %v1393_v46 = vrot.slane %v1391_v31, 5 }
  0x60   :  { %4039 = vmatpush3.bf16.msra.mxu1 %v4235_v45  ;;  %v1319_v1 = vrot.slane %v1318_v53, 4  ;;  %v1775_v45 = vsel %vm4644_vm5, %v3499_v41, %v1774_v44  ;;  %v1361_v53 = vrot.slane %v1360_v28, 4  ;;  %v1373_v41 = vrot.slane %v1371_v29, 5  ;;  %v3456_v29 = vld [vmem:[%s5775_s0 + $0x74] sm:$0x1] }
  0x61   :  { %3957 = vmatmul.mubr.bf16.gmra.mxu0 %v3392_v52  ;;  %4088 = vmatprep.subr.bf16.mxu1 %v4237_v37  ;;  %v3514_v55 = vcombine.low %v1775_v45, %v1779_v49  ;;  %v1385_v44 = vshll.u32 %v3447_v20, 16  ;;  %v4242_v49 = vld [vmem:[%s5776_s1 + $0x1a0] sm:$0xff]   ;;  %v1421_v28 = vrot.slane %v1419_v17, 5 }
  0x62   :  { %4005 = vmatpush3.bf16.msra.mxu0 %v4232_v39  ;;  %4008 = vmatprep.mubr.bf16.mxu0 %v3465_v43  ;;  %v1332_v39 = vor.u32 %v1331_v7, %v1328_v40  ;;  %v1324_v27 = vsel %vm4423_vm2, %v1319_v1, %v1323_v9  ;;  %v1370_v9 = vrot.slane %v1368_v6, 4  ;;  %v1382_v40 = vshrl.u32 %v3447_v20, 16 }
  0x63   :  { %4006 = vmatprep.subr.bf16.mxu0 %v4234_v59  ;;  %4041 = vmatmul.mubr.bf16.vlgmr.msra.gmra.mxu1 %v3514_v55  ;;  %v1379_v43 = vrot.slane %v1377_v8, 5  ;;  %v1366_v1 = vsel %vm4423_vm2, %v1361_v53, %v1365_v18  ;;  %v1387_v47 = vrot.slane %v1385_v44, 5  ;;  %v3450_v55 = vld [vmem:[%s5775_s0 + $0x5c] sm:$0x1]  ;;  %v3454_v18 = vld [vmem:[%s5775_s0 + $0x6c] sm:$0x1] }
  0x64   :  { %v1333_v52 = vrot.slane %v1332_v39, 4  ;;  %4089 = vmatpush3.bf16.msra.mxu1 %v4237_v37  ;;  %v1384_v7 = vrot.slane %v1382_v40, 4  ;;  %v1790_v39 = vrot.slane %v3446_v19, 5  ;;  %v4246_v8 = vld [vmem:[%s5776_s1 + $0x190] sm:$0xff]   ;;  %v1798_v32 = vrot.slane %v3450_v55, 5 }
  0x65   :  { %4090 = vmatprep.subr.bf16.mxu1 %v4239_v56  ;;  %v3492_v53 = vld [vmem:[%s5775_s0 + $0x70] sm:$0xe]  ;;  %v1438_v44 = vshrl.u32 %v3455_v23, 16 }
  0x66   :  { %4007 = vmatpush3.bf16.msra.mxu0 %v4234_v59  ;;  %v3485_v59 = vld [vmem:[%s5775_s0 + $0x28] sm:$0xe]  ;;  %v1338_v11 = vsel %vm4423_vm2, %v1333_v52, %v1337_v34  ;;  %v1374_v34 = vor.u32 %v1373_v41, %v1370_v9  ;;  %v1791_v33 = vsel %vm4644_vm5, %v3503_v60, %v1790_v39  ;;  %v1388_v52 = vor.u32 %v1387_v47, %v1384_v7 }
  0x67   :  { %4056 = vmatprep.subr.bf16.mxu0 %v4865_v15  ;;  %v3501_v14 = vrot.slane %v3485_v59, 9  ;;  %v3466_v25 = vcombine.low %v1324_v27, %v1338_v11  ;;  %v3504_v27 = vrot.slane %v3488_v13, 9  ;;  %v3491_v9 = vld [vmem:[%s5775_s0 + $0x68] sm:$0xe]  ;;  %v1799_v41 = vsel %vm4644_vm5, %v3505_v22, %v1798_v32  ;;  %v4250_v22 = vld [vmem:[%s5776_s1 + $0x180] sm:$0xff]  }
  0x68   :  { %4091 = vmatpush3.bf16.msra.mxu1 %v4239_v56  ;;  %v1375_v50 = vrot.slane %v1374_v34, 4  ;;  %v3451_v56 = vld [vmem:[%s5775_s0 + $0x60] sm:$0xf]  ;;  %v1389_v10 = vrot.slane %v1388_v52, 4  ;;  %v1441_v47 = vshll.u32 %v3455_v23, 16 }
  0x69   :  { %4009 = vmatmul.mubr.bf16.vlgmr.msra.gmra.mxu0 %v3466_v25  ;;  %v1783_v37 = vsel %vm4644_vm5, %v3501_v14, %v1782_v21  ;;  %4092 = vmatprep.subr.bf16.mxu1 %v4241_v3  ;;  %v1795_v59 = vsel %vm4644_vm5, %v3504_v27, %v1794_v51  ;;  %v1410_v0 = vshrl.u32 %v3451_v56, 16  ;;  %v3453_v14 = vld [vmem:[%s5775_s0 + $0x68] sm:$0xf]  ;;  %v1401_v25 = vrot.slane %v1399_v62, 5  ;;  %v3458_v62 = vld [vmem:[%s5775_s0 + $0x7c] sm:$0x1] }
  0x6a   :  { %4057 = vmatpush3.bf16.msra.mxu0 %v4865_v15  ;;  %v1352_v15 = vsel %vm4423_vm2, %v1347_v26, %v1351_v12  ;;  %v3515_v36 = vcombine.low %v1783_v37, %v1787_v38  ;;  %v1380_v58 = vsel %vm4423_vm2, %v1375_v50, %v1379_v43  ;;  %v3516_v11 = vcombine.low %v1791_v33, %v1795_v59 }
  0x6b   :  { %4058 = vmatprep.subr.bf16.mxu0 %v4238_v61  ;;  %v3467_v45 = vcombine.low %v1352_v15, %v1366_v1  ;;  %v1405_v12 = vshll.u32 %v3450_v55, 16  ;;  %v1413_v30 = vshll.u32 %v3451_v56, 16  ;;  %v1394_v19 = vsel %vm4423_vm2, %v1389_v10, %v1393_v46  ;;  %v3457_v56 = vld [vmem:[%s5775_s0 + $0x78] sm:$0xf] }
  0x6c   :  { %4044 = vmatprep.mubr.bf16.mxu1 %v3515_v36  ;;  %4093 = vmatpush3.bf16.msra.mxu1 %v4241_v3  ;;  %v1412_v21 = vrot.slane %v1410_v0, 4  ;;  %v3468_v24 = vcombine.low %v1380_v58, %v1394_v19  ;;  %v1802_v37 = vrot.slane %v3452_v57, 5  ;;  %v1424_v38 = vshrl.u32 %v3453_v14, 16  ;;  %v4247_v36 = vld [vmem:[%s5776_s1 + $0x1d0] sm:$0xff]   ;;  %v4248_v57 = vld [vmem:[%s5776_s1 + $0x188] sm:$0xff]  }
  0x6d   :  { %4012 = vmatprep.mubr.bf16.mxu0 %v3467_v45  ;;  %4094 = vmatprep.subr.bf16.mxu1 %v4243_v48  ;;  %v1407_v20 = vrot.slane %v1405_v12, 5  ;;  %v1415_v26 = vrot.slane %v1413_v30, 5  ;;  %v1433_v15 = vshll.u32 %v3454_v18, 16  ;;  %v1440_v45 = vrot.slane %v1438_v44, 4  ;;  %v4249_v0 = vld [vmem:[%s5776_s1 + $0x1c8] sm:$0xff]  }
  0x6e   :  { %4059 = vmatpush3.bf16.msra.mxu0 %v4238_v61  ;;  %v1396_v61 = vshrl.u32 %v3449_v54, 16  ;;  %4045 = vmatmul.mubr.bf16.gmra.mxu1 %v3516_v11  ;;  %v1426_v7 = vrot.slane %v1424_v38, 4  ;;  %v1447_v46 = vshll.u32 %v3456_v29, 16  ;;  %v3507_v50 = vrot.slane %v3491_v9, 9  ;;  %v3493_v30 = vld [vmem:[%s5775_s0 + $0x78] sm:$0xe] }
  0x6f   :  { %4060 = vmatprep.subr.bf16.mxu0 %v4240_v35  ;;  %v1416_v13 = vor.u32 %v1415_v26, %v1412_v21  ;;  %v1435_v39 = vrot.slane %v1433_v15, 5  ;;  %v1806_v33 = vrot.slane %v3454_v18, 5  ;;  %v1443_v54 = vrot.slane %v1441_v47, 5  ;;  %v3494_v21 = vld [vmem:[%s5775_s0 + $0x80] sm:$0xe] }
  0x70   :  { %4095 = vmatpush3.bf16.msra.mxu1 %v4243_v48  ;;  %v1398_v3 = vrot.slane %v1396_v61, 4  ;;  %v1427_v48 = vshll.u32 %v3453_v14, 16  ;;  %v1449_v52 = vrot.slane %v1447_v46, 5  ;;  %v3508_v55 = vrot.slane %v3492_v53, 9  ;;  %v3463_v38 = vld [vmem:[%s5775_s0 + $0x90] sm:$0xf] }
  0x71   :  { %4096 = vmatprep.subr.bf16.mxu1 %v4245_v2  ;;  %4013 = vmatmul.mubr.bf16.gmra.mxu0 %v3468_v24  ;;  %v1417_v1 = vrot.slane %v1416_v13, 4  ;;  %v1807_v59 = vsel %vm4644_vm5, %v3507_v50, %v1806_v33  ;;  %v1810_v61 = vrot.slane %v3456_v29, 5  ;;  %v1452_v10 = vshrl.u32 %v3457_v56, 16  ;;  %v3464_v15 = vld [vmem:[%s5775_s0 + $0x94] sm:$0x1] }
  0x72   :  { %4061 = vmatpush3.bf16.msra.mxu0 %v4240_v35  ;;  %v1402_v6 = vor.u32 %v1401_v25, %v1398_v3  ;;  %v3506_v35 = vrot.slane %v3490_v4, 9  ;;  %v1429_v60 = vrot.slane %v1427_v48, 5  ;;  %v1444_v4 = vor.u32 %v1443_v54, %v1440_v45  ;;  %v3496_v44 = vld [vmem:[%s5775_s0 + $0x90] sm:$0xe] }
  0x73   :  { %4062 = vmatprep.subr.bf16.mxu0 %v4242_v49  ;;  %v1422_v27 = vsel %vm4423_vm2, %v1417_v1, %v1421_v28  ;;  %v1455_v11 = vshll.u32 %v3457_v56, 16  ;;  %v1461_v12 = vshll.u32 %v3458_v62, 16  ;;  %v1466_v3 = vshrl.u32 %v3459_v63, 16  ;;  %v3461_v28 = vld [vmem:[%s5775_s0 + $0x88] sm:$0xf] }
  0x74   :  { %v1403_v40 = vrot.slane %v1402_v6, 4  ;;  %v1803_v43 = vsel %vm4644_vm5, %v3506_v35, %v1802_v37  ;;  %4097 = vmatpush3.bf16.msra.mxu1 %v4245_v2  ;;  %v1811_v2 = vsel %vm4644_vm5, %v3508_v55, %v1810_v61  ;;  %v1469_v25 = vshll.u32 %v3459_v63, 16  ;;  %v3462_v37 = vld [vmem:[%s5775_s0 + $0x8c] sm:$0x1] }
  0x75   :  { %v3517_v34 = vcombine.low %v1799_v41, %v1803_v43  ;;  %4098 = vmatprep.subr.bf16.mxu1 %v4247_v36  ;;  %v1445_v17 = vrot.slane %v1444_v4, 4  ;;  %v3518_v18 = vcombine.low %v1807_v59, %v1811_v2  ;;  %v1454_v19 = vrot.slane %v1452_v10, 4  ;;  %v4252_v2 = vld [vmem:[%s5775_s0 + $0x10] ss:$8 sps:$4 sm:$0xff]  }
  0x76   :  { %4063 = vmatpush3.bf16.msra.mxu0 %v4242_v49  ;;  %v1408_v31 = vsel %vm4423_vm2, %v1403_v40, %v1407_v20  ;;  %v1430_v49 = vor.u32 %v1429_v60, %v1426_v7  ;;  %v1457_v20 = vrot.slane %v1455_v11, 5  ;;  %v1463_v23 = vrot.slane %v1461_v12, 5  ;;  %v3495_v7 = vld [vmem:[%s5775_s0 + $0x88] sm:$0xe]  ;;  %v3561_v12 = vld [vmem:[%s5775_s0 + $0x10] sm:$0xf] }
  0x77   :  { %4064 = vmatprep.subr.bf16.mxu0 %v4244_v5  ;;  %4048 = vmatprep.mubr.bf16.mxu1 %v3517_v34  ;;  %v3469_v51 = vcombine.low %v1408_v31, %v1422_v27  ;;  %v1468_v24 = vrot.slane %v1466_v3, 4  ;;  %v1471_v6 = vrot.slane %v1469_v25, 5  ;;  %v1450_v29 = vsel %vm4423_vm2, %v1445_v17, %v1449_v52  ;;  %v4251_v31 = vld [vmem:[%s5776_s1 + $0x1c0] sm:$0xff]   ;;  %v5089_v3 = vld [vmem:[%s5775_s0 + $0x14] sm:$0x1] }
  0x78   :  { %4099 = vmatpush3.bf16.msra.mxu1 %v4247_v36  ;;  %v1431_v58 = vrot.slane %v1430_v49, 4  ;;  %v3509_v32 = vrot.slane %v3493_v30, 9  ;;  %v1814_v35 = vrot.slane %v3458_v62, 5  ;;  %v3510_v48 = vrot.slane %v3494_v21, 9  ;;  %v3563_v25 = vld [vmem:[%s5775_s0 + $0x18] sm:$0xf] }
  0x79   :  { %4016 = vmatprep.mubr.bf16.mxu0 %v3469_v51  ;;  %4100 = vmatprep.subr.bf16.mxu1 %v4249_v0  ;;  %v1472_v40 = vor.u32 %v1471_v6, %v1468_v24  ;;  %v1480_v43 = vshrl.u32 %v3461_v28, 16  ;;  %v1483_v34 = vshll.u32 %v3461_v28, 16  ;;  %v1489_v60 = vshll.u32 %v3462_v37, 16 }
  0x7a   :  { %4065 = vmatpush3.bf16.msra.mxu0 %v4244_v5  ;;  %v3460_v5 = vld [vmem:[%s5775_s0 + $0x84] sm:$0x1]  ;;  %v1436_v14 = vsel %vm4423_vm2, %v1431_v58, %v1435_v39  ;;  %4049 = vmatmul.mubr.bf16.gmra.mxu1 %v3518_v18  ;;  %v1815_v36 = vsel %vm4644_vm5, %v3509_v32, %v1814_v35  ;;  %v1494_v39 = vshrl.u32 %v3463_v38, 16  ;;  %v1497_v27 = vshll.u32 %v3463_v38, 16 }
  0x7b   :  { %4066 = vmatprep.subr.bf16.mxu0 %v4246_v8  ;;  %v1475_v26 = vshll.u32 %v3460_v5, 16  ;;  %v3470_v9 = vcombine.low %v1436_v14, %v1450_v29  ;;  %v1818_v41 = vrot.slane %v3460_v5, 5  ;;  %v1473_v1 = vrot.slane %v1472_v40, 4  ;;  %v5111_v38 = vld [vmem:[%s5775_s0 + $0x24] sm:$0x1] }
  0x7c   :  { %4101 = vmatpush3.bf16.msra.mxu1 %v4249_v0  ;;  %v1482_v46 = vrot.slane %v1480_v43, 4  ;;  %v1485_v33 = vrot.slane %v1483_v34, 5  ;;  %v1491_v51 = vrot.slane %v1489_v60, 5  ;;  %v1496_v52 = vrot.slane %v1494_v39, 4 }
  0x7d   :  { %v1477_v13 = vrot.slane %v1475_v26, 5  ;;  %4017 = vmatmul.mubr.bf16.gmra.mxu0 %v3470_v9  ;;  %v1819_v47 = vsel %vm4644_vm5, %v3510_v48, %v1818_v41  ;;  %4102 = vmatprep.subr.bf16.mxu1 %v4251_v31  ;;  %v1499_v55 = vrot.slane %v1497_v27, 5  ;;  %v1503_v56 = vshll.u32 %v3464_v15, 16  ;;  %v5119_v48 = vld [vmem:[%s5775_s0 + $0x2c] sm:$0x1] }
  0x7e   :  { %4067 = vmatpush3.bf16.msra.mxu0 %v4246_v8  ;;  %v1458_v8 = vor.u32 %v1457_v20, %v1454_v19  ;;  %v3519_v50 = vcombine.low %v1815_v36, %v1819_v47  ;;  %v1486_v58 = vor.u32 %v1485_v33, %v1482_v46  ;;  %v3511_v59 = vrot.slane %v3495_v7, 9  ;;  %v5099_v19 = vld [vmem:[%s5775_s0 + $0x1c] sm:$0x1] }
  0x7f   :  { %4068 = vmatprep.subr.bf16.mxu0 %v4248_v57  ;;  %v1478_v49 = vsel %vm4423_vm2, %v1473_v1, %v1477_v13  ;;  %v1822_v61 = vrot.slane %v3462_v37, 5  ;;  %v3512_v62 = vrot.slane %v3496_v44, 9  ;;  %v1500_v63 = vor.u32 %v1499_v55, %v1496_v52  ;;  %v3565_v37 = vld [vmem:[%s5775_s0 + $0x20] sm:$0xf]  ;;  %v3567_v13 = vld [vmem:[%s5775_s0 + $0x28] sm:$0xf] }
  0x80   :  { %v1459_v53 = vrot.slane %v1458_v8, 4  ;;  %4103 = vmatpush3.bf16.msra.mxu1 %v4251_v31  ;;  %4052 = vmatprep.mubr.bf16.mxu1 %v3519_v50  ;;  %v1505_v4 = vrot.slane %v1503_v56, 5  ;;  %v1826_v5 = vrot.slane %v3464_v15, 5  ;;  %v1487_v10 = vrot.slane %v1486_v58, 4  ;;  %v4253_v44 = vld [vmem:[%s5775_s0 + $0x20] ss:$8 sps:$4 sm:$0xff]  }
  0x81   :  { %v1823_v11 = vsel %vm4644_vm5, %v3511_v59, %v1822_v61  ;;  %v1501_v0 = vrot.slane %v1500_v63, 4  ;;  %v2312_v30 = vshrl.u32 %v3561_v12, 16  ;;  %v2315_v20 = vshll.u32 %v3561_v12, 16  ;;  %v5131_v50 = vld [vmem:[%s5776_s1 + $0x230] sm:$0xff]   ;;  %v3571_v59 = vld [vmem:[%s5775_s0 + $0x38] sm:$0xf] }
  0x82   :  { %4069 = vmatpush3.bf16.msra.mxu0 %v4248_v57  ;;  %v1464_v45 = vsel %vm4423_vm2, %v1459_v53, %v1463_v23  ;;  %v5072_v57 = vld [vmem:[%s5776_s1 + $0x238] sm:$0xff]   ;;  %v1827_v14 = vsel %vm4644_vm5, %v3512_v62, %v1826_v5  ;;  %v1492_v17 = vsel %vm4423_vm2, %v1487_v10, %v1491_v51  ;;  %v2321_v21 = vshll.u32 %v5089_v3, 16  ;;  %v3569_v52 = vld [vmem:[%s5775_s0 + $0x30] sm:$0xf]  ;;  %v5144_v58 = vld [vmem:[%s5775_s0 + $0x34] sm:$0x1] }
  0x83   :  { %4070 = vmatprep.subr.bf16.mxu0 %v4250_v22  ;;  %v3471_v54 = vcombine.low %v1464_v45, %v1478_v49  ;;  %4152 = vmatprep.subr.bf16.mxu1 %v5072_v57  ;;  %v3520_v18 = vcombine.low %v1823_v11, %v1827_v14  ;;  %v2314_v23 = vrot.slane %v2312_v30, 4  ;;  %v2326_v24 = vshrl.u32 %v3563_v25, 16  ;;  %v5152_v61 = vld [vmem:[%s5775_s0 + $0x3c] sm:$0x1] }
  0x84   :  { %v2329_v6 = vshll.u32 %v3563_v25, 16  ;;  %v2317_v28 = vrot.slane %v2315_v20, 5  ;;  %v2323_v29 = vrot.slane %v2321_v21, 5  ;;  %v2335_v8 = vshll.u32 %v5099_v19, 16 }
  0x85   :  { %4020 = vmatprep.mubr.bf16.mxu0 %v3471_v54  ;;  %4053 = vmatmul.mubr.bf16.gmra.mxu1 %v3520_v18  ;;  %v2328_v32 = vrot.slane %v2326_v24, 4  ;;  %v2340_v15 = vshrl.u32 %v3565_v37, 16  ;;  %v2343_v36 = vshll.u32 %v3565_v37, 16  ;;  %v2349_v41 = vshll.u32 %v5111_v38, 16  ;;  %v4256_v54 = vld [vmem:[%s5775_s0 + $0x30] ss:$8 sps:$4 sm:$0xff]  }
  0x86   :  { %4071 = vmatpush3.bf16.msra.mxu0 %v4250_v22  ;;  %v1506_v22 = vsel %vm4423_vm2, %v1501_v0, %v1505_v4  ;;  %v2331_v35 = vrot.slane %v2329_v6, 5  ;;  %v2318_v9 = vor.u32 %v2317_v28, %v2314_v23  ;;  %v2337_v40 = vrot.slane %v2335_v8, 5  ;;  %v3573_v23 = vld [vmem:[%s5775_s0 + $0x40] sm:$0xf]  ;;  %v5171_v24 = vld [vmem:[%s5776_s1 + $0x228] sm:$0xff]  }
  0x87   :  { %4120 = vmatprep.subr.bf16.mxu0 %v5072_v57  ;;  %v3472_v26 = vcombine.low %v1492_v17, %v1506_v22  ;;  %v2354_v43 = vshrl.u32 %v3567_v13, 16  ;;  %v2342_v31 = vrot.slane %v2340_v15, 4  ;;  %v2357_v1 = vshll.u32 %v3567_v13, 16  ;;  %v4257_v22 = vld [vmem:[%s5775_s0 + $0x40] ss:$8 sps:$4 sm:$0xff]  }
  0x88   :  { %v2332_v53 = vor.u32 %v2331_v35, %v2328_v32  ;;  %v2319_v7 = vrot.slane %v2318_v9, 4  ;;  %v2363_v34 = vshll.u32 %v5119_v48, 16  ;;  %v2345_v39 = vrot.slane %v2343_v36, 5  ;;  %v5176_v28 = vld [vmem:[%s5775_s0 + $0x44] sm:$0x1] }
  0x89   :  { %4021 = vmatmul.mubr.bf16.gmra.mxu0 %v3472_v26  ;;  %v2351_v45 = vrot.slane %v2349_v41, 5  ;;  %v2356_v47 = vrot.slane %v2354_v43, 4  ;;  %v2359_v27 = vrot.slane %v2357_v1, 5  ;;  %v2368_v63 = vshrl.u32 %v3569_v52, 16  ;;  %v5184_v8 = vld [vmem:[%s5775_s0 + $0x4c] sm:$0x1] }
  0x8a   :  { %4072 = vmatprep.mubr.bf16.mxu0 %v4252_v2  ;;  %v2333_v60 = vrot.slane %v2332_v53, 4  ;;  %v2324_v46 = vsel %vm4423_vm2, %v2319_v7, %v2323_v29  ;;  %v2365_v49 = vrot.slane %v2363_v34, 5  ;;  %v2346_v51 = vor.u32 %v2345_v39, %v2342_v31  ;;  %v3575_v29 = vld [vmem:[%s5775_s0 + $0x48] sm:$0xf] }
  0x8b   :  { %v2360_v56 = vor.u32 %v2359_v27, %v2356_v47  ;;  %v2371_v4 = vshll.u32 %v3569_v52, 16  ;;  %v2377_v5 = vshll.u32 %v5144_v58, 16  ;;  %v2382_v11 = vshrl.u32 %v3571_v59, 16  ;;  %v5207_v47 = vld [vmem:[%s5776_s1 + $0x218] sm:$0xff]   ;;  %v5226_v52 = vld [vmem:[%s5775_s0 + $0x6c] sm:$0x1] }
  0x8c   :  { %v2338_v33 = vsel %vm4423_vm2, %v2333_v60, %v2337_v40  ;;  %v2347_v62 = vrot.slane %v2346_v51, 4  ;;  %v2385_v12 = vshll.u32 %v3571_v59, 16  ;;  %v2391_v0 = vshll.u32 %v5152_v61, 16  ;;  %v5190_v40 = vld [vmem:[%s5776_s1 + $0x220] sm:$0xff]   ;;  %v3579_v51 = vld [vmem:[%s5775_s0 + $0x68] sm:$0xf] }
  0x8d   :  { %v3593_v55 = vcombine.low %v2324_v46, %v2338_v33  ;;  %v2361_v10 = vrot.slane %v2360_v56, 4  ;;  %v2370_v2 = vrot.slane %v2368_v63, 4  ;;  %v2373_v25 = vrot.slane %v2371_v4, 5  ;;  %v5216_v33 = vld [vmem:[%s5775_s0 + $0x64] sm:$0x1] }
  0x8e   :  { %v2352_v14 = vsel %vm4423_vm2, %v2347_v62, %v2351_v45  ;;  %v2379_v30 = vrot.slane %v2377_v5, 5  ;;  %v2384_v18 = vrot.slane %v2382_v11, 4  ;;  %v2387_v20 = vrot.slane %v2385_v12, 5 }
  0x8f   :  { %4104 = vmatprep.mubr.bf16.mxu1 %v3593_v55  ;;  %v2366_v17 = vsel %vm4423_vm2, %v2361_v10, %v2365_v49  ;;  %v2393_v21 = vrot.slane %v2391_v0, 5  ;;  %v2374_v26 = vor.u32 %v2373_v25, %v2370_v2  ;;  %v2396_v35 = vshrl.u32 %v3573_v23, 16  ;;  %v3577_v49 = vld [vmem:[%s5775_s0 + $0x60] sm:$0xf] }
  0x90   :  { %v3594_v6 = vcombine.low %v2352_v14, %v2366_v17  ;;  %v2388_v32 = vor.u32 %v2387_v20, %v2384_v18  ;;  %v2399_v37 = vshll.u32 %v3573_v23, 16  ;;  %v2405_v9 = vshll.u32 %v5176_v28, 16  ;;  %v5242_v17 = vld [vmem:[%s5776_s1 + $0x210] sm:$0xff]   ;;  %v3583_v23 = vld [vmem:[%s5775_s0 + $0x78] sm:$0xf] }
  0x91   :  { %4073 = vmatmul.mubr.bf16.vlgmr.msra.gmra.mxu0 %v4253_v44  ;;  %v2375_v13 = vrot.slane %v2374_v26, 4  ;;  %v2410_v15 = vshrl.u32 %v3575_v29, 16  ;;  %v2413_v53 = vshll.u32 %v3575_v29, 16  ;;  %v2419_v36 = vshll.u32 %v5184_v8, 16 }
  0x92   :  { %4121 = vmatpush3.bf16.msra.mxu0 %v5072_v57  ;;  %4076 = vmatprep.mubr.bf16.mxu0 %v4256_v54  ;;  %v2389_v41 = vrot.slane %v2388_v32, 4  ;;  %v2398_v43 = vrot.slane %v2396_v35, 4  ;;  %v2401_v7 = vrot.slane %v2399_v37, 5  ;;  %v2407_v44 = vrot.slane %v2405_v9, 5 }
  0x93   :  { %4122 = vmatprep.subr.bf16.mxu0 %v5131_v50  ;;  %4105 = vmatmul.mubr.bf16.vlgmr.msra.gmra.mxu1 %v3594_v6  ;;  %v2380_v31 = vsel %vm4423_vm2, %v2375_v13, %v2379_v30  ;;  %v2412_v1 = vrot.slane %v2410_v15, 4  ;;  %v2415_v34 = vrot.slane %v2413_v53, 5  ;;  %v2421_v60 = vrot.slane %v2419_v36, 5  ;;  %v4261_v30 = vld [vmem:[%s5775_s0 + $0x70] ss:$8 sps:$4 sm:$0xff]  }
  0x94   :  { %4160 = vmatpush3.bf16.msra.mxu1 %v5072_v57  ;;  %v2394_v39 = vsel %vm4423_vm2, %v2389_v41, %v2393_v21  ;;  %v2402_v45 = vor.u32 %v2401_v7, %v2398_v43  ;;  %v4260_v57 = vld [vmem:[%s5775_s0 + $0x60] ss:$8 sps:$4 sm:$0xff]   ;;  %v2424_v55 = vshrl.u32 %v3577_v49, 16  ;;  %v2427_v56 = vshll.u32 %v3577_v49, 16  ;;  %v3581_v21 = vld [vmem:[%s5775_s0 + $0x70] sm:$0xf] }
  0x95   :  { %4153 = vmatprep.subr.bf16.mxu1 %v5131_v50  ;;  %v3595_v46 = vcombine.low %v2380_v31, %v2394_v39  ;;  %v2416_v27 = vor.u32 %v2415_v34, %v2412_v1  ;;  %v2433_v59 = vshll.u32 %v5216_v33, 16  ;;  %v2438_v63 = vshrl.u32 %v3579_v51, 16  ;;  %v5273_v1 = vld [vmem:[%s5776_s1 + $0x208] sm:$0xff]   ;;  %v5289_v49 = vld [vmem:[%s5776_s1 + $0x200] sm:$0xff]  }
  0x96   :  { %4123 = vmatpush3.bf16.msra.mxu0 %v5131_v50  ;;  %v2403_v54 = vrot.slane %v2402_v45, 4  ;;  %v2441_v4 = vshll.u32 %v3579_v51, 16  ;;  %v2426_v10 = vrot.slane %v2424_v55, 4  ;;  %v2429_v11 = vrot.slane %v2427_v56, 5  ;;  %v3587_v55 = vld [vmem:[%s5775_s0 + $0x88] sm:$0xf] }
  0x97   :  { %4124 = vmatprep.subr.bf16.mxu0 %v5171_v24  ;;  %4108 = vmatprep.mubr.bf16.mxu1 %v3595_v46  ;;  %v2417_v62 = vrot.slane %v2416_v27, 4  ;;  %v2435_v12 = vrot.slane %v2433_v59, 5  ;;  %v2440_v14 = vrot.slane %v2438_v63, 4  ;;  %v2452_v26 = vshrl.u32 %v3581_v21, 16  ;;  %v4264_v46 = vld [vmem:[%s5775_s0 + $0x80] ss:$8 sps:$4 sm:$0xff]  }
  0x98   :  { %4161 = vmatpush3.bf16.msra.mxu1 %v5131_v50  ;;  %v2447_v50 = vshll.u32 %v5226_v52, 16  ;;  %v2408_v5 = vsel %vm4423_vm2, %v2403_v54, %v2407_v44  ;;  %v2443_v2 = vrot.slane %v2441_v4, 5  ;;  %v2430_v20 = vor.u32 %v2429_v11, %v2426_v10  ;;  %v3585_v27 = vld [vmem:[%s5775_s0 + $0x80] sm:$0xf]  ;;  %v5295_v54 = vld [vmem:[%s5775_s0 + $0x84] sm:$0x1] }
  0x99   :  { %4077 = vmatmul.mubr.bf16.gmra.mxu0 %v4257_v22  ;;  %4154 = vmatprep.subr.bf16.mxu1 %v5171_v24  ;;  %v2422_v0 = vsel %vm4423_vm2, %v2417_v62, %v2421_v60  ;;  %v5251_v22 = vld [vmem:[%s5775_s0 + $0x74] sm:$0x1]  ;;  %v2455_v29 = vshll.u32 %v3581_v21, 16  ;;  %v2466_v37 = vshrl.u32 %v3583_v23, 16  ;;  %v2469_v9 = vshll.u32 %v3583_v23, 16 }
  0x9a   :  { %4125 = vmatpush3.bf16.msra.mxu0 %v5171_v24  ;;  %4080 = vmatprep.mubr.bf16.mxu0 %v4260_v57  ;;  %v2449_v25 = vrot.slane %v2447_v50, 5  ;;  %v3596_v18 = vcombine.low %v2408_v5, %v2422_v0  ;;  %v2444_v6 = vor.u32 %v2443_v2, %v2440_v14  ;;  %v2461_v32 = vshll.u32 %v5251_v22, 16  ;;  %v5304_v62 = vld [vmem:[%s5775_s0 + $0x8c] sm:$0x1]  ;;  %v3589_v21 = vld [vmem:[%s5775_s0 + $0x90] sm:$0xf] }
  0x9b   :  { %4126 = vmatprep.subr.bf16.mxu0 %v5190_v40  ;;  %v2431_v35 = vrot.slane %v2430_v20, 4  ;;  %v2454_v53 = vrot.slane %v2452_v26, 4  ;;  %v2457_v36 = vrot.slane %v2455_v29, 5  ;;  %v2468_v7 = vrot.slane %v2466_v37, 4  ;;  %v4265_v20 = vld [vmem:[%s5775_s0 + $0x90] ss:$8 sps:$4 sm:$0xff]  }
  0x9c   :  { %4162 = vmatpush3.bf16.msra.mxu1 %v5171_v24  ;;  %v5261_v24 = vld [vmem:[%s5775_s0 + $0x7c] sm:$0x1]  ;;  %v2445_v15 = vrot.slane %v2444_v6, 4  ;;  %v2463_v41 = vrot.slane %v2461_v32, 5  ;;  %v2471_v44 = vrot.slane %v2469_v9, 5  ;;  %v2834_v39 = vrot.slane %v5251_v22, 5 }
  0x9d   :  { %4155 = vmatprep.subr.bf16.mxu1 %v5190_v40  ;;  %4109 = vmatmul.mubr.bf16.gmra.mxu1 %v3596_v18  ;;  %v2475_v13 = vshll.u32 %v5261_v24, 16  ;;  %v2436_v43 = vsel %vm4423_vm2, %v2431_v35, %v2435_v12  ;;  %v2458_v60 = vor.u32 %v2457_v36, %v2454_v53  ;;  %v2480_v56 = vshrl.u32 %v3585_v27, 16  ;;  %v5325_v6 = vld [vmem:[%s5775_s0 + $0x94] sm:$0x1]  ;;  %v3591_v26 = vld [vmem:[%s5775_s0 + $0x98] sm:$0xf] }
  0x9e   :  { %4127 = vmatpush3.bf16.msra.mxu0 %v5190_v40  ;;  %v2450_v34 = vsel %vm4423_vm2, %v2445_v15, %v2449_v25  ;;  %v2472_v57 = vor.u32 %v2471_v44, %v2468_v7  ;;  %v2483_v63 = vshll.u32 %v3585_v27, 16  ;;  %v2489_v4 = vshll.u32 %v5295_v54, 16  ;;  %v5333_v29 = vld [vmem:[%s5775_s0 + $0x9c] sm:$0x1]  ;;  %v3610_v27 = vld [vmem:[%s5775_s0 + $0x18] sm:$0xe] }
  0x9f   :  { %4128 = vmatprep.subr.bf16.mxu0 %v5207_v47  ;;  %v2477_v31 = vrot.slane %v2475_v13, 5  ;;  %v3597_v45 = vcombine.low %v2436_v43, %v2450_v34  ;;  %v2459_v51 = vrot.slane %v2458_v60, 4  ;;  %v2494_v50 = vshrl.u32 %v3587_v55, 16 }
  0xa0   :  { %4163 = vmatpush3.bf16.msra.mxu1 %v5190_v40  ;;  %v2838_v40 = vrot.slane %v5261_v24, 5  ;;  %v2473_v59 = vrot.slane %v2472_v57, 4  ;;  %v2482_v10 = vrot.slane %v2480_v56, 4  ;;  %v2497_v11 = vshll.u32 %v3587_v55, 16 }
  0xa1   :  { %4081 = vmatmul.mubr.bf16.gmra.mxu0 %v4261_v30  ;;  %4156 = vmatprep.subr.bf16.mxu1 %v5207_v47  ;;  %v2464_v5 = vsel %vm4423_vm2, %v2459_v51, %v2463_v41  ;;  %v2503_v12 = vshll.u32 %v5304_v62, 16  ;;  %v2485_v0 = vrot.slane %v2483_v63, 5  ;;  %v2491_v14 = vrot.slane %v2489_v4, 5  ;;  %v3617_v4 = vld [vmem:[%s5775_s0 + $0x60] sm:$0xe] }
  0xa2   :  { %4129 = vmatpush3.bf16.msra.mxu0 %v5207_v47  ;;  %4112 = vmatprep.mubr.bf16.mxu1 %v3597_v45  ;;  %v2496_v2 = vrot.slane %v2494_v50, 4  ;;  %v2499_v30 = vrot.slane %v2497_v11, 5  ;;  %v2511_v35 = vshll.u32 %v3589_v21, 16  ;;  %v2517_v37 = vshll.u32 %v5325_v6, 16  ;;  %v3618_v50 = vld [vmem:[%s5775_s0 + $0x68] sm:$0xe] }
  0xa3   :  { %4130 = vmatprep.subr.bf16.mxu0 %v5242_v17  ;;  %4084 = vmatprep.mubr.bf16.mxu0 %v4264_v46  ;;  %v2505_v18 = vrot.slane %v2503_v12, 5  ;;  %v2486_v23 = vor.u32 %v2485_v0, %v2482_v10  ;;  %v2522_v13 = vshrl.u32 %v3591_v26, 16  ;;  %v2525_v15 = vshll.u32 %v3591_v26, 16  ;;  %v3609_v46 = vld [vmem:[%s5775_s0 + $0x10] sm:$0xe] }
  0xa4   :  { %4164 = vmatpush3.bf16.msra.mxu1 %v5207_v47  ;;  %v2478_v47 = vsel %vm4423_vm2, %v2473_v59, %v2477_v31  ;;  %v2500_v32 = vor.u32 %v2499_v30, %v2496_v2  ;;  %v2531_v53 = vshll.u32 %v5333_v29, 16  ;;  %v2513_v43 = vrot.slane %v2511_v35, 5  ;;  %v3619_v2 = vld [vmem:[%s5775_s0 + $0x70] sm:$0xe] }
  0xa5   :  { %4157 = vmatprep.subr.bf16.mxu1 %v5242_v17  ;;  %v3598_v25 = vcombine.low %v2464_v5, %v2478_v47  ;;  %v2487_v9 = vrot.slane %v2486_v23, 4  ;;  %v2519_v7 = vrot.slane %v2517_v37, 5  ;;  %v2524_v31 = vrot.slane %v2522_v13, 4 }
  0xa6   :  { %4131 = vmatpush3.bf16.msra.mxu0 %v5242_v17  ;;  %v2501_v36 = vrot.slane %v2500_v32, 4  ;;  %v2527_v34 = vrot.slane %v2525_v15, 5  ;;  %v2533_v60 = vrot.slane %v2531_v53, 5  ;;  %v2794_v51 = vrot.slane %v5089_v3, 5  ;;  %v3611_v3 = vld [vmem:[%s5775_s0 + $0x20] sm:$0xe] }
  0xa7   :  { %4132 = vmatprep.subr.bf16.mxu0 %v5273_v1  ;;  %4113 = vmatmul.mubr.bf16.gmra.mxu1 %v3598_v25  ;;  %v2492_v44 = vsel %vm4423_vm2, %v2487_v9, %v2491_v14  ;;  %v2798_v55 = vrot.slane %v5099_v19, 5  ;;  %v3625_v59 = vrot.slane %v3609_v46, 9  ;;  %v3626_v63 = vrot.slane %v3610_v27, 9 }
  0xa8   :  { %4165 = vmatpush3.bf16.msra.mxu1 %v5242_v17  ;;  %v2508_v17 = vshrl.u32 %v3589_v21, 16  ;;  %v2506_v45 = vsel %vm4423_vm2, %v2501_v36, %v2505_v18  ;;  %v3633_v10 = vrot.slane %v3617_v4, 9  ;;  %v2826_v11 = vrot.slane %v5216_v33, 5  ;;  %v3612_v33 = vld [vmem:[%s5775_s0 + $0x28] sm:$0xe] }
  0xa9   :  { %4085 = vmatmul.mubr.bf16.gmra.mxu0 %v4265_v20  ;;  %4158 = vmatprep.subr.bf16.mxu1 %v5273_v1  ;;  %v3599_v56 = vcombine.low %v2492_v44, %v2506_v45  ;;  %v3634_v12 = vrot.slane %v3618_v50, 9  ;;  %v2795_v47 = vsel %vm4644_vm5, %v3625_v59, %v2794_v51  ;;  %v2799_v0 = vsel %vm4644_vm5, %v3626_v63, %v2798_v55  ;;  %v3613_v20 = vld [vmem:[%s5775_s0 + $0x30] sm:$0xe] }
  0xaa   :  { %4133 = vmatpush3.bf16.msra.mxu0 %v5273_v1  ;;  %v2510_v41 = vrot.slane %v2508_v17, 4  ;;  %v2830_v14 = vrot.slane %v5226_v52, 5  ;;  %v2827_v30 = vsel %vm4644_vm5, %v3633_v10, %v2826_v11  ;;  %v3627_v18 = vrot.slane %v3611_v3, 9  ;;  %v3620_v52 = vld [vmem:[%s5775_s0 + $0x78] sm:$0xe] }
  0xab   :  { %4134 = vmatprep.subr.bf16.mxu0 %v5289_v49  ;;  %4116 = vmatprep.mubr.bf16.mxu1 %v3599_v56  ;;  %v2802_v26 = vrot.slane %v5111_v38, 5  ;;  %v3628_v32 = vrot.slane %v3612_v33, 9  ;;  %v3614_v17 = vld [vmem:[%s5775_s0 + $0x38] sm:$0xe]  ;;  %v2806_v9 = vrot.slane %v5119_v48, 5  ;;  %v3635_v13 = vrot.slane %v3619_v2, 9 }
  0xac   :  { %4166 = vmatpush3.bf16.msra.mxu1 %v5273_v1  ;;  %v2514_v57 = vor.u32 %v2513_v43, %v2510_v41  ;;  %v2528_v1 = vor.u32 %v2527_v34, %v2524_v31  ;;  %v2831_v23 = vsel %vm4644_vm5, %v3634_v12, %v2830_v14  ;;  %v3636_v53 = vrot.slane %v3620_v52, 9  ;;  %v3622_v41 = vld [vmem:[%s5775_s0 + $0x88] sm:$0xe] }
  0xad   :  { %4159 = vmatprep.subr.bf16.mxu1 %v5289_v49  ;;  %v3645_v37 = vcombine.low %v2827_v30, %v2831_v23  ;;  %v2803_v15 = vsel %vm4644_vm5, %v3627_v18, %v2802_v26  ;;  %v3629_v38 = vrot.slane %v3613_v20, 9  ;;  %v2810_v36 = vrot.slane %v5144_v58, 5  ;;  %v3615_v58 = vld [vmem:[%s5775_s0 + $0x40] sm:$0xe]  ;;  %v3616_v31 = vld [vmem:[%s5775_s0 + $0x48] sm:$0xe] }
  0xae   :  { %4135 = vmatpush3.bf16.msra.mxu0 %v5289_v49  ;;  %v2515_v5 = vrot.slane %v2514_v57, 4  ;;  %v2529_v19 = vrot.slane %v2528_v1, 4  ;;  %v2807_v48 = vsel %vm4644_vm5, %v3628_v32, %v2806_v9  ;;  %v2835_v43 = vsel %vm4644_vm5, %v3635_v13, %v2834_v39 }
  0xaf   :  { %v2814_v44 = vrot.slane %v5152_v61, 5  ;;  %v3642_v34 = vcombine.low %v2803_v15, %v2807_v48  ;;  %v2839_v22 = vsel %vm4644_vm5, %v3636_v53, %v2838_v40  ;;  %v2811_v39 = vsel %vm4644_vm5, %v3629_v38, %v2810_v36  ;;  %v3623_v61 = vld [vmem:[%s5775_s0 + $0x90] sm:$0xe] }
  0xb0   :  { %4167 = vmatpush3.bf16.msra.mxu1 %v5289_v49  ;;  %v2520_v25 = vsel %vm4423_vm2, %v2515_v5, %v2519_v7  ;;  %v3641_v49 = vcombine.low %v2795_v47, %v2799_v0  ;;  %v2534_v21 = vsel %vm4423_vm2, %v2529_v19, %v2533_v60  ;;  %v3630_v7 = vrot.slane %v3614_v17, 9 }
  0xb1   :  { %v3600_v35 = vcombine.low %v2520_v25, %v2534_v21  ;;  %v3637_v60 = vrot.slane %v3621_v42, 9 }
  0xb2   :  { %4136 = vmatprep.mubr.bf16.mxu0 %v3641_v49 }
  0xb3   :  { %4117 = vmatmul.mubr.bf16.gmra.mxu1 %v3600_v35 }
  0xb4   :  { %4144 = vmatprep.mubr.bf16.mxu1 %v3645_v37 }
  0xb5   :  { %12 = vsyncpa [#allocation3], 0  ;;  %v3646_v45 = vcombine.low %v2835_v43, %v2839_v22  ;;  %v2815_v57 = vsel %vm4644_vm5, %v3630_v7, %v2814_v44  ;;  %v2842_v46 = vrot.slane %v5295_v54, 5  ;;  %v3638_v27 = vrot.slane %v3622_v41, 9  ;;  %v3624_v24 = vld [vmem:[%s5775_s0 + $0x98] sm:$0xe]  ;;  %4137 = vmatmul.mubr.bf16.vlgmr.msra.gmra.mxu0 %v3642_v34 }
  0xb6   :  { %v3643_v40 = vcombine.low %v2811_v39, %v2815_v57  ;;  %v2846_v51 = vrot.slane %v5304_v62, 5  ;;  %v3631_v55 = vrot.slane %v3615_v58, 9  ;;  %v2818_v56 = vrot.slane %v5176_v28, 5  ;;  %s4294_s0 = smov [#allocation2]  }
  0xb7   :  { %v2843_v1 = vsel %vm4644_vm5, %v3637_v60, %v2842_v46  ;;  %v3632_v59 = vrot.slane %v3616_v31, 9  ;;  %v2822_v63 = vrot.slane %v5184_v8, 5  ;;  %v3639_v4 = vrot.slane %v3623_v61, 9  ;;  %s3324_s27 = sshll.u32 %s4294_s0, 4  ;;  %s3325_s27 = int_to_ptr.vmem [resolvable:$true] %s3324_s27 }
  0xb8   :  { %4140 = vmatprep.mubr.bf16.mxu0 %v3643_v40  ;;  %v2847_v54 = vsel %vm4644_vm5, %v3638_v27, %v2846_v51  ;;  %v2819_v50 = vsel %vm4644_vm5, %v3631_v55, %v2818_v56  ;;  %v2850_v5 = vrot.slane %v5325_v6, 5  ;;  %v3640_v62 = vrot.slane %v3624_v24, 9  ;;  %s4272_s28 = scalar_lea.vmem %s3325_s27, 2048  ;;  %p4277_p1 = scmp.lt.s32.totalorder %s3325_s27, %s3325_s27 }
  0xb9   :  { %v3647_v10 = vcombine.low %v2843_v1, %v2847_v54  ;;  %v2823_v28 = vsel %vm4644_vm5, %v3632_v59, %v2822_v63  ;;  %v2854_v11 = vrot.slane %v5333_v29, 5  ;;  %p4273_p0 = scmp.ne.s32.totalorder %s3325_s27, %s4272_s28  ;;  %p4278_p2 = scmp.lt.s32.totalorder %s4272_s28, %s4272_s28 }
  0xba   :  { %v3644_v12 = vcombine.low %v2819_v50, %v2823_v28  ;;  %v2851_v8 = vsel %vm4644_vm5, %v3639_v4, %v2850_v5 }
  0xbb   :  { %4145 = vmatmul.mubr.bf16.vlgmr.msra.gmra.mxu1 %v3646_v45  ;;  %v2855_v3 = vsel %vm4644_vm5, %v3640_v62, %v2854_v11  ;;  %p4279_p3 = por %p4278_p2, %p4277_p1 }
  0xbc   :  { %4148 = vmatprep.mubr.bf16.mxu1 %v3647_v10  ;;  %v3648_v19 = vcombine.low %v2851_v8, %v2855_v3 }
  0xbd   :  { %4141 = vmatmul.mubr.bf16.gmra.mxu0 %v3644_v12  ;;  %p4280_p4 = pnand %p4279_p3, %p4273_p0 }
  0xc3   :  { %4149 = vmatmul.mubr.bf16.gmra.mxu1 %v3648_v19 }
  0xe2   :  { %v3882_v6 = vpop.f32.mrf.mxu0 }
  0xe3   :  { %v3914_v47 = vpop.f32.mrf.mxu1 }
  0xe4   :  { %v631_v0 = vadd.f32 %v3914_v47, %v3882_v6  ;;  %v429_v14 = vpop.f32.mrf.mxu0 }
  0xe5   :  { %v622_v33 = vpop.f32.mrf.mxu1 }
  0xe6   :  { %v623_v2 = vadd.f32 %v622_v33, %v429_v14  ;;  %v3883_v25 = vpop.f32.mrf.mxu0 }
  0xe7   :  { %v3915_v29 = vpop.f32.mrf.mxu1 }
  0xe8   :  { %v634_v49 = vadd.f32 %v3915_v29, %v3883_v25  ;;  %v432_v30 = vpop.f32.mrf.mxu0 }
  0xe9   :  { %v625_v18 = vpop.f32.mrf.mxu1 }
  0xea   :  { %v626_v52 = vadd.f32 %v625_v18, %v432_v30  ;;  %v3886_v21 = vpop.f32.mrf.mxu0 }
  0xeb   :  { %v3918_v20 = vpop.f32.mrf.mxu1 }
  0xec   :  { %v647_v16 = vadd.f32 %v3918_v20, %v3886_v21  ;;  %v445_v26 = vpop.f32.mrf.mxu0 }
  0xed   :  { %v638_v23 = vpop.f32.mrf.mxu1 }
  0xee   :  { %v639_v17 = vadd.f32 %v638_v23, %v445_v26  ;;  %v3887_v35 = vpop.f32.mrf.mxu0 }
  0xef   :  { %v3919_v32 = vpop.f32.mrf.mxu1 }
  0xf0   :  { %v650_v9 = vadd.f32 %v3919_v32, %v3887_v35  ;;  %v448_v13 = vpop.f32.mrf.mxu0 }
  0xf1   :  { %v641_v37 = vpop.f32.mrf.mxu1 }
  0xf2   :  { %v642_v15 = vadd.f32 %v641_v37, %v448_v13 }
  0xf3   :  { %v3922_v42 = vpop.f32.mrf.mxu1 }
  0xf5   :  { %v654_v53 = vpop.f32.mrf.mxu1 }
  0xf6   :  { %v3890_v36 = vpop.f32.mrf.mxu0 }
  0xf7   :  { %v3923_v38 = vpop.f32.mrf.mxu1  ;;  %v663_v41 = vadd.f32 %v3922_v42, %v3890_v36 }
  0xf8   :  { %v461_v43 = vpop.f32.mrf.mxu0 }
  0xf9   :  { %v657_v48 = vpop.f32.mrf.mxu1  ;;  %v655_v7 = vadd.f32 %v654_v53, %v461_v43 }
  0xfa   :  { %v3891_v44 = vpop.f32.mrf.mxu0 }
  0xfb   :  { %v666_v58 = vadd.f32 %v3923_v38, %v3891_v44  ;;  %v3926_v31 = vpop.f32.mrf.mxu1 }
  0xfc   :  { %v464_v34 = vpop.f32.mrf.mxu0 }
  0xfd   :  { %v658_v22 = vadd.f32 %v657_v48, %v464_v34  ;;  %v670_v39 = vpop.f32.mrf.mxu1 }
  0xff   :  { %v3927_v60 = vpop.f32.mrf.mxu1 }
 0x101   :  { %v3894_v61 = vpop.f32.mrf.mxu0  ;;  %v673_v45 = vpop.f32.mrf.mxu1 }
 0x102   :  { %v679_v57 = vadd.f32 %v3926_v31, %v3894_v61 }
 0x103   :  { %v477_v46 = vpop.f32.mrf.mxu0  ;;  %v3978_v27 = vpop.f32.mrf.mxu1 }
 0x104   :  { %v671_v24 = vadd.f32 %v670_v39, %v477_v46 }
 0x105   :  { %v3895_v40 = vpop.f32.mrf.mxu0  ;;  %v1172_v51 = vpop.f32.mrf.mxu1 }
 0x106   :  { %v682_v55 = vadd.f32 %v3927_v60, %v3895_v40 }
 0x107   :  { %v480_v56 = vpop.f32.mrf.mxu0  ;;  %v3979_v1 = vpop.f32.mrf.mxu1 }
 0x108   :  { %v674_v59 = vadd.f32 %v673_v45, %v480_v56 }
 0x109   :  { %v3946_v63 = vpop.f32.mrf.mxu0  ;;  %v1175_v4 = vpop.f32.mrf.mxu1 }
 0x10a   :  { %v995_v54 = vadd.f32 %v3946_v63, %v631_v0 }
 0x10b   :  { %v930_v50 = vpop.f32.mrf.mxu0  ;;  %v3982_v5 = vpop.f32.mrf.mxu1 }
 0x10c   :  { %v5449_v62 = vadd.f32 %v3978_v27, %v995_v54  ;;  %v993_v10 = vadd.f32 %v930_v50, %v623_v2 }
 0x10d   :  { %v3947_v28 = vpop.f32.mrf.mxu0  ;;  %v1188_v11 = vpop.f32.mrf.mxu1 }
 0x10e   :  { %v5451_v12 = vadd.f32 %v1172_v51, %v993_v10  ;;  %v996_v8 = vadd.f32 %v3947_v28, %v634_v49 }
 0x10f   :  { %v933_v3 = vpop.f32.mrf.mxu0  ;;  %v3983_v19 = vpop.f32.mrf.mxu1 }
 0x110   :  { %v5453_v6 = vadd.f32 %v3979_v1, %v996_v8  ;;  %v994_v47 = vadd.f32 %v933_v3, %v626_v52 }
 0x111   :  { %v3950_v14 = vpop.f32.mrf.mxu0  ;;  %v1191_v33 = vpop.f32.mrf.mxu1 }
 0x112   :  { %v5455_v25 = vadd.f32 %v1175_v4, %v994_v47  ;;  %v999_v0 = vadd.f32 %v3950_v14, %v647_v16 }
 0x113   :  { %v946_v29 = vpop.f32.mrf.mxu0  ;;  %v3986_v30 = vpop.f32.mrf.mxu1 }
 0x114   :  { %v5457_v18 = vadd.f32 %v3982_v5, %v999_v0  ;;  %v997_v2 = vadd.f32 %v946_v29, %v639_v17 }
 0x115   :  { %v3951_v20 = vpop.f32.mrf.mxu0  ;;  %v1204_v21 = vpop.f32.mrf.mxu1 }
 0x116   :  { %v5459_v23 = vadd.f32 %v1188_v11, %v997_v2  ;;  %v1000_v49 = vadd.f32 %v3951_v20, %v650_v9 }
 0x117   :  { %v949_v26 = vpop.f32.mrf.mxu0  ;;  %v3987_v32 = vpop.f32.mrf.mxu1 }
 0x118   :  { %v5461_v35 = vadd.f32 %v3983_v19, %v1000_v49  ;;  %v998_v52 = vadd.f32 %v949_v26, %v642_v15 }
 0x119   :  { %v3954_v37 = vpop.f32.mrf.mxu0  ;;  %v1207_v13 = vpop.f32.mrf.mxu1 }
 0x11a   :  { %v5463_v42 = vadd.f32 %v1191_v33, %v998_v52  ;;  %v1003_v16 = vadd.f32 %v3954_v37, %v663_v41 }
 0x11b   :  { %v962_v53 = vpop.f32.mrf.mxu0  ;;  %v3990_v38 = vpop.f32.mrf.mxu1 }
 0x11c   :  { %v5465_v36 = vadd.f32 %v3986_v30, %v1003_v16  ;;  %v1001_v17 = vadd.f32 %v962_v53, %v655_v7 }
 0x11d   :  { %v3955_v48 = vpop.f32.mrf.mxu0  ;;  %v1220_v31 = vpop.f32.mrf.mxu1 }
 0x11e   :  { %v5467_v43 = vadd.f32 %v1204_v21, %v1001_v17  ;;  %v1004_v44 = vadd.f32 %v3955_v48, %v666_v58 }
 0x11f   :  { %v965_v9 = vpop.f32.mrf.mxu0  ;;  %v3991_v41 = vpop.f32.mrf.mxu1 }
 0x120   :  { %v5469_v34 = vadd.f32 %v3987_v32, %v1004_v44  ;;  %v1002_v39 = vadd.f32 %v965_v9, %v658_v22 }
 0x121   :  { %v3958_v15 = vpop.f32.mrf.mxu0  ;;  %v1223_v58 = vpop.f32.mrf.mxu1 }
 0x122   :  { %v5471_v60 = vadd.f32 %v1207_v13, %v1002_v39  ;;  %v1007_v61 = vadd.f32 %v3958_v15, %v679_v57 }
 0x123   :  { %v978_v45 = vpop.f32.mrf.mxu0  ;;  %v4042_v22 = vpop.f32.mrf.mxu1 }
 0x124   :  { %v5473_v46 = vadd.f32 %v3990_v38, %v1007_v61  ;;  %v1005_v27 = vadd.f32 %v978_v45, %v671_v24 }
 0x125   :  { %v3959_v40 = vpop.f32.mrf.mxu0  ;;  %v5481_v54 = vpop.f32.mrf.mxu1 }
 0x126   :  { %v5475_v7 = vadd.f32 %v1220_v31, %v1005_v27  ;;  %v1008_v51 = vadd.f32 %v3959_v40, %v682_v55 }
 0x127   :  { %v981_v56 = vpop.f32.mrf.mxu0  ;;  %v5483_v5 = vpop.f32.mrf.mxu1 }
 0x128   :  { %v5477_v1 = vadd.f32 %v3991_v41, %v1008_v51  ;;  %v1006_v63 = vadd.f32 %v981_v56, %v674_v59 }
 0x129   :  { %v4010_v57 = vpop.f32.mrf.mxu0  ;;  %v5485_v24 = vpop.f32.mrf.mxu1 }
 0x12a   :  { %v5479_v4 = vadd.f32 %v1223_v58, %v1006_v63 }
 0x12b   :  { %v1637_v50 = vpop.f32.mrf.mxu0 }
 0x12d   :  { %v4011_v10 = vpop.f32.mrf.mxu0 }
 0x12e   :  { %v5487_v11 = vpop.f32.mrf.mxu1 }
 0x12f   :  { %v1640_v28 = vpop.f32.mrf.mxu0 }
 0x130   :  { %v5489_v55 = vpop.f32.mrf.mxu1 }
 0x131   :  { %v4014_v8 = vpop.f32.mrf.mxu0 }
 0x132   :  { %v5491_v59 = vpop.f32.mrf.mxu1 }
 0x133   :  { %v1653_v3 = vpop.f32.mrf.mxu0 }
 0x134   :  { %v5493_v47 = vpop.f32.mrf.mxu1 }
 0x135   :  { %v4015_v19 = vpop.f32.mrf.mxu0 }
 0x137   :  { %v1656_v14 = vpop.f32.mrf.mxu0 }
 0x13a   :  { %v4050_v33 = vpop.f32.mrf.mxu1 }
 0x13c   :  { %v5495_v0 = vpop.f32.mrf.mxu1 }
 0x13d   :  { %v4018_v29 = vpop.f32.mrf.mxu0 }
 0x13e   :  { %v5497_v2 = vpop.f32.mrf.mxu1 }
 0x13f   :  { %v1669_v30 = vpop.f32.mrf.mxu0 }
 0x140   :  { %v5499_v21 = vpop.f32.mrf.mxu1 }
 0x141   :  { %v4019_v20 = vpop.f32.mrf.mxu0 }
 0x143   :  { %v1672_v49 = vpop.f32.mrf.mxu0 }
 0x145   :  { %v5501_v26 = vpop.f32.mrf.mxu1 }
 0x146   :  { %5786 = vst [vmem:[#allocation5_spill] sm:$0xff] %v5501_v26 }
 0x147   :  { %v5503_v52 = vpop.f32.mrf.mxu1 }
 0x148   :  { %5787 = vst [vmem:[#allocation6_spill] sm:$0xff] %v5503_v52 }
 0x149   :  { %v4022_v32 = vpop.f32.mrf.mxu0  ;;  %v5507_v16 = vpop.f32.mrf.mxu1 }
 0x14a   :  { %5788 = vst [vmem:[#allocation7_spill] sm:$0xff] %v5507_v16 }
 0x14b   :  { %v1685_v37 = vpop.f32.mrf.mxu0  ;;  %v5511_v17 = vpop.f32.mrf.mxu1 }
 0x14c   :  { %5790 = vst [vmem:[#allocation9_spill] sm:$0xff] %v5511_v17 }
 0x14d   :  { %v5505_v13 = vpop.f32.mrf.mxu0 }
 0x14f   :  { %v5509_v53 = vpop.f32.mrf.mxu0 }
 0x150   :  { %5789 = vst [vmem:[#allocation8_spill] sm:$0xff] %v5509_v53  ;;  %v1706_v53 = vadd.f32 %v4014_v8, %v5457_v18 }
 0x151   :  { %v4074_v38 = vpop.f32.mrf.mxu0 }
 0x152   :  { %v2027_v18 = vadd.f32 %v5487_v11, %v1706_v53  ;;  %v1714_v11 = vadd.f32 %v4022_v32, %v5473_v46 }
 0x153   :  { %v2200_v48 = vpop.f32.mrf.mxu0  ;;  %v4106_v9 = vpop.f32.mrf.mxu1 }
 0x155   :  { %v4075_v44 = vpop.f32.mrf.mxu0  ;;  %v2665_v39 = vpop.f32.mrf.mxu1 }
 0x157   :  { %v2203_v31 = vpop.f32.mrf.mxu0  ;;  %v5515_v61 = vpop.f32.mrf.mxu1 }
 0x158   :  { %5792 = vst [vmem:[#allocation11_spill] sm:$0xff] %v5515_v61 }
 0x159   :  { %v5513_v15 = vpop.f32.mrf.mxu0  ;;  %v5519_v41 = vpop.f32.mrf.mxu1 }
 0x15a   :  { %5791 = vst [vmem:[#allocation10_spill] sm:$0xff] %v5513_v15  ;;  %5794 = vst [vmem:[#allocation13_spill] sm:$0xff] %v5519_v41 }
 0x15b   :  { %v5517_v45 = vpop.f32.mrf.mxu0 }
 0x15c   :  { %5793 = vst [vmem:[#allocation12_spill] sm:$0xff] %v5517_v45 }
 0x15d   :  { %v5521_v27 = vpop.f32.mrf.mxu0  ;;  %v5525_v51 = vpop.f32.mrf.mxu1 }
 0x15e   :  { %5795 = vst [vmem:[#allocation14_spill] sm:$0xff] %v5521_v27  ;;  %5797 = vst [vmem:[#allocation16_spill] sm:$0xff] %v5525_v51 }
 0x15f   :  { %v5523_v40 = vpop.f32.mrf.mxu0  ;;  %v5527_v58 = vpop.f32.mrf.mxu1  ;;  %v5806_v32 = vld [vmem:[#allocation11_spill] sm:$0xff] }
 0x160   :  { %5796 = vst [vmem:[#allocation15_spill] sm:$0xff] %v5523_v40  ;;  %5798 = vst [vmem:[#allocation17_spill] sm:$0xff] %v5527_v58  ;;  %v1702_v40 = vadd.f32 %v4010_v57, %v5449_v62  ;;  %v1700_v58 = vadd.f32 %v1637_v50, %v5451_v12  ;;  %v1704_v62 = vadd.f32 %v1653_v3, %v5459_v23 }
 0x161   :  { %v4082_v56 = vpop.f32.mrf.mxu0  ;;  %v5529_v17 = vpop.f32.mrf.mxu1  ;;  %v1707_v57 = vadd.f32 %v4015_v19, %v5461_v35  ;;  %v1708_v50 = vadd.f32 %v1669_v30, %v5467_v43  ;;  %v1711_v23 = vadd.f32 %v4019_v20, %v5469_v34  ;;  %v1709_v35 = vadd.f32 %v1672_v49, %v5471_v60 }
 0x162   :  { %5799 = vst [vmem:[#allocation18_spill] sm:$0xff] %v5529_v17  ;;  %v2023_v17 = vadd.f32 %v4042_v22, %v1702_v40  ;;  %v2025_v43 = vadd.f32 %v5489_v55, %v1704_v62  ;;  %v1715_v34 = vadd.f32 %v5505_v13, %v5477_v1  ;;  %v5807_v1 = vld [vmem:[#allocation10_spill] sm:$0xff] }
 0x163   :  { %v2232_v63 = vpop.f32.mrf.mxu0  ;;  %v5531_v52 = vpop.f32.mrf.mxu1  ;;  %v2028_v8 = vadd.f32 %v5491_v59, %v1707_v57  ;;  %v2032_v20 = vadd.f32 %v5497_v2, %v1711_v23  ;;  %v5809_v2 = vld [vmem:[#allocation12_spill] sm:$0xff] }
 0x164   :  { %5800 = vst [vmem:[#allocation19_spill] sm:$0xff] %v5531_v52  ;;  %v1703_v52 = vadd.f32 %v4011_v10, %v5453_v6  ;;  %v2265_v12 = vadd.f32 %v4074_v38, %v2023_v17  ;;  %v2267_v17 = vadd.f32 %v5809_v2, %v2025_v43 }
 0x165   :  { %v4083_v16 = vpop.f32.mrf.mxu0 }
 0x166   :  { %v2024_v6 = vadd.f32 %v5483_v5, %v1703_v52  ;;  %v2730_v3 = vadd.f32 %v4106_v9, %v2265_v12  ;;  %v5810_v9 = vld [vmem:[#allocation6_spill] sm:$0xff] }
 0x167   :  { %v5533_v26 = vpop.f32.mrf.mxu0  ;;  %v4114_v45 = vpop.f32.mrf.mxu1  ;;  %v5819_v43 = vld [vmem:[#allocation17_spill] sm:$0xff] }
 0x168   :  { %5801 = vst [vmem:[#allocation20_spill] sm:$0xff] %v5533_v26  ;;  %v1701_v26 = vadd.f32 %v1640_v28, %v5455_v25  ;;  %v2266_v5 = vadd.f32 %v4075_v44, %v2024_v6  ;;  %v5816_v6 = vld [vmem:[#allocation9_spill] sm:$0xff] }
 0x169   :  { %v5535_v15 = vpop.f32.mrf.mxu0  ;;  %v5537_v41 = vpop.f32.mrf.mxu1 }
 0x16a   :  { %5802 = vst [vmem:[#allocation21_spill] sm:$0xff] %v5535_v15  ;;  %5803 = vst [vmem:[#allocation22_spill] sm:$0xff] %v5537_v41  ;;  %v1710_v41 = vadd.f32 %v4018_v29, %v5465_v36  ;;  %v2022_v25 = vadd.f32 %v5485_v24, %v1701_v26  ;;  %v1705_v36 = vadd.f32 %v1656_v14, %v5463_v42 }
 0x16b   :  { %v5539_v27 = vpop.f32.mrf.mxu0  ;;  %v5542_v51 = vpop.f32.mrf.mxu1  ;;  %v2029_v24 = vadd.f32 %v5495_v0, %v1708_v50  ;;  %v1712_v29 = vadd.f32 %v1685_v37, %v5475_v7  ;;  %v2030_v0 = vadd.f32 %v5499_v21, %v1709_v35  ;;  %v5805_v7 = vld [vmem:[#allocation8_spill] sm:$0xff]  ;;  %v2731_v52 = vadd.f32 %v5806_v32, %v2266_v5 }
 0x16c   :  { %5804 = vst [vmem:[#allocation23_spill] sm:$0xff] %v5539_v27  ;;  %v2021_v27 = vadd.f32 %v5481_v54, %v1700_v58  ;;  %v2031_v54 = vadd.f32 %v4050_v33, %v1710_v41  ;;  %v2264_v33 = vadd.f32 %v2203_v31, %v2022_v25  ;;  %v2026_v30 = vadd.f32 %v5493_v47, %v1705_v36  ;;  %v5808_v47 = vld [vmem:[#allocation5_spill] sm:$0xff]  ;;  %v5813_v58 = vld [vmem:[#allocation14_spill] sm:$0xff]  ;;  %v5818_v36 = vld [vmem:[#allocation15_spill] sm:$0xff] }
 0x16d   :  { %v5545_v61 = vpop.f32.mrf.mxu0  ;;  %v5550_v15 = vpop.f32.mrf.mxu1  ;;  %v2271_v46 = vadd.f32 %v2232_v63, %v2029_v24  ;;  %v1713_v26 = vadd.f32 %v5805_v7, %v5479_v4  ;;  %v2269_v37 = vadd.f32 %v5807_v1, %v2027_v18  ;;  %v2035_v38 = vadd.f32 %v5808_v47, %v1714_v11  ;;  %v5811_v4 = vld [vmem:[#allocation7_spill] sm:$0xff]  ;;  %v5812_v41 = vld [vmem:[#allocation13_spill] sm:$0xff]  ;;  %v5817_v18 = vld [vmem:[#allocation16_spill] sm:$0xff] }
 0x16e   :  { %v2263_v10 = vadd.f32 %v2200_v48, %v2021_v27  ;;  %v2273_v42 = vadd.f32 %v4082_v56, %v2031_v54  ;;  %v2274_v48 = vadd.f32 %v4083_v16, %v2032_v20  ;;  %v2033_v31 = vadd.f32 %v5810_v9, %v1712_v29  ;;  %v5823_v47 = vld [vmem:[#allocation19_spill] sm:$0xff] }
 0x16f   :  { %v5557_v22 = vpop.f32.mrf.mxu0  ;;  %v2729_v27 = vadd.f32 %v5812_v41, %v2264_v33  ;;  %v2270_v63 = vadd.f32 %v5813_v58, %v2028_v8  ;;  %v5815_v12 = vld [vmem:[#allocation20_spill] sm:$0xff]  ;;  %v2034_v25 = vadd.f32 %v5816_v6, %v1713_v26  ;;  %v2268_v54 = vadd.f32 %v5818_v36, %v2026_v30  ;;  %v5821_v33 = vld [vmem:[#allocation18_spill] sm:$0xff] }
 0x170   :  { %v2728_v60 = vadd.f32 %v2665_v39, %v2263_v10  ;;  %v2738_v21 = vadd.f32 %v4114_v45, %v2273_v42  ;;  %v2036_v39 = vadd.f32 %v5811_v4, %v1715_v34  ;;  %v2272_v50 = vadd.f32 %v5815_v12, %v2030_v0 }
 0x171   :  { %v5814_v62 = vld [vmem:[#allocation22_spill] sm:$0xff]  ;;  %v2734_v10 = vadd.f32 %v5817_v18, %v2269_v37  ;;  %v2732_v8 = vadd.f32 %v5819_v43, %v2267_v17  ;;  %v5820_v5 = vld [vmem:[#allocation21_spill] sm:$0xff]  ;;  %v2735_v30 = vadd.f32 %v5821_v33, %v2270_v63 }
 0x172   :  { %v2736_v57 = vadd.f32 %v5814_v62, %v2271_v46  ;;  %v2277_v24 = vadd.f32 %v5820_v5, %v2035_v38  ;;  %v2737_v20 = vadd.f32 %v5550_v15, %v2272_v50  ;;  %v2733_v15 = vadd.f32 %v5823_v47, %v2268_v54 }
 0x173   :  { %v5562_v28 = vpop.f32.mrf.mxu1  ;;  %v5822_v0 = vld [vmem:[#allocation23_spill] sm:$0xff]  ;;  %v2278_v2 = vadd.f32 %v5545_v61, %v2036_v39  ;;  %v2276_v61 = vadd.f32 %v5557_v22, %v2034_v25 }
 0x174   :  { %v2275_v46 = vadd.f32 %v5822_v0, %v2033_v31  ;;  %v2742_v38 = vadd.f32 %v5562_v28, %v2277_v24 }
 0x175   :  { %v5569_v19 = vpop.f32.mrf.mxu1  ;;  %v4138_v14 = vpop.f32.mrf.mxu0 }
 0x176   :  { %v5578_v59 = vadd.f32 %v4138_v14, %v2730_v3  ;;  %v2739_v3 = vadd.f32 %v5542_v51, %v2274_v48  ;;  %v2740_v28 = vadd.f32 %v5569_v19, %v2275_v46 }
 0x177   :  { %v5576_v55 = vpop.f32.mrf.mxu1  ;;  %v2986_v49 = vpop.f32.mrf.mxu0 }
 0x178   :  { %3191 = vst [vmem:[#allocation2 + $0x10] sm:$0xff] %v5578_v59  ;;  %v5590_v53 = vadd.f32 %v2986_v49, %v2728_v60  ;;  %v3089_v26 = vmul.f32 %v5578_v59, %v5578_v59  ;;  %v2743_v19 = vadd.f32 %v5576_v55, %v2278_v2 }
 0x179   :  { %v5587_v13 = vpop.f32.mrf.mxu1  ;;  %v4139_v44 = vpop.f32.mrf.mxu0 }
 0x17a   :  { %3189 = vst [vmem:[#allocation2] sm:$0xff] %v5590_v53  ;;  %v5598_v56 = vadd.f32 %v4139_v44, %v2731_v52  ;;  %v3087_v42 = vmul.f32 %v5590_v53, %v5590_v53  ;;  %v2741_v6 = vadd.f32 %v5587_v13, %v2276_v61 }
 0x17b   :  { %v4146_v40 = vpop.f32.mrf.mxu1  ;;  %v2989_v16 = vpop.f32.mrf.mxu0 }
 0x17c   :  { %v5603_v45 = vadd.f32 %v4146_v40, %v2738_v21  ;;  %3192 = vst [vmem:[#allocation2 + $0x18] sm:$0xff] %v5598_v56  ;;  %v5609_v35 = vadd.f32 %v2989_v16, %v2729_v27  ;;  %v3090_v48 = vmul.f32 %v5598_v56, %v5598_v56 }
 0x17d   :  { %v3018_v23 = vpop.f32.mrf.mxu1  ;;  %v4142_v29 = vpop.f32.mrf.mxu0 }
 0x17e   :  { %3199 = vst [vmem:[#allocation2 + $0x50] sm:$0xff] %v5603_v45  ;;  %v5615_v11 = vadd.f32 %v3018_v23, %v2736_v57  ;;  %v3065_v34 = vadd.f32 %v5609_v35, %v5590_v53  ;;  %v3088_v60 = vmul.f32 %v5609_v35, %v5609_v35  ;;  %3190 = vst [vmem:[#allocation2 + $0x8] sm:$0xff] %v5609_v35 }
 0x17f   :  { %v4147_v14 = vpop.f32.mrf.mxu1  ;;  %v5624_v51 = vadd.f32 %v4142_v29, %v2734_v10  ;;  %v3002_v7 = vpop.f32.mrf.mxu0 }
 0x180   :  { %3197 = vst [vmem:[#allocation2 + $0x40] sm:$0xff] %v5615_v11  ;;  %v5630_v49 = vadd.f32 %v4147_v14, %v2739_v3  ;;  %v3066_v32 = vadd.f32 %v3065_v34, %v5578_v59  ;;  %v3103_v52 = vadd.f32 %v3088_v60, %v3087_v42  ;;  %v5636_v37 = vadd.f32 %v3002_v7, %v2732_v8 }
 0x181   :  { %v3021_v1 = vpop.f32.mrf.mxu1  ;;  %3195 = vst [vmem:[#allocation2 + $0x30] sm:$0xff] %v5624_v51  ;;  %v4143_v21 = vpop.f32.mrf.mxu0  ;;  %v3093_v25 = vmul.f32 %v5624_v51, %v5624_v51  ;;  %v3095_v8 = vmul.f32 %v5615_v11, %v5615_v11 }
 0x182   :  { %3200 = vst [vmem:[#allocation2 + $0x58] sm:$0xff] %v5630_v49  ;;  %v5642_v17 = vadd.f32 %v3021_v1, %v2737_v20  ;;  %v3104_v44 = vadd.f32 %v3103_v52, %v3089_v26  ;;  %v3067_v31 = vadd.f32 %v3066_v32, %v5598_v56  ;;  %3193 = vst [vmem:[#allocation2 + $0x20] sm:$0xff] %v5636_v37 }
 0x183   :  { %v4150_v9 = vpop.f32.mrf.mxu1  ;;  %v5648_v4 = vadd.f32 %v4143_v21, %v2735_v30  ;;  %v3005_v41 = vpop.f32.mrf.mxu0  ;;  %v3091_v40 = vmul.f32 %v5636_v37, %v5636_v37 }
 0x184   :  { %3198 = vst [vmem:[#allocation2 + $0x48] sm:$0xff] %v5642_v17  ;;  %v5653_v39 = vadd.f32 %v4150_v9, %v2742_v38  ;;  %v3068_v27 = vadd.f32 %v3067_v31, %v5636_v37  ;;  %v3105_v58 = vadd.f32 %v3104_v44, %v3090_v48  ;;  %v5659_v62 = vadd.f32 %v3005_v41, %v2733_v15 }
 0x185   :  { %v3034_v63 = vpop.f32.mrf.mxu1  ;;  %3196 = vst [vmem:[#allocation2 + $0x38] sm:$0xff] %v5648_v4  ;;  %v3094_v23 = vmul.f32 %v5648_v4, %v5648_v4 }
 0x186   :  { %3203 = vst [vmem:[#allocation2 + $0x70] sm:$0xff] %v5653_v39  ;;  %v5663_v22 = vadd.f32 %v3034_v63, %v2740_v28  ;;  %v3106_v57 = vadd.f32 %v3105_v58, %v3091_v40  ;;  %v3069_v50 = vadd.f32 %v3068_v27, %v5659_v62  ;;  %v3092_v16 = vmul.f32 %v5659_v62, %v5659_v62 }
 0x187   :  { %v4151_v12 = vpop.f32.mrf.mxu1  ;;  %3194 = vst [vmem:[#allocation2 + $0x28] sm:$0xff] %v5659_v62 }
 0x188   :  { %3201 = vst [vmem:[#allocation2 + $0x60] sm:$0xff] %v5663_v22  ;;  %v5671_v55 = vadd.f32 %v4151_v12, %v2743_v19  ;;  %v3070_v18 = vadd.f32 %v3069_v50, %v5624_v51  ;;  %v3107_v10 = vadd.f32 %v3106_v57, %v3092_v16 }
 0x189   :  { %v3037_v36 = vpop.f32.mrf.mxu1 }
 0x18a   :  { %3204 = vst [vmem:[#allocation2 + $0x78] sm:$0xff] %v5671_v55  ;;  %v5677_v54 = vadd.f32 %v3037_v36, %v2741_v6  ;;  %v3071_v13 = vadd.f32 %v3070_v18, %v5648_v4  ;;  %v3108_v43 = vadd.f32 %v3107_v10, %v3093_v25 }
 0x18c   :  { %3202 = vst [vmem:[#allocation2 + $0x68] sm:$0xff] %v5677_v54  ;;  %v3072_v3 = vadd.f32 %v3071_v13, %v5615_v11  ;;  %v3109_v5 = vadd.f32 %v3108_v43, %v3094_v23 }
 0x18d   :  { %4283 = shalt.err (!%p4280_p4)
}
 0x18e   :  { %s4295_s29 = smov 128   ;;  %s4296_s30 = smov 8   ;;  %v3096_v24 = vmul.f32 %v5642_v17, %v5642_v17  ;;  %v3110_v29 = vadd.f32 %v3109_v5, %v3095_v8  ;;  %v3073_v42 = vadd.f32 %v3072_v3, %v5642_v17  ;;  %v3097_v14 = vmul.f32 %v5603_v45, %v5603_v45  ;;  %v3127_v57 = vld [vmem:[%s5777_s2] sm:$0x1] }
 0x18f   :  { %3330 = dma.vmem_to_hbm [thread:$0]  %s3325_s27, 2048, %s5781_s6, [#allocation3], %s4295_s29, %s4295_s29, %s4296_s30   ;;  %v3098_v33 = vmul.f32 %v5630_v49, %v5630_v49  ;;  %v3099_v0 = vmul.f32 %v5663_v22, %v5663_v22  ;;  %v3100_v32 = vmul.f32 %v5677_v54, %v5677_v54  ;;  %v3101_v1 = vmul.f32 %v5653_v39, %v5653_v39 }
 0x190   :  { %v3074_v34 = vadd.f32 %v3073_v42, %v5603_v45  ;;  %v3111_v60 = vadd.f32 %v3110_v29, %v3096_v24  ;;  %v3102_v38 = vmul.f32 %v5671_v55, %v5671_v55  ;;  %v3131_v25 = vmul.f32 %v3127_v57, %v3127_v57  ;;  %v3128_v24 = vld [vmem:[%s5778_s3] sm:$0x1] }
 0x191   :  { %v3146_v5 = vlaneseq  ;;  %v3130_v42 = vmul.f32 %v3128_v24, %v3127_v57 }
 0x192   :  { %v3075_v30 = vadd.f32 %v3074_v34, %v5630_v49  ;;  %v3112_v20 = vadd.f32 %v3111_v60, %v3097_v14 }
 0x193   :  { %v3147_v29 = vshrl.u32 %v3146_v5, 7 }
 0x194   :  { %v3076_v46 = vadd.f32 %v3075_v30, %v5663_v22  ;;  %v3113_v7 = vadd.f32 %v3112_v20, %v3098_v33  ;;  %v3129_v33 = vld [vmem:[%s5779_s4] sm:$0x1] }
 0x195   :  { %v3148_v14 = vsub.s32 0, %v3147_v29 }
 0x196   :  { %v3077_v26 = vadd.f32 %v3076_v46, %v5677_v54  ;;  %v3114_v52 = vadd.f32 %v3113_v7, %v3099_v0 }
 0x198   :  { %v3078_v47 = vadd.f32 %v3077_v26, %v5653_v39  ;;  %v3115_v15 = vadd.f32 %v3114_v52, %v3100_v32 }
 0x19a   :  { %v3079_v2 = vadd.f32 %v3078_v47, %v5671_v55  ;;  %v3116_v21 = vadd.f32 %v3115_v15, %v3101_v1 }
 0x19c   :  { %v3080_v48 = vrot.slane %v3079_v2, 4  ;;  %v3117_v44 = vadd.f32 %v3116_v21, %v3102_v38 }
 0x19e   :  { %v3081_v9 = vadd.f32 %v3080_v48, %v3079_v2  ;;  %v3118_v31 = vrot.slane %v3117_v44, 4 }
 0x1a0   :  { %v3082_v28 = vrot.slane %v3081_v9, 2  ;;  %v3119_v61 = vadd.f32 %v3118_v31, %v3117_v44 }
 0x1a2   :  { %v3083_v41 = vadd.f32 %v3082_v28, %v3081_v9  ;;  %v3120_v27 = vrot.slane %v3119_v61, 2 }
 0x1a4   :  { %v3084_v40 = vrot.slane %v3083_v41, 1  ;;  %v3121_v58 = vadd.f32 %v3120_v27, %v3119_v61 }
 0x1a6   :  { %v3085_v63 = vadd.f32 %v3084_v40, %v3083_v41  ;;  %v3122_v19 = vrot.slane %v3121_v58, 1 }
 0x1a8   :  { %v3086_v12 = vmul.f32 0.0078125, %v3085_v63  ;;  %v3123_v50 = vadd.f32 %v3122_v19, %v3121_v58 }
 0x1aa   :  { %v3124_v16 = vmul.f32 0.0078125, %v3123_v50  ;;  %v3125_v6 = vmul.f32 %v3086_v12, %v3086_v12 }
 0x1ac   :  { %v3126_v18 = vsub.f32 %v3124_v16, %v3125_v6 }
 0x1ae   :  { %v3132_v10 = vmul.f32 %v3131_v25, %v3126_v18 }
 0x1b0   :  { %v3133_v36 = vadd.f32 1e-05, %v3132_v10 }
 0x1b2   :  { %4268 = vrsqrt.f32 %v3133_v36  ;;  %vm3136_vm6 = vcmp.eq.f32.partialorder %v3133_v36, inf  ;;  %v3139_v43 = vand.u32 2147483648, %v3133_v36  ;;  %vm3138_vm7 = vcmp.eq.f32.partialorder %v3133_v36, 0.0 }
 0x1bf   :  { %v4269_v23 = vpop.eup %4268 }
 0x1c0   :  { %v3135_v13 = vmul.f32 %v4269_v23, %v3133_v36 }
 0x1c2   :  { %v3137_v8 = vsel %vm3136_vm6, %v3133_v36, %v3135_v13 }
 0x1c3   :  { %v3140_v3 = vsel %vm3138_vm7, %v3139_v43, %v3137_v8 }
 0x1c4   :  { %4270 = vrcp.f32 %v3140_v3 }
 0x1d1   :  { %v4271_v34 = vpop.eup %4270 }
 0x1d2   :  { %v3142_v60 = vmul.f32 %v4271_v34, %v3130_v42 }
 0x1d4   :  { %v3143_v30 = vmul.f32 %v3142_v60, %v3086_v12  ;;  %v3149_v20 = vrot.slane %v3142_v60, %v3148_v14 }
 0x1d6   :  { %v3144_v0 = vsub.f32 %v3129_v33, %v3143_v30  ;;  %v3151_v46 = vmul.f32 %v3149_v20, %v5590_v53  ;;  %v3152_v7 = vmul.f32 %v3149_v20, %v5609_v35  ;;  %v3153_v26 = vmul.f32 %v3149_v20, %v5578_v59 }
 0x1d7   :  { %v3154_v32 = vmul.f32 %v3149_v20, %v5598_v56  ;;  %v3155_v52 = vmul.f32 %v3149_v20, %v5636_v37  ;;  %v3156_v1 = vmul.f32 %v3149_v20, %v5659_v62  ;;  %v3157_v47 = vmul.f32 %v3149_v20, %v5624_v51 }
 0x1d8   :  { %v3158_v15 = vmul.f32 %v3149_v20, %v5648_v4  ;;  %v3159_v38 = vmul.f32 %v3149_v20, %v5615_v11  ;;  %v3160_v2 = vmul.f32 %v3149_v20, %v5642_v17  ;;  %v3161_v53 = vmul.f32 %v3149_v20, %v5603_v45 }
 0x1d9   :  { %v3162_v35 = vmul.f32 %v3149_v20, %v5630_v49  ;;  %v3171_v21 = vrot.slane %v3144_v0, %v3148_v14  ;;  %v3163_v59 = vmul.f32 %v3149_v20, %v5663_v22  ;;  %v3164_v56 = vmul.f32 %v3149_v20, %v5677_v54 }
 0x1da   :  { %v3165_v37 = vmul.f32 %v3149_v20, %v5653_v39  ;;  %v3166_v62 = vmul.f32 %v3149_v20, %v5671_v55  ;;  %v4297_v39 = vmov -1.0  }
 0x1db   :  { %v3173_v51 = vadd.f32 %v3171_v21, %v3151_v46  ;;  %v3174_v48 = vadd.f32 %v3171_v21, %v3152_v7  ;;  %v3175_v4 = vadd.f32 %v3171_v21, %v3153_v26  ;;  %v3176_v44 = vadd.f32 %v3171_v21, %v3154_v32 }
 0x1dc   :  { %v3177_v11 = vadd.f32 %v3171_v21, %v3155_v52  ;;  %v3178_v9 = vadd.f32 %v3171_v21, %v3156_v1  ;;  %v3179_v17 = vadd.f32 %v3171_v21, %v3157_v47  ;;  %v3180_v31 = vadd.f32 %v3171_v21, %v3158_v15 }
 0x1dd   :  { %v3181_v45 = vadd.f32 %v3171_v21, %v3159_v38  ;;  %v3182_v28 = vadd.f32 %v3171_v21, %v3160_v2  ;;  %v3183_v49 = vadd.f32 %v3171_v21, %v3161_v53  ;;  %v3184_v61 = vadd.f32 %v3171_v21, %v3162_v35 }
 0x1de   :  { %v3185_v41 = vadd.f32 %v3171_v21, %v3163_v59  ;;  %v3186_v22 = vadd.f32 %v3171_v21, %v3164_v56  ;;  %v3187_v27 = vadd.f32 %v3171_v21, %v3165_v37  ;;  %v3188_v54 = vadd.f32 %v3171_v21, %v3166_v62 }
 0x1df   :  { %vm3205_vm8 = vcmp.ge.f32.partialorder %v3173_v51, 0.0  ;;  %vm3206_vm9 = vcmp.ge.f32.partialorder %v3174_v48, 0.0  ;;  %vm3207_vm10 = vcmp.ge.f32.partialorder %v3175_v4, 0.0  ;;  %vm3208_vm11 = vcmp.ge.f32.partialorder %v3176_v44, 0.0 }
 0x1e0   :  { %vm3209_vm12 = vcmp.ge.f32.partialorder %v3177_v11, 0.0  ;;  %vm3210_vm13 = vcmp.ge.f32.partialorder %v3178_v9, 0.0  ;;  %vm3211_vm14 = vcmp.ge.f32.partialorder %v3179_v17, 0.0  ;;  %vm3212_vm15 = vcmp.ge.f32.partialorder %v3180_v31, 0.0 }
 0x1e1   :  { %vm3213_vm0 = vcmp.ge.f32.partialorder %v3181_v45, 0.0  ;;  %vm3214_vm1 = vcmp.ge.f32.partialorder %v3182_v28, 0.0  ;;  %vm3215_vm2 = vcmp.ge.f32.partialorder %v3183_v49, 0.0  ;;  %vm3216_vm3 = vcmp.ge.f32.partialorder %v3184_v61, 0.0 }
 0x1e2   :  { %vm3217_vm4 = vcmp.ge.f32.partialorder %v3185_v41, 0.0  ;;  %vm3218_vm5 = vcmp.ge.f32.partialorder %v3186_v22, 0.0  ;;  %vm3219_vm6 = vcmp.ge.f32.partialorder %v3187_v27, 0.0  ;;  %vm3220_vm7 = vcmp.ge.f32.partialorder %v3188_v54, 0.0 }
 0x1e3   :  { %v3221_v55 = vsel %vm3205_vm8, 1.0, %v4297_v39  ;;  %v3222_v40 = vsel %vm3206_vm9, 1.0, %v4297_v39  ;;  %v3223_v58 = vsel %vm3207_vm10, 1.0, %v4297_v39  ;;  %v3224_v63 = vsel %vm3208_vm11, 1.0, %v4297_v39 }
 0x1e4   :  { %v3225_v19 = vsel %vm3209_vm12, 1.0, %v4297_v39  ;;  %v3226_v57 = vsel %vm3210_vm13, 1.0, %v4297_v39  ;;  %v3227_v12 = vsel %vm3211_vm14, 1.0, %v4297_v39  ;;  %v3228_v50 = vsel %vm3212_vm15, 1.0, %v4297_v39 }
 0x1e5   :  { %v3229_v16 = vsel %vm3213_vm0, 1.0, %v4297_v39  ;;  %v3230_v6 = vsel %vm3214_vm1, 1.0, %v4297_v39  ;;  %v3231_v25 = vsel %vm3215_vm2, 1.0, %v4297_v39  ;;  %v3232_v18 = vsel %vm3216_vm3, 1.0, %v4297_v39 }
 0x1e6   :  { %v3233_v10 = vsel %vm3217_vm4, 1.0, %v4297_v39  ;;  %v3234_v36 = vsel %vm3218_vm5, 1.0, %v4297_v39  ;;  %v3235_v23 = vsel %vm3219_vm6, 1.0, %v4297_v39  ;;  %v3236_v13 = vsel %vm3220_vm7, 1.0, %v4297_v39 }
 0x1e7   :  { %v3690_v43 = vpack.c.bf16 %v3222_v40, %v3221_v55  ;;  %v3693_v8 = vpack.c.bf16 %v3224_v63, %v3223_v58  ;;  %v3696_v3 = vpack.c.bf16 %v3226_v57, %v3225_v19  ;;  %v3699_v5 = vpack.c.bf16 %v3228_v50, %v3227_v12 }
 0x1e8   :  { %v3702_v24 = vpack.c.bf16 %v3230_v6, %v3229_v16  ;;  %v3705_v29 = vpack.c.bf16 %v3232_v18, %v3231_v25  ;;  %v3708_v42 = vpack.c.bf16 %v3234_v36, %v3233_v10  ;;  %v3711_v14 = vpack.c.bf16 %v3236_v13, %v3235_v23 }
 0x1e9   :  { %3691 = vst [vmem:[%s5780_s5] sm:$0xff] %v3690_v43   ;;  %3713 = vst [vmem:[%s5780_s5 + $0x8] sm:$0xff] %v3693_v8  }
 0x1ea   :  { %3714 = vst [vmem:[%s5780_s5 + $0x10] sm:$0xff] %v3696_v3   ;;  %3715 = vst [vmem:[%s5780_s5 + $0x18] sm:$0xff] %v3699_v5  }
 0x1eb   :  { %3716 = vst [vmem:[%s5780_s5 + $0x20] sm:$0xff] %v3702_v24   ;;  %3717 = vst [vmem:[%s5780_s5 + $0x28] sm:$0xff] %v3705_v29  }
 0x1ec   :  { %3718 = vst [vmem:[%s5780_s5 + $0x30] sm:$0xff] %v3708_v42   ;;  %3719 = vst [vmem:[%s5780_s5 + $0x38] sm:$0xff] %v3711_v14  }
 0x1ed   :  { %4292 = dma.done.wait [#allocation3], 2048  }
 0x1ee   :  { %4293 = vsyncadd [#allocation3], 4294965248 }
 0x1ef   :  { %3336 = vsyncpa [#allocation3], 1 }

// kernel: _lambda_.3
= control target key start
LH: loop header
LB: loop body
LE: loop exit
PB: predicated region body
PF: predicated region fallthrough
CT: control target
= control target key end

     0   :  { %vm73_vm0 = vsmask.f32 3328  ;;  %vm74_vm1 = vsmask.f32 7440  ;;  %vm734_vm3 = vcmask 1042432   ;;  %vm735_vm4 = vcmask 1046532   ;;  %s5685_s0 = inlined_call_operand.vmem [shape: bf16[2,10,10,128], index: 0, kind: input, shape index: {}]   ;;  %s5686_s1 = inlined_call_operand.vmem [shape: bf16[1152,128], index: 1, kind: input, shape index: {}]   ;;  %s5687_s2 = inlined_call_operand.vmem [shape: f32[1,128], index: 2, kind: input, shape index: {}]   ;;  %s5688_s3 = inlined_call_operand.vmem [shape: f32[1,128], index: 3, kind: input, shape index: {}]   ;;  %s5689_s4 = inlined_call_operand.vmem [shape: f32[1,128], index: 4, kind: input, shape index: {}]   ;;  %s5690_s5 = inlined_call_operand.vmem [shape: f32[128,128], index: 5, kind: input, shape index: {}]   ;;  %s5691_s6 = inlined_call_operand.hbm [shape: f32[128,128], index: 6, kind: output, shape index: {}]  }
   0x1   :  { %v4073_v0 = vld [vmem:[%s5686_s1 + $0x78] sm:$0xff]   ;;  %v4075_v2 = vld [vmem:[%s5686_s1 + $0x70] sm:$0xff]   ;;  %v4077_v4 = vld [vmem:[%s5686_s1 + $0x68] sm:$0xff]  }
   0x2   :  { %v4074_v1 = vld [vmem:[%s5686_s1 + $0x38] sm:$0xff]   ;;  %3766 = vmatprep.subr.bf16.mxu0 %v4073_v0  ;;  %v4076_v3 = vld [vmem:[%s5686_s1 + $0x30] sm:$0xff]   ;;  %v4078_v5 = vld [vmem:[%s5686_s1 + $0x28] sm:$0xff]  }
   0x3   :  { %3798 = vmatprep.subr.bf16.mxu1 %v4074_v1  ;;  %3767 = vmatpush3.bf16.msra.mxu0 %v4073_v0  ;;  %v4079_v6 = vld [vmem:[%s5686_s1 + $0x60] sm:$0xff]   ;;  %v4081_v8 = vld [vmem:[%s5686_s1 + $0x58] sm:$0xff]   ;;  %v4083_v10 = vld [vmem:[%s5686_s1 + $0x50] sm:$0xff]  }
   0x4   :  { %3799 = vmatpush3.bf16.msra.mxu1 %v4074_v1  ;;  %3768 = vmatprep.subr.bf16.mxu0 %v4075_v2  ;;  %v4080_v7 = vld [vmem:[%s5686_s1 + $0x20] sm:$0xff]   ;;  %v4082_v9 = vld [vmem:[%s5686_s1 + $0x18] sm:$0xff]   ;;  %v26_v12 = vld [vmem:[%s5685_s0 + $0x8] sm:$0xf] }
   0x5   :  { %3800 = vmatprep.subr.bf16.mxu1 %v4076_v3  ;;  %v25_v11 = vld [vmem:[%s5685_s0] sm:$0xf]  ;;  %v4275_v13 = vld [vmem:[%s5685_s0 + $0x4] sm:$0x1]  ;;  %v4084_v14 = vld [vmem:[%s5686_s1 + $0x10] sm:$0xff]   ;;  %v91_v21 = vshrl.u32 %v26_v12, 16 }
   0x6   :  { %v4283_v15 = vld [vmem:[%s5685_s0 + $0xc] sm:$0x1]  ;;  %v3302_v16 = vcombine.low %v25_v11, %v26_v12  ;;  %v77_v18 = vshrl.u32 %v25_v11, 16  ;;  %v80_v19 = vshll.u32 %v25_v11, 16  ;;  %v86_v20 = vshll.u32 %v4275_v13, 16  ;;  %v4087_v41 = vld [vmem:[%s5686_s1 + $0x40] sm:$0xff]   ;;  %vm4323_vm2 = vmor %vm73_vm0, %vm74_vm1 }
   0x7   :  { %3769 = vmatpush3.bf16.msra.mxu0 %v4075_v2  ;;  %v4085_v17 = vld [vmem:[%s5686_s1 + $0x48] sm:$0xff]   ;;  %v4292_v22 = vld [vmem:[%s5685_s0 + $0x10] sm:$0xf]  ;;  %v94_v24 = vshll.u32 %v26_v12, 16  ;;  %v100_v25 = vshll.u32 %v4283_v15, 16  ;;  %v93_v30 = vrot.slane %v91_v21, 4  ;;  %vm4544_vm5 = vmor %vm734_vm3, %vm735_vm4 }
   0x8   :  { %3801 = vmatpush3.bf16.msra.mxu1 %v4076_v3  ;;  %3770 = vmatprep.subr.bf16.mxu0 %v4077_v4  ;;  %v4086_v23 = vld [vmem:[%s5686_s1 + $0x8] sm:$0xff]   ;;  %v4301_v26 = vld [vmem:[%s5685_s0 + $0x18] sm:$0xf]  ;;  %v79_v27 = vrot.slane %v77_v18, 4  ;;  %v82_v28 = vrot.slane %v80_v19, 5  ;;  %v88_v29 = vrot.slane %v86_v20, 5 }
   0x9   :  { %3802 = vmatprep.subr.bf16.mxu1 %v4078_v5  ;;  %3814 = vmatprep.mubr.bf16.mxu1 %v3302_v16  ;;  %v4306_v31 = vld [vmem:[%s5685_s0 + $0x14] sm:$0x1]  ;;  %v96_v32 = vrot.slane %v94_v24, 5  ;;  %v102_v33 = vrot.slane %v100_v25, 5  ;;  %v4311_v34 = vld [vmem:[%s5685_s0 + $0x1c] sm:$0x1]  ;;  %v3303_v2 = vcombine.low %v4292_v22, %v4301_v26 }
   0xa   :  { %v105_v35 = vshrl.u32 %v4292_v22, 16  ;;  %v108_v36 = vshll.u32 %v4292_v22, 16  ;;  %v83_v37 = vor.u32 %v82_v28, %v79_v27  ;;  %v114_v38 = vshll.u32 %v4306_v31, 16  ;;  %v4088_v51 = vld [vmem:[%s5686_s1] sm:$0xff]   ;;  %v4091_v59 = vld [vmem:[%s5686_s1 + $0xb8] sm:$0xff]   ;;  %v4093_v19 = vld [vmem:[%s5686_s1 + $0xb0] sm:$0xff]  }
   0xb   :  { %3771 = vmatpush3.bf16.msra.mxu0 %v4077_v4  ;;  %v119_v39 = vshrl.u32 %v4301_v26, 16  ;;  %v122_v40 = vshll.u32 %v4301_v26, 16  ;;  %v97_v43 = vor.u32 %v96_v32, %v93_v30  ;;  %v128_v46 = vshll.u32 %v4311_v34, 16  ;;  %v4092_v62 = vld [vmem:[%s5686_s1 + $0xf8] sm:$0xff]   ;;  %v29_v3 = vld [vmem:[%s5685_s0 + $0x20] sm:$0xf] }
   0xc   :  { %3803 = vmatpush3.bf16.msra.mxu1 %v4078_v5  ;;  %3772 = vmatprep.subr.bf16.mxu0 %v4079_v6  ;;  %v107_v44 = vrot.slane %v105_v35, 4  ;;  %v110_v45 = vrot.slane %v108_v36, 5  ;;  %v84_v47 = vrot.slane %v83_v37, 4  ;;  %v739_v48 = vrot.slane %v4275_v13, 5  ;;  %v30_v4 = vld [vmem:[%s5685_s0 + $0x28] sm:$0xf] }
   0xd   :  { %3804 = vmatprep.subr.bf16.mxu1 %v4080_v7  ;;  %v121_v49 = vrot.slane %v119_v39, 4  ;;  %v124_v50 = vrot.slane %v122_v40, 5  ;;  %v98_v52 = vrot.slane %v97_v43, 4  ;;  %v743_v53 = vrot.slane %v4283_v15, 5  ;;  %v4384_v27 = vld [vmem:[%s5685_s0 + $0x34] sm:$0x1] }
   0xe   :  { %v111_v54 = vor.u32 %v110_v45, %v107_v44  ;;  %v116_v55 = vrot.slane %v114_v38, 5  ;;  %v89_v56 = vsel %vm4323_vm2, %v84_v47, %v88_v29  ;;  %v130_v58 = vrot.slane %v128_v46, 5  ;;  %v4094_v29 = vld [vmem:[%s5686_s1 + $0xf0] sm:$0xff]   ;;  %v4097_v45 = vld [vmem:[%s5686_s1 + $0xa8] sm:$0xff]   ;;  %v4114_v13 = vld [vmem:[%s5685_s0 + $0x18] ss:$8 sps:$4 sm:$0xff]  }
   0xf   :  { %3773 = vmatpush3.bf16.msra.mxu0 %v4079_v6  ;;  %v125_v57 = vor.u32 %v124_v50, %v121_v49  ;;  %v103_v60 = vsel %vm4323_vm2, %v98_v52, %v102_v33  ;;  %v747_v1 = vrot.slane %v4306_v31, 5  ;;  %v4357_v6 = vld [vmem:[%s5685_s0 + $0x24] sm:$0x1]  ;;  %v150_v16 = vshll.u32 %v30_v4, 16  ;;  %v4393_v33 = vld [vmem:[%s5685_s0 + $0x3c] sm:$0x1] }
  0x10   :  { %3805 = vmatpush3.bf16.msra.mxu1 %v4080_v7  ;;  %3774 = vmatprep.subr.bf16.mxu0 %v4081_v8  ;;  %v112_v61 = vrot.slane %v111_v54, 4  ;;  %v3286_v63 = vcombine.low %v89_v56, %v103_v60  ;;  %v4362_v7 = vld [vmem:[%s5685_s0 + $0x2c] sm:$0x1]  ;;  %v142_v12 = vshll.u32 %v4357_v6, 16  ;;  %v170_v36 = vshll.u32 %v4384_v27, 16  ;;  %v4118_v15 = vld [vmem:[%s5686_s1 + $0x170] sm:$0xff]  }
  0x11   :  { %3806 = vmatprep.subr.bf16.mxu1 %v4082_v9  ;;  %v126_v0 = vrot.slane %v125_v57, 4  ;;  %v156_v22 = vshll.u32 %v4362_v7, 16  ;;  %v152_v26 = vrot.slane %v150_v16, 5  ;;  %v184_v44 = vshll.u32 %v4393_v33, 16  ;;  %v4098_v50 = vld [vmem:[%s5686_s1 + $0xe8] sm:$0xff]  }
  0x12   :  { %v117_v5 = vsel %vm4323_vm2, %v112_v61, %v116_v55  ;;  %3782 = vmatprep.mubr.bf16.mxu0 %v3286_v63  ;;  %v144_v24 = vrot.slane %v142_v12, 5  ;;  %v172_v54 = vrot.slane %v170_v36, 5  ;;  %v4099_v61 = vld [vmem:[%s5686_s1 + $0xa0] sm:$0xff]   ;;  %v34_v63 = vld [vmem:[%s5685_s0 + $0x58] sm:$0xf]  ;;  %v763_v31 = vrot.slane %v4384_v27, 5 }
  0x13   :  { %3775 = vmatpush3.bf16.msra.mxu0 %v4081_v8  ;;  %v133_v8 = vshrl.u32 %v29_v3, 16  ;;  %v131_v11 = vsel %vm4323_vm2, %v126_v0, %v130_v58  ;;  %v158_v32 = vrot.slane %v156_v22, 5  ;;  %v186_v55 = vrot.slane %v184_v44, 5  ;;  %v3570_v42 = vld [vmem:[%s5685_s0 + $0x80] sm:$0xe] }
  0x14   :  { %3807 = vmatpush3.bf16.msra.mxu1 %v4082_v9  ;;  %3776 = vmatprep.subr.bf16.mxu0 %v4083_v10  ;;  %v136_v9 = vshll.u32 %v29_v3, 16  ;;  %v3287_v18 = vcombine.low %v117_v5, %v131_v11  ;;  %v203_v12 = vshrl.u32 %v34_v63, 16 }
  0x15   :  { %3808 = vmatprep.subr.bf16.mxu1 %v4084_v14  ;;  %v135_v20 = vrot.slane %v133_v8, 4 }
  0x16   :  { %v138_v21 = vrot.slane %v136_v9, 5  ;;  %v4100_v9 = vld [vmem:[%s5686_s1 + $0xe0] sm:$0xff]  }
  0x17   :  { %3777 = vmatpush3.bf16.msra.mxu0 %v4083_v10  ;;  %v3304_v10 = vcombine.low %v29_v3, %v30_v4  ;;  %v4429_v3 = vld [vmem:[%s5685_s0 + $0x5c] sm:$0x1] }
  0x18   :  { %3809 = vmatpush3.bf16.msra.mxu1 %v4084_v14  ;;  %3778 = vmatprep.subr.bf16.mxu0 %v4085_v17  ;;  %v147_v14 = vshrl.u32 %v30_v4, 16  ;;  %v139_v30 = vor.u32 %v138_v21, %v135_v20  ;;  %v36_v20 = vld [vmem:[%s5685_s0 + $0x68] sm:$0xf] }
  0x19   :  { %3810 = vmatprep.subr.bf16.mxu1 %v4086_v23 }
  0x1a   :  { %v149_v25 = vrot.slane %v147_v14, 4  ;;  %v35_v14 = vld [vmem:[%s5685_s0 + $0x60] sm:$0xf] }
  0x1b   :  { %3779 = vmatpush3.bf16.msra.mxu0 %v4085_v17  ;;  %v4370_v17 = vld [vmem:[%s5685_s0 + $0x30] sm:$0xf] }
  0x1c   :  { %3811 = vmatpush3.bf16.msra.mxu1 %v4086_v23  ;;  %3780 = vmatprep.subr.bf16.mxu0 %v4087_v41  ;;  %v4379_v23 = vld [vmem:[%s5685_s0 + $0x38] sm:$0xf]  ;;  %v161_v28 = vshrl.u32 %v4370_v17, 16  ;;  %v164_v35 = vshll.u32 %v4370_v17, 16  ;;  %v153_v37 = vor.u32 %v152_v26, %v149_v25  ;;  %v4449_v25 = vld [vmem:[%s5685_s0 + $0x64] sm:$0x1] }
  0x1d   :  { %3812 = vmatprep.subr.bf16.mxu1 %v4088_v51  ;;  %v175_v39 = vshrl.u32 %v4379_v23, 16  ;;  %v178_v40 = vshll.u32 %v4379_v23, 16  ;;  %v3305_v60 = vcombine.low %v4370_v17, %v4379_v23  ;;  %v4103_v26 = vld [vmem:[%s5686_s1 + $0x98] sm:$0xff]  }
  0x1e   :  { %v163_v38 = vrot.slane %v161_v28, 4  ;;  %v166_v43 = vrot.slane %v164_v35, 5  ;;  %v154_v46 = vrot.slane %v153_v37, 4  ;;  %v220_v35 = vshll.u32 %v35_v14, 16 }
  0x1f   :  { %3781 = vmatpush3.bf16.msra.mxu0 %v4087_v41  ;;  %v140_v41 = vrot.slane %v139_v30, 4  ;;  %v177_v47 = vrot.slane %v175_v39, 4  ;;  %v180_v49 = vrot.slane %v178_v40, 5  ;;  %v4457_v30 = vld [vmem:[%s5685_s0 + $0x6c] sm:$0x1]  ;;  %v226_v37 = vshll.u32 %v4449_v25, 16 }
  0x20   :  { %3813 = vmatpush3.bf16.msra.mxu1 %v4088_v51  ;;  %3830 = vmatprep.subr.bf16.mxu0 %v4091_v59  ;;  %v167_v52 = vor.u32 %v166_v43, %v163_v38  ;;  %v159_v56 = vsel %vm4323_vm2, %v154_v46, %v158_v32  ;;  %v217_v32 = vshrl.u32 %v35_v14, 16  ;;  %v231_v38 = vshrl.u32 %v36_v20, 16  ;;  %v4104_v40 = vld [vmem:[%s5686_s1 + $0xd8] sm:$0xff]   ;;  %v4105_v46 = vld [vmem:[%s5686_s1 + $0x90] sm:$0xff]  }
  0x21   :  { %3862 = vmatprep.subr.bf16.mxu1 %v4092_v62  ;;  %v145_v51 = vsel %vm4323_vm2, %v140_v41, %v144_v24  ;;  %v181_v57 = vor.u32 %v180_v49, %v177_v47  ;;  %v205_v24 = vrot.slane %v203_v12, 4  ;;  %v234_v39 = vshll.u32 %v36_v20, 16 }
  0x22   :  { %3783 = vmatmul.mubr.bf16.vlgmr.msra.gmra.mxu0 %v3287_v18  ;;  %v3288_v58 = vcombine.low %v145_v51, %v159_v56  ;;  %v206_v18 = vshll.u32 %v34_v63, 16  ;;  %v219_v43 = vrot.slane %v217_v32, 4  ;;  %v222_v44 = vrot.slane %v220_v35, 5 }
  0x23   :  { %3815 = vmatmul.mubr.bf16.vlgmr.msra.gmra.mxu1 %v3303_v2  ;;  %3831 = vmatpush3.bf16.msra.mxu0 %v4091_v59  ;;  %v168_v59 = vrot.slane %v167_v52, 4  ;;  %v182_v0 = vrot.slane %v181_v57, 4  ;;  %v4424_v2 = vld [vmem:[%s5685_s0 + $0x54] sm:$0x1]  ;;  %v228_v49 = vrot.slane %v226_v37, 5  ;;  %v236_v51 = vrot.slane %v234_v39, 5 }
  0x24   :  { %3863 = vmatpush3.bf16.msra.mxu1 %v4092_v62  ;;  %3832 = vmatprep.subr.bf16.mxu0 %v4093_v19  ;;  %v33_v62 = vld [vmem:[%s5685_s0 + $0x50] sm:$0xf]  ;;  %v198_v11 = vshll.u32 %v4424_v2, 16  ;;  %v208_v28 = vrot.slane %v206_v18, 5  ;;  %v3307_v57 = vcombine.low %v35_v14, %v36_v20  ;;  %v39_v18 = vld [vmem:[%s5685_s0 + $0x80] sm:$0xf] }
  0x25   :  { %3864 = vmatprep.subr.bf16.mxu1 %v4094_v29  ;;  %3818 = vmatprep.mubr.bf16.mxu1 %v3304_v10  ;;  %v189_v4 = vshrl.u32 %v33_v62, 16  ;;  %v3306_v5 = vcombine.low %v33_v62, %v34_v63  ;;  %v173_v8 = vsel %vm4323_vm2, %v168_v59, %v172_v54  ;;  %v192_v10 = vshll.u32 %v33_v62, 16  ;;  %v4106_v52 = vld [vmem:[%s5686_s1 + $0xd0] sm:$0xff]   ;;  %v4517_v39 = vld [vmem:[%s5685_s0 + $0x8c] sm:$0x1] }
  0x26   :  { %3786 = vmatprep.mubr.bf16.mxu0 %v3288_v58  ;;  %v187_v16 = vsel %vm4323_vm2, %v182_v0, %v186_v55  ;;  %v200_v23 = vrot.slane %v198_v11, 5  ;;  %v209_v41 = vor.u32 %v208_v28, %v205_v24  ;;  %v223_v55 = vor.u32 %v222_v44, %v219_v43  ;;  %v37_v63 = vld [vmem:[%s5685_s0 + $0x70] sm:$0xf]  ;;  %v38_v0 = vld [vmem:[%s5685_s0 + $0x78] sm:$0xf] }
  0x27   :  { %3833 = vmatpush3.bf16.msra.mxu0 %v4093_v19  ;;  %v191_v17 = vrot.slane %v189_v4, 4  ;;  %v212_v19 = vshll.u32 %v4429_v3, 16  ;;  %v3289_v21 = vcombine.low %v173_v8, %v187_v16  ;;  %v194_v22 = vrot.slane %v192_v10, 5  ;;  %v4484_v8 = vld [vmem:[%s5685_s0 + $0x74] sm:$0x1] }
  0x28   :  { %3865 = vmatpush3.bf16.msra.mxu1 %v4094_v29  ;;  %3834 = vmatprep.subr.bf16.mxu0 %v4097_v45  ;;  %v210_v54 = vrot.slane %v209_v41, 4  ;;  %v224_v62 = vrot.slane %v223_v55, 4  ;;  %v245_v10 = vshrl.u32 %v37_v63, 16  ;;  %v3308_v11 = vcombine.low %v37_v63, %v38_v0  ;;  %v40_v24 = vld [vmem:[%s5685_s0 + $0x88] sm:$0xf] }
  0x29   :  { %3866 = vmatprep.subr.bf16.mxu1 %v4098_v50  ;;  %v214_v29 = vrot.slane %v212_v19, 5  ;;  %v195_v36 = vor.u32 %v194_v22, %v191_v17  ;;  %v248_v14 = vshll.u32 %v37_v63, 16  ;;  %v254_v16 = vshll.u32 %v4484_v8, 16  ;;  %v4109_v19 = vld [vmem:[%s5686_s1 + $0x88] sm:$0xff]  }
  0x2a   :  { %3787 = vmatmul.mubr.bf16.gmra.mxu0 %v3289_v21  ;;  %v229_v12 = vsel %vm4323_vm2, %v224_v62, %v228_v49  ;;  %v259_v17 = vshrl.u32 %v38_v0, 16  ;;  %v247_v21 = vrot.slane %v245_v10, 4  ;;  %v262_v22 = vshll.u32 %v38_v0, 16  ;;  %v4530_v0 = vld [vmem:[%s5686_s1 + $0x138] sm:$0xff]  }
  0x2b   :  { %3819 = vmatmul.mubr.bf16.gmra.mxu1 %v3305_v60  ;;  %3835 = vmatpush3.bf16.msra.mxu0 %v4097_v45  ;;  %v240_v45 = vshll.u32 %v4457_v30, 16  ;;  %v196_v47 = vrot.slane %v195_v36, 4  ;;  %v751_v60 = vrot.slane %v4311_v34, 5  ;;  %v256_v32 = vrot.slane %v254_v16, 5  ;;  %v4512_v36 = vld [vmem:[%s5685_s0 + $0x84] sm:$0x1] }
  0x2c   :  { %3867 = vmatpush3.bf16.msra.mxu1 %v4098_v50  ;;  %3836 = vmatprep.subr.bf16.mxu0 %v4099_v61  ;;  %v233_v50 = vrot.slane %v231_v38, 4  ;;  %v261_v35 = vrot.slane %v259_v17, 4  ;;  %v264_v37 = vrot.slane %v262_v22, 5  ;;  %v276_v41 = vshll.u32 %v39_v18, 16  ;;  %v4116_v22 = vld [vmem:[%s5686_s1 + $0x178] sm:$0xff]  }
  0x2d   :  { %3868 = vmatprep.subr.bf16.mxu1 %v4100_v9  ;;  %3822 = vmatprep.mubr.bf16.mxu1 %v3306_v5  ;;  %v242_v56 = vrot.slane %v240_v45, 5  ;;  %v201_v58 = vsel %vm4323_vm2, %v196_v47, %v200_v23  ;;  %v282_v44 = vshll.u32 %v4512_v36, 16  ;;  %v287_v45 = vshrl.u32 %v40_v24, 16 }
  0x2e   :  { %v237_v59 = vor.u32 %v236_v51, %v233_v50  ;;  %v290_v47 = vshll.u32 %v40_v24, 16  ;;  %v265_v49 = vor.u32 %v264_v37, %v261_v35  ;;  %v278_v51 = vrot.slane %v276_v41, 5 }
  0x2f   :  { %3837 = vmatpush3.bf16.msra.mxu0 %v4099_v61  ;;  %v215_v61 = vsel %vm4323_vm2, %v210_v54, %v214_v29  ;;  %v250_v29 = vrot.slane %v248_v14, 5  ;;  %v296_v54 = vshll.u32 %v4517_v39, 16  ;;  %v3309_v63 = vcombine.low %v39_v18, %v40_v24  ;;  %v687_v14 = vld [vmem:[%s5685_s0 + $0x8] sm:$0xe] }
  0x30   :  { %3869 = vmatpush3.bf16.msra.mxu1 %v4100_v9  ;;  %3838 = vmatprep.subr.bf16.mxu0 %v4103_v26  ;;  %v3290_v4 = vcombine.low %v201_v58, %v215_v61  ;;  %v238_v5 = vrot.slane %v237_v59, 4  ;;  %v4489_v9 = vld [vmem:[%s5685_s0 + $0x7c] sm:$0x1]  ;;  %v292_v58 = vrot.slane %v290_v47, 5  ;;  %v266_v59 = vrot.slane %v265_v49, 4 }
  0x31   :  { %3870 = vmatprep.subr.bf16.mxu1 %v4104_v40  ;;  %v268_v23 = vshll.u32 %v4489_v9, 16  ;;  %v251_v43 = vor.u32 %v250_v29, %v247_v21  ;;  %v298_v62 = vrot.slane %v296_v54, 5  ;;  %v755_v17 = vrot.slane %v4357_v6, 5  ;;  %v4113_v24 = vld [vmem:[%s5685_s0 + $0x8] ss:$8 sps:$4 sm:$0xff]  }
  0x32   :  { %3790 = vmatprep.mubr.bf16.mxu0 %v3290_v4  ;;  %v243_v20 = vsel %vm4323_vm2, %v238_v5, %v242_v56  ;;  %v284_v56 = vrot.slane %v282_v44, 5  ;;  %v3319_v21 = vrot.slane %v687_v14, 9  ;;  %v688_v6 = vld [vmem:[%s5685_s0 + $0x10] sm:$0xe] }
  0x33   :  { %3823 = vmatmul.mubr.bf16.gmra.mxu1 %v3307_v57  ;;  %3839 = vmatpush3.bf16.msra.mxu0 %v4103_v26  ;;  %v4110_v26 = vld [vmem:[%s5686_s1 + $0xc8] sm:$0xff]   ;;  %v3291_v28 = vcombine.low %v229_v12, %v243_v20  ;;  %v270_v38 = vrot.slane %v268_v23, 5  ;;  %v252_v55 = vrot.slane %v251_v43, 4  ;;  %v289_v57 = vrot.slane %v287_v45, 4  ;;  %v686_v12 = vld [vmem:[%s5685_s0] sm:$0xe] }
  0x34   :  { %3871 = vmatpush3.bf16.msra.mxu1 %v4104_v40  ;;  %3840 = vmatprep.subr.bf16.mxu0 %v4105_v46  ;;  %v273_v40 = vshrl.u32 %v39_v18, 16  ;;  %v3318_v20 = vrot.slane %v686_v12, 9  ;;  %v744_v29 = vsel %vm4544_vm5, %v3319_v21, %v743_v53  ;;  %v3320_v35 = vrot.slane %v688_v6, 9  ;;  %v690_v43 = vld [vmem:[%s5685_s0 + $0x20] sm:$0xe] }
  0x35   :  { %3872 = vmatprep.subr.bf16.mxu1 %v4106_v52  ;;  %3826 = vmatprep.mubr.bf16.mxu1 %v3308_v11  ;;  %v257_v4 = vsel %vm4323_vm2, %v252_v55, %v256_v32  ;;  %v293_v5 = vor.u32 %v292_v58, %v289_v57  ;;  %v271_v10 = vsel %vm4323_vm2, %v266_v59, %v270_v38  ;;  %v689_v32 = vld [vmem:[%s5685_s0 + $0x18] sm:$0xe]  ;;  %v3322_v44 = vrot.slane %v690_v43, 9  ;;  %v692_v49 = vld [vmem:[%s5685_s0 + $0x30] sm:$0xe]  ;;  %v4121_v59 = vld [vmem:[%s5686_s1 + $0x128] sm:$0xff]  }
  0x36   :  { %3791 = vmatmul.mubr.bf16.gmra.mxu0 %v3291_v28  ;;  %v275_v50 = vrot.slane %v273_v40, 4  ;;  %v3292_v18 = vcombine.low %v257_v4, %v271_v10  ;;  %v740_v28 = vsel %vm4544_vm5, %v3318_v20, %v739_v48  ;;  %v3321_v40 = vrot.slane %v689_v32, 9  ;;  %v699_v32 = vld [vmem:[%s5685_s0 + $0x78] sm:$0xe] }
  0x37   :  { %3841 = vmatpush3.bf16.msra.mxu0 %v4105_v46  ;;  %v4111_v46 = vld [vmem:[%s5686_s1 + $0x80] sm:$0xff]   ;;  %v3334_v38 = vcombine.low %v740_v28, %v744_v29  ;;  %v759_v48 = vrot.slane %v4362_v7, 5  ;;  %v748_v53 = vsel %vm4544_vm5, %v3320_v35, %v747_v1  ;;  %v691_v7 = vld [vmem:[%s5685_s0 + $0x28] sm:$0xe]  ;;  %v767_v45 = vrot.slane %v4393_v33, 5 }
  0x38   :  { %3873 = vmatpush3.bf16.msra.mxu1 %v4106_v52  ;;  %3842 = vmatprep.subr.bf16.mxu0 %v4109_v19  ;;  %v4112_v52 = vld [vmem:[%s5686_s1 + $0xc0] sm:$0xff]   ;;  %v279_v61 = vor.u32 %v278_v51, %v275_v50  ;;  %v752_v41 = vsel %vm4544_vm5, %v3321_v40, %v751_v60  ;;  %v4122_v1 = vld [vmem:[%s5686_s1 + $0x168] sm:$0xff]   ;;  %v3323_v34 = vrot.slane %v691_v7, 9  ;;  %v756_v27 = vsel %vm4544_vm5, %v3322_v44, %v755_v17  ;;  %v693_v50 = vld [vmem:[%s5685_s0 + $0x38] sm:$0xe] }
  0x39   :  { %3874 = vmatprep.subr.bf16.mxu1 %v4110_v26  ;;  %3794 = vmatprep.mubr.bf16.mxu0 %v3292_v18  ;;  %v4119_v60 = vld [vmem:[%s5685_s0 + $0x28] ss:$8 sps:$4 sm:$0xff]   ;;  %v3335_v47 = vcombine.low %v748_v53, %v752_v41  ;;  %v3324_v51 = vrot.slane %v692_v49, 9  ;;  %v3325_v54 = vrot.slane %v693_v50, 9  ;;  %v771_v4 = vrot.slane %v4424_v2, 5  ;;  %v4123_v17 = vld [vmem:[%s5686_s1 + $0x120] sm:$0xff]  }
  0x3a   :  { %v280_v11 = vrot.slane %v279_v61, 4  ;;  %v760_v33 = vsel %vm4544_vm5, %v3323_v34, %v759_v48  ;;  %v694_v61 = vld [vmem:[%s5685_s0 + $0x50] sm:$0xe]  ;;  %v779_v10 = vrot.slane %v4449_v25, 5  ;;  %v783_v12 = vrot.slane %v4457_v30, 5 }
  0x3b   :  { %3843 = vmatpush3.bf16.msra.mxu0 %v4109_v19  ;;  %3827 = vmatmul.mubr.bf16.gmra.mxu1 %v3309_v63  ;;  %v294_v19 = vrot.slane %v293_v5, 4  ;;  %v3336_v55 = vcombine.low %v756_v27, %v760_v33  ;;  %v764_v57 = vsel %vm4544_vm5, %v3324_v51, %v763_v31  ;;  %v768_v58 = vsel %vm4544_vm5, %v3325_v54, %v767_v45  ;;  %v4125_v2 = vld [vmem:[%s5685_s0 + $0x58] ss:$8 sps:$4 sm:$0xff]   ;;  %v697_v25 = vld [vmem:[%s5685_s0 + $0x68] sm:$0xe]  ;;  %v4129_v53 = vld [vmem:[%s5686_s1 + $0x110] sm:$0xff]  }
  0x3c   :  { %3875 = vmatpush3.bf16.msra.mxu1 %v4110_v26  ;;  %3844 = vmatprep.subr.bf16.mxu0 %v4111_v46  ;;  %v285_v23 = vsel %vm4323_vm2, %v280_v11, %v284_v56  ;;  %v4124_v56 = vld [vmem:[%s5686_s1 + $0x160] sm:$0xff]   ;;  %v3326_v63 = vrot.slane %v694_v61, 9  ;;  %v775_v5 = vrot.slane %v4429_v3, 5  ;;  %v3337_v30 = vcombine.low %v764_v57, %v768_v58  ;;  %v698_v28 = vld [vmem:[%s5685_s0 + $0x70] sm:$0xe] }
  0x3d   :  { %3876 = vmatprep.subr.bf16.mxu1 %v4112_v52  ;;  %v299_v26 = vsel %vm4323_vm2, %v294_v19, %v298_v62  ;;  %3878 = vmatprep.mubr.bf16.mxu1 %v4113_v24  ;;  %v695_v62 = vld [vmem:[%s5685_s0 + $0x58] sm:$0xe]  ;;  %v696_v3 = vld [vmem:[%s5685_s0 + $0x60] sm:$0xe]  ;;  %v3329_v20 = vrot.slane %v697_v25, 9  ;;  %v791_v29 = vrot.slane %v4489_v9, 5 }
  0x3e   :  { %v3293_v37 = vcombine.low %v285_v23, %v299_v26  ;;  %v3327_v11 = vrot.slane %v695_v62, 9  ;;  %v772_v14 = vsel %vm4544_vm5, %v3326_v63, %v771_v4  ;;  %v3328_v19 = vrot.slane %v696_v3, 9  ;;  %v4130_v26 = vld [vmem:[%s5686_s1 + $0x150] sm:$0xff]   ;;  %v701_v48 = vld [vmem:[%s5685_s0 + $0x88] sm:$0xe]  ;;  %v4136_v45 = vld [vmem:[%s5686_s1 + $0x140] sm:$0xff]  }
  0x3f   :  { %3845 = vmatpush3.bf16.msra.mxu0 %v4111_v46  ;;  %v4117_v46 = vld [vmem:[%s5686_s1 + $0x130] sm:$0xff]   ;;  %v787_v23 = vrot.slane %v4484_v8, 5  ;;  %v784_v6 = vsel %vm4544_vm5, %v3329_v20, %v783_v12  ;;  %v4127_v8 = vld [vmem:[%s5686_s1 + $0x118] sm:$0xff]   ;;  %v3330_v35 = vrot.slane %v698_v28, 9  ;;  %v795_v9 = vrot.slane %v4512_v36, 5 }
  0x40   :  { %3877 = vmatpush3.bf16.msra.mxu1 %v4112_v52  ;;  %3894 = vmatprep.subr.bf16.mxu0 %v4530_v0  ;;  %v4120_v52 = vld [vmem:[%s5685_s0 + $0x38] ss:$8 sps:$4 sm:$0xff]   ;;  %v776_v18 = vsel %vm4544_vm5, %v3327_v11, %v775_v5  ;;  %v780_v24 = vsel %vm4544_vm5, %v3328_v19, %v779_v10  ;;  %v3333_v43 = vrot.slane %v701_v48, 9  ;;  %v799_v7 = vrot.slane %v4517_v39, 5  ;;  %v4132_v31 = vld [vmem:[%s5685_s0 + $0x88] ss:$8 sps:$4 sm:$0xff]  }
  0x41   :  { %3926 = vmatprep.subr.bf16.mxu1 %v4116_v22  ;;  %3795 = vmatmul.mubr.bf16.gmra.mxu0 %v3293_v37  ;;  %v3338_v21 = vcombine.low %v772_v14, %v776_v18  ;;  %v3331_v37 = vrot.slane %v699_v32, 9  ;;  %v3339_v40 = vcombine.low %v780_v24, %v784_v6  ;;  %v4133_v39 = vld [vmem:[%s5686_s1 + $0x108] sm:$0xff]   ;;  %v3384_v27 = vld [vmem:[%s5685_s0 + $0x10] sm:$0xf]  ;;  %v3385_v49 = vld [vmem:[%s5685_s0 + $0x14] sm:$0x1] }
  0x42   :  { %3846 = vmatprep.mubr.bf16.mxu0 %v3334_v38  ;;  %v4131_v38 = vld [vmem:[%s5685_s0 + $0x78] ss:$8 sps:$4 sm:$0xff]   ;;  %v1299_v54 = vshrl.u32 %v3384_v27, 16  ;;  %v3430_v57 = vld [vmem:[%s5685_s0 + $0x8] sm:$0xe]  ;;  %v1771_v25 = vrot.slane %v3385_v49, 5 }
  0x43   :  { %3879 = vmatmul.mubr.bf16.vlgmr.msra.gmra.mxu1 %v4114_v13  ;;  %v788_v13 = vsel %vm4544_vm5, %v3330_v35, %v787_v23  ;;  %v792_v36 = vsel %vm4544_vm5, %v3331_v37, %v791_v29  ;;  %v3431_v58 = vld [vmem:[%s5685_s0 + $0x10] sm:$0xe]  ;;  %v3386_v5 = vld [vmem:[%s5685_s0 + $0x18] sm:$0xf]  ;;  %v3446_v12 = vrot.slane %v3430_v57, 9 }
  0x44   :  { %3927 = vmatpush3.bf16.msra.mxu1 %v4116_v22  ;;  %3882 = vmatprep.mubr.bf16.mxu1 %v4119_v60  ;;  %v4126_v22 = vld [vmem:[%s5685_s0 + $0x68] ss:$8 sps:$4 sm:$0xff]   ;;  %v3340_v44 = vcombine.low %v788_v13, %v792_v36  ;;  %v800_v60 = vsel %vm4544_vm5, %v3333_v43, %v799_v7  ;;  %v1301_v4 = vrot.slane %v1299_v54, 4  ;;  %v3387_v14 = vld [vmem:[%s5685_s0 + $0x1c] sm:$0x1]  ;;  %v3447_v3 = vrot.slane %v3431_v58, 9 }
  0x45   :  { %3928 = vmatprep.subr.bf16.mxu1 %v4118_v15  ;;  %v1313_v20 = vshrl.u32 %v3386_v5, 16  ;;  %v3433_v23 = vld [vmem:[%s5685_s0 + $0x20] sm:$0xe]  ;;  %v4138_v37 = vld [vmem:[%s5686_s1 + $0x1f8] sm:$0xff]  }
  0x46   :  { %v1772_v6 = vsel %vm4544_vm5, %v3447_v3, %v1771_v25  ;;  %v4142_v3 = vld [vmem:[%s5686_s1 + $0x1e8] sm:$0xff]  }
  0x47   :  { %v1315_v32 = vrot.slane %v1313_v20, 4  ;;  %v3396_v20 = vld [vmem:[%s5685_s0 + $0x40] sm:$0xf] }
  0x48   :  { %3929 = vmatpush3.bf16.msra.mxu1 %v4118_v15  ;;  %v700_v15 = vld [vmem:[%s5685_s0 + $0x80] sm:$0xe] }
  0x49   :  { %3847 = vmatmul.mubr.bf16.vlgmr.msra.gmra.mxu0 %v3335_v47  ;;  %3930 = vmatprep.subr.bf16.mxu1 %v4122_v1  ;;  %v3332_v41 = vrot.slane %v700_v15, 9  ;;  %v3382_v47 = vld [vmem:[%s5685_s0 + $0x8] sm:$0xf]  ;;  %v4765_v15 = vld [vmem:[%s5686_s1 + $0x1b8] sm:$0xff]  }
  0x4a   :  { %3895 = vmatpush3.bf16.msra.mxu0 %v4530_v0  ;;  %3850 = vmatprep.mubr.bf16.mxu0 %v3336_v55  ;;  %v4128_v0 = vld [vmem:[%s5686_s1 + $0x158] sm:$0xff]   ;;  %v1285_v50 = vshrl.u32 %v3382_v47, 16  ;;  %v1288_v33 = vshll.u32 %v3382_v47, 16  ;;  %v1302_v55 = vshll.u32 %v3384_v27, 16  ;;  %v3390_v47 = vld [vmem:[%s5685_s0 + $0x28] sm:$0xf] }
  0x4b   :  { %3896 = vmatprep.subr.bf16.mxu0 %v4117_v46  ;;  %3883 = vmatmul.mubr.bf16.gmra.mxu1 %v4120_v52  ;;  %v796_v34 = vsel %vm4544_vm5, %v3332_v41, %v795_v9  ;;  %v1344_v54 = vshll.u32 %v3390_v47, 16 }
  0x4c   :  { %3931 = vmatpush3.bf16.msra.mxu1 %v4122_v1  ;;  %3886 = vmatprep.mubr.bf16.mxu1 %v4125_v2  ;;  %v4134_v1 = vld [vmem:[%s5686_s1 + $0x148] sm:$0xff]   ;;  %v3341_v52 = vcombine.low %v796_v34, %v800_v60  ;;  %v1287_v61 = vrot.slane %v1285_v50, 4  ;;  %v1290_v62 = vrot.slane %v1288_v33, 5  ;;  %v1304_v10 = vrot.slane %v1302_v55, 5  ;;  %v3392_v50 = vld [vmem:[%s5685_s0 + $0x30] sm:$0xf] }
  0x4d   :  { %3932 = vmatprep.subr.bf16.mxu1 %v4124_v56  ;;  %v3393_v33 = vld [vmem:[%s5685_s0 + $0x34] sm:$0x1]  ;;  %v1355_v58 = vshrl.u32 %v3392_v50, 16 }
  0x4e   :  { %3897 = vmatpush3.bf16.msra.mxu0 %v4117_v46  ;;  %v3383_v46 = vld [vmem:[%s5685_s0 + $0xc] sm:$0x1]  ;;  %v1291_v2 = vor.u32 %v1290_v62, %v1287_v61  ;;  %v1305_v18 = vor.u32 %v1304_v10, %v1301_v4  ;;  %v4139_v61 = vld [vmem:[%s5686_s1 + $0x1b0] sm:$0xff]   ;;  %v1358_v4 = vshll.u32 %v3392_v50, 16 }
  0x4f   :  { %3898 = vmatprep.subr.bf16.mxu0 %v4121_v59  ;;  %v1294_v51 = vshll.u32 %v3383_v46, 16  ;;  %v3435_v10 = vld [vmem:[%s5685_s0 + $0x30] sm:$0xe] }
  0x50   :  { %3933 = vmatpush3.bf16.msra.mxu1 %v4124_v56  ;;  %v1308_v56 = vshll.u32 %v3385_v49, 16  ;;  %v1292_v24 = vrot.slane %v1291_v2, 4  ;;  %v1306_v29 = vrot.slane %v1305_v18, 4  ;;  %v3394_v2 = vld [vmem:[%s5685_s0 + $0x38] sm:$0xf] }
  0x51   :  { %3851 = vmatmul.mubr.bf16.gmra.mxu0 %v3337_v30  ;;  %3934 = vmatprep.subr.bf16.mxu1 %v4128_v0  ;;  %v1296_v63 = vrot.slane %v1294_v51, 5  ;;  %v3388_v30 = vld [vmem:[%s5685_s0 + $0x20] sm:$0xf]  ;;  %v1341_v51 = vshrl.u32 %v3390_v47, 16 }
  0x52   :  { %3899 = vmatpush3.bf16.msra.mxu0 %v4121_v59  ;;  %3854 = vmatprep.mubr.bf16.mxu0 %v3338_v21  ;;  %v4135_v59 = vld [vmem:[%s5686_s1 + $0x100] sm:$0xff]   ;;  %v1310_v11 = vrot.slane %v1308_v56, 5  ;;  %v1316_v21 = vshll.u32 %v3386_v5, 16  ;;  %v1327_v28 = vshrl.u32 %v3388_v30, 16  ;;  %v1330_v13 = vshll.u32 %v3388_v30, 16  ;;  %v4140_v56 = vld [vmem:[%s5686_s1 + $0x1f0] sm:$0xff]  }
  0x53   :  { %3900 = vmatprep.subr.bf16.mxu0 %v4123_v17  ;;  %3887 = vmatmul.mubr.bf16.gmra.mxu1 %v4126_v22  ;;  %v3432_v22 = vld [vmem:[%s5685_s0 + $0x18] sm:$0xe]  ;;  %v1343_v62 = vrot.slane %v1341_v51, 4  ;;  %v1364_v5 = vshll.u32 %v3393_v33, 16 }
  0x54   :  { %3935 = vmatpush3.bf16.msra.mxu1 %v4128_v0  ;;  %3890 = vmatprep.mubr.bf16.mxu1 %v4131_v38  ;;  %v1767_v0 = vrot.slane %v3383_v46, 5  ;;  %v1318_v35 = vrot.slane %v1316_v21, 5  ;;  %v1297_v38 = vsel %vm4323_vm2, %v1292_v24, %v1296_v63  ;;  %v1311_v48 = vsel %vm4323_vm2, %v1306_v29, %v1310_v11  ;;  %v3391_v46 = vld [vmem:[%s5685_s0 + $0x2c] sm:$0x1]  ;;  %v3397_v24 = vld [vmem:[%s5685_s0 + $0x44] sm:$0x1] }
  0x55   :  { %3936 = vmatprep.subr.bf16.mxu1 %v4130_v26  ;;  %v3448_v41 = vrot.slane %v3432_v22, 9  ;;  %v3414_v43 = vcombine.low %v1297_v38, %v1311_v48  ;;  %v1332_v7 = vrot.slane %v1330_v13, 5  ;;  %v1350_v57 = vshll.u32 %v3391_v46, 16  ;;  %v3437_v13 = vld [vmem:[%s5685_s0 + $0x40] sm:$0xe] }
  0x56   :  { %3901 = vmatpush3.bf16.msra.mxu0 %v4123_v17  ;;  %v3389_v17 = vld [vmem:[%s5685_s0 + $0x24] sm:$0x1]  ;;  %v1768_v19 = vsel %vm4544_vm5, %v3446_v12, %v1767_v0  ;;  %v1346_v63 = vrot.slane %v1344_v54, 5  ;;  %v1357_v0 = vrot.slane %v1355_v58, 4  ;;  %v1366_v18 = vrot.slane %v1364_v5, 5  ;;  %v4145_v5 = vld [vmem:[%s5686_s1 + $0x198] sm:$0xff]  }
  0x57   :  { %3902 = vmatprep.subr.bf16.mxu0 %v4127_v8  ;;  %v1336_v36 = vshll.u32 %v3389_v17, 16  ;;  %v1779_v60 = vrot.slane %v3389_v17, 5  ;;  %v1352_v12 = vrot.slane %v1350_v57, 5  ;;  %v1360_v17 = vrot.slane %v1358_v4, 5  ;;  %v4144_v48 = vld [vmem:[%s5686_s1 + $0x1e0] sm:$0xff]  }
  0x58   :  { %3937 = vmatpush3.bf16.msra.mxu1 %v4130_v26  ;;  %v1322_v26 = vshll.u32 %v3387_v14, 16  ;;  %v1347_v30 = vor.u32 %v1346_v63, %v1343_v62  ;;  %v1783_v21 = vrot.slane %v3391_v46, 5  ;;  %v3451_v22 = vrot.slane %v3435_v10, 9  ;;  %v3398_v54 = vld [vmem:[%s5685_s0 + $0x58] sm:$0xf] }
  0x59   :  { %3855 = vmatmul.mubr.bf16.gmra.mxu0 %v3339_v40  ;;  %3938 = vmatprep.subr.bf16.mxu1 %v4134_v1  ;;  %v1329_v40 = vrot.slane %v1327_v28, 4  ;;  %v1338_v34 = vrot.slane %v1336_v36, 5  ;;  %v1361_v28 = vor.u32 %v1360_v17, %v1357_v0  ;;  %v1372_v29 = vshll.u32 %v3394_v2, 16  ;;  %v3401_v57 = vld [vmem:[%s5685_s0 + $0x64] sm:$0x1] }
  0x5a   :  { %3903 = vmatpush3.bf16.msra.mxu0 %v4127_v8  ;;  %3858 = vmatprep.mubr.bf16.mxu0 %v3340_v44  ;;  %v3462_v8 = vcombine.low %v1768_v19, %v1772_v6  ;;  %v1324_v9 = vrot.slane %v1322_v26, 5  ;;  %v1775_v44 = vrot.slane %v3387_v14, 5  ;;  %v3395_v19 = vld [vmem:[%s5685_s0 + $0x3c] sm:$0x1]  ;;  %v1369_v6 = vshrl.u32 %v3394_v2, 16 }
  0x5b   :  { %3904 = vmatprep.subr.bf16.mxu0 %v4129_v53  ;;  %3891 = vmatmul.mubr.bf16.gmra.mxu1 %v4132_v31  ;;  %v3449_v31 = vrot.slane %v3433_v23, 9  ;;  %v1787_v23 = vrot.slane %v3393_v33, 5  ;;  %v1348_v26 = vrot.slane %v1347_v30, 4  ;;  %v1795_v51 = vrot.slane %v3397_v24, 5  ;;  %v3438_v63 = vld [vmem:[%s5685_s0 + $0x58] sm:$0xe] }
  0x5c   :  { %3939 = vmatpush3.bf16.msra.mxu1 %v4134_v1  ;;  %3942 = vmatprep.mubr.bf16.mxu1 %v3462_v8  ;;  %v1378_v8 = vshll.u32 %v3395_v19, 16  ;;  %v1400_v62 = vshll.u32 %v3398_v54, 16  ;;  %v3439_v4 = vld [vmem:[%s5685_s0 + $0x60] sm:$0xe]  ;;  %v4146_v2 = vld [vmem:[%s5686_s1 + $0x1d8] sm:$0xff]   ;;  %v1420_v17 = vshll.u32 %v3401_v57, 16 }
  0x5d   :  { %3940 = vmatprep.subr.bf16.mxu1 %v4136_v45  ;;  %v1780_v49 = vsel %vm4544_vm5, %v3449_v31, %v1779_v60  ;;  %v1788_v38 = vsel %vm4544_vm5, %v3451_v22, %v1787_v23  ;;  %v1392_v31 = vshll.u32 %v3397_v24, 16  ;;  %v3454_v22 = vrot.slane %v3438_v63, 9  ;;  %v3404_v23 = vld [vmem:[%s5685_s0 + $0x70] sm:$0xf]  ;;  %v3408_v63 = vld [vmem:[%s5685_s0 + $0x80] sm:$0xf] }
  0x5e   :  { %3905 = vmatpush3.bf16.msra.mxu0 %v4129_v53  ;;  %v1319_v53 = vor.u32 %v1318_v35, %v1315_v32  ;;  %v3436_v32 = vld [vmem:[%s5685_s0 + $0x38] sm:$0xe]  ;;  %v4141_v35 = vld [vmem:[%s5686_s1 + $0x1a8] sm:$0xff]  }
  0x5f   :  { %3906 = vmatprep.subr.bf16.mxu0 %v4133_v39  ;;  %v3452_v60 = vrot.slane %v3436_v32, 9  ;;  %v1394_v46 = vrot.slane %v1392_v31, 5 }
  0x60   :  { %3941 = vmatpush3.bf16.msra.mxu1 %v4136_v45  ;;  %v1320_v1 = vrot.slane %v1319_v53, 4  ;;  %v1776_v45 = vsel %vm4544_vm5, %v3448_v41, %v1775_v44  ;;  %v1362_v53 = vrot.slane %v1361_v28, 4  ;;  %v1374_v41 = vrot.slane %v1372_v29, 5  ;;  %v3405_v29 = vld [vmem:[%s5685_s0 + $0x74] sm:$0x1] }
  0x61   :  { %3859 = vmatmul.mubr.bf16.gmra.mxu0 %v3341_v52  ;;  %3990 = vmatprep.subr.bf16.mxu1 %v4138_v37  ;;  %v3463_v55 = vcombine.low %v1776_v45, %v1780_v49  ;;  %v1386_v44 = vshll.u32 %v3396_v20, 16  ;;  %v4143_v49 = vld [vmem:[%s5686_s1 + $0x1a0] sm:$0xff]   ;;  %v1422_v28 = vrot.slane %v1420_v17, 5 }
  0x62   :  { %3907 = vmatpush3.bf16.msra.mxu0 %v4133_v39  ;;  %3910 = vmatprep.mubr.bf16.mxu0 %v3414_v43  ;;  %v1333_v39 = vor.u32 %v1332_v7, %v1329_v40  ;;  %v1325_v27 = vsel %vm4323_vm2, %v1320_v1, %v1324_v9  ;;  %v1371_v9 = vrot.slane %v1369_v6, 4  ;;  %v1383_v40 = vshrl.u32 %v3396_v20, 16 }
  0x63   :  { %3908 = vmatprep.subr.bf16.mxu0 %v4135_v59  ;;  %3943 = vmatmul.mubr.bf16.vlgmr.msra.gmra.mxu1 %v3463_v55  ;;  %v1380_v43 = vrot.slane %v1378_v8, 5  ;;  %v1367_v1 = vsel %vm4323_vm2, %v1362_v53, %v1366_v18  ;;  %v1388_v47 = vrot.slane %v1386_v44, 5  ;;  %v3399_v55 = vld [vmem:[%s5685_s0 + $0x5c] sm:$0x1]  ;;  %v3403_v18 = vld [vmem:[%s5685_s0 + $0x6c] sm:$0x1] }
  0x64   :  { %v1334_v52 = vrot.slane %v1333_v39, 4  ;;  %3991 = vmatpush3.bf16.msra.mxu1 %v4138_v37  ;;  %v1385_v7 = vrot.slane %v1383_v40, 4  ;;  %v1791_v39 = vrot.slane %v3395_v19, 5  ;;  %v4147_v8 = vld [vmem:[%s5686_s1 + $0x190] sm:$0xff]   ;;  %v1799_v32 = vrot.slane %v3399_v55, 5 }
  0x65   :  { %3992 = vmatprep.subr.bf16.mxu1 %v4140_v56  ;;  %v3441_v53 = vld [vmem:[%s5685_s0 + $0x70] sm:$0xe]  ;;  %v1439_v44 = vshrl.u32 %v3404_v23, 16 }
  0x66   :  { %3909 = vmatpush3.bf16.msra.mxu0 %v4135_v59  ;;  %v3434_v59 = vld [vmem:[%s5685_s0 + $0x28] sm:$0xe]  ;;  %v1339_v11 = vsel %vm4323_vm2, %v1334_v52, %v1338_v34  ;;  %v1375_v34 = vor.u32 %v1374_v41, %v1371_v9  ;;  %v1792_v33 = vsel %vm4544_vm5, %v3452_v60, %v1791_v39  ;;  %v1389_v52 = vor.u32 %v1388_v47, %v1385_v7 }
  0x67   :  { %3958 = vmatprep.subr.bf16.mxu0 %v4765_v15  ;;  %v3450_v14 = vrot.slane %v3434_v59, 9  ;;  %v3415_v25 = vcombine.low %v1325_v27, %v1339_v11  ;;  %v3453_v27 = vrot.slane %v3437_v13, 9  ;;  %v3440_v9 = vld [vmem:[%s5685_s0 + $0x68] sm:$0xe]  ;;  %v1800_v41 = vsel %vm4544_vm5, %v3454_v22, %v1799_v32  ;;  %v4151_v22 = vld [vmem:[%s5686_s1 + $0x180] sm:$0xff]  }
  0x68   :  { %3993 = vmatpush3.bf16.msra.mxu1 %v4140_v56  ;;  %v1376_v50 = vrot.slane %v1375_v34, 4  ;;  %v3400_v56 = vld [vmem:[%s5685_s0 + $0x60] sm:$0xf]  ;;  %v1390_v10 = vrot.slane %v1389_v52, 4  ;;  %v1442_v47 = vshll.u32 %v3404_v23, 16 }
  0x69   :  { %3911 = vmatmul.mubr.bf16.vlgmr.msra.gmra.mxu0 %v3415_v25  ;;  %v1784_v37 = vsel %vm4544_vm5, %v3450_v14, %v1783_v21  ;;  %3994 = vmatprep.subr.bf16.mxu1 %v4142_v3  ;;  %v1796_v59 = vsel %vm4544_vm5, %v3453_v27, %v1795_v51  ;;  %v1411_v0 = vshrl.u32 %v3400_v56, 16  ;;  %v3402_v14 = vld [vmem:[%s5685_s0 + $0x68] sm:$0xf]  ;;  %v1402_v25 = vrot.slane %v1400_v62, 5  ;;  %v3407_v62 = vld [vmem:[%s5685_s0 + $0x7c] sm:$0x1] }
  0x6a   :  { %3959 = vmatpush3.bf16.msra.mxu0 %v4765_v15  ;;  %v1353_v15 = vsel %vm4323_vm2, %v1348_v26, %v1352_v12  ;;  %v3464_v36 = vcombine.low %v1784_v37, %v1788_v38  ;;  %v1381_v58 = vsel %vm4323_vm2, %v1376_v50, %v1380_v43  ;;  %v3465_v11 = vcombine.low %v1792_v33, %v1796_v59 }
  0x6b   :  { %3960 = vmatprep.subr.bf16.mxu0 %v4139_v61  ;;  %v3416_v45 = vcombine.low %v1353_v15, %v1367_v1  ;;  %v1406_v12 = vshll.u32 %v3399_v55, 16  ;;  %v1414_v30 = vshll.u32 %v3400_v56, 16  ;;  %v1395_v19 = vsel %vm4323_vm2, %v1390_v10, %v1394_v46  ;;  %v3406_v56 = vld [vmem:[%s5685_s0 + $0x78] sm:$0xf] }
  0x6c   :  { %3946 = vmatprep.mubr.bf16.mxu1 %v3464_v36  ;;  %3995 = vmatpush3.bf16.msra.mxu1 %v4142_v3  ;;  %v1413_v21 = vrot.slane %v1411_v0, 4  ;;  %v3417_v24 = vcombine.low %v1381_v58, %v1395_v19  ;;  %v1803_v37 = vrot.slane %v3401_v57, 5  ;;  %v1425_v38 = vshrl.u32 %v3402_v14, 16  ;;  %v4148_v36 = vld [vmem:[%s5686_s1 + $0x1d0] sm:$0xff]   ;;  %v4149_v57 = vld [vmem:[%s5686_s1 + $0x188] sm:$0xff]  }
  0x6d   :  { %3914 = vmatprep.mubr.bf16.mxu0 %v3416_v45  ;;  %3996 = vmatprep.subr.bf16.mxu1 %v4144_v48  ;;  %v1408_v20 = vrot.slane %v1406_v12, 5  ;;  %v1416_v26 = vrot.slane %v1414_v30, 5  ;;  %v1434_v15 = vshll.u32 %v3403_v18, 16  ;;  %v1441_v45 = vrot.slane %v1439_v44, 4  ;;  %v4150_v0 = vld [vmem:[%s5686_s1 + $0x1c8] sm:$0xff]  }
  0x6e   :  { %3961 = vmatpush3.bf16.msra.mxu0 %v4139_v61  ;;  %v1397_v61 = vshrl.u32 %v3398_v54, 16  ;;  %3947 = vmatmul.mubr.bf16.gmra.mxu1 %v3465_v11  ;;  %v1427_v7 = vrot.slane %v1425_v38, 4  ;;  %v1448_v46 = vshll.u32 %v3405_v29, 16  ;;  %v3456_v50 = vrot.slane %v3440_v9, 9  ;;  %v3442_v30 = vld [vmem:[%s5685_s0 + $0x78] sm:$0xe] }
  0x6f   :  { %3962 = vmatprep.subr.bf16.mxu0 %v4141_v35  ;;  %v1417_v13 = vor.u32 %v1416_v26, %v1413_v21  ;;  %v1436_v39 = vrot.slane %v1434_v15, 5  ;;  %v1807_v33 = vrot.slane %v3403_v18, 5  ;;  %v1444_v54 = vrot.slane %v1442_v47, 5  ;;  %v3443_v21 = vld [vmem:[%s5685_s0 + $0x80] sm:$0xe] }
  0x70   :  { %3997 = vmatpush3.bf16.msra.mxu1 %v4144_v48  ;;  %v1399_v3 = vrot.slane %v1397_v61, 4  ;;  %v1428_v48 = vshll.u32 %v3402_v14, 16  ;;  %v1450_v52 = vrot.slane %v1448_v46, 5  ;;  %v3457_v55 = vrot.slane %v3441_v53, 9  ;;  %v3412_v38 = vld [vmem:[%s5685_s0 + $0x90] sm:$0xf] }
  0x71   :  { %3998 = vmatprep.subr.bf16.mxu1 %v4146_v2  ;;  %3915 = vmatmul.mubr.bf16.gmra.mxu0 %v3417_v24  ;;  %v1418_v1 = vrot.slane %v1417_v13, 4  ;;  %v1808_v59 = vsel %vm4544_vm5, %v3456_v50, %v1807_v33  ;;  %v1811_v61 = vrot.slane %v3405_v29, 5  ;;  %v1453_v10 = vshrl.u32 %v3406_v56, 16  ;;  %v3413_v15 = vld [vmem:[%s5685_s0 + $0x94] sm:$0x1] }
  0x72   :  { %3963 = vmatpush3.bf16.msra.mxu0 %v4141_v35  ;;  %v1403_v6 = vor.u32 %v1402_v25, %v1399_v3  ;;  %v3455_v35 = vrot.slane %v3439_v4, 9  ;;  %v1430_v60 = vrot.slane %v1428_v48, 5  ;;  %v1445_v4 = vor.u32 %v1444_v54, %v1441_v45  ;;  %v3445_v44 = vld [vmem:[%s5685_s0 + $0x90] sm:$0xe] }
  0x73   :  { %3964 = vmatprep.subr.bf16.mxu0 %v4143_v49  ;;  %v1423_v27 = vsel %vm4323_vm2, %v1418_v1, %v1422_v28  ;;  %v1456_v11 = vshll.u32 %v3406_v56, 16  ;;  %v1462_v12 = vshll.u32 %v3407_v62, 16  ;;  %v1467_v3 = vshrl.u32 %v3408_v63, 16  ;;  %v3410_v28 = vld [vmem:[%s5685_s0 + $0x88] sm:$0xf] }
  0x74   :  { %v1404_v40 = vrot.slane %v1403_v6, 4  ;;  %v1804_v43 = vsel %vm4544_vm5, %v3455_v35, %v1803_v37  ;;  %3999 = vmatpush3.bf16.msra.mxu1 %v4146_v2  ;;  %v1812_v2 = vsel %vm4544_vm5, %v3457_v55, %v1811_v61  ;;  %v1470_v25 = vshll.u32 %v3408_v63, 16  ;;  %v3411_v37 = vld [vmem:[%s5685_s0 + $0x8c] sm:$0x1] }
  0x75   :  { %v3466_v34 = vcombine.low %v1800_v41, %v1804_v43  ;;  %4000 = vmatprep.subr.bf16.mxu1 %v4148_v36  ;;  %v1446_v17 = vrot.slane %v1445_v4, 4  ;;  %v3467_v18 = vcombine.low %v1808_v59, %v1812_v2  ;;  %v1455_v19 = vrot.slane %v1453_v10, 4  ;;  %v4153_v2 = vld [vmem:[%s5685_s0 + $0x10] ss:$8 sps:$4 sm:$0xff]  }
  0x76   :  { %3965 = vmatpush3.bf16.msra.mxu0 %v4143_v49  ;;  %v1409_v31 = vsel %vm4323_vm2, %v1404_v40, %v1408_v20  ;;  %v1431_v49 = vor.u32 %v1430_v60, %v1427_v7  ;;  %v1458_v20 = vrot.slane %v1456_v11, 5  ;;  %v1464_v23 = vrot.slane %v1462_v12, 5  ;;  %v3444_v7 = vld [vmem:[%s5685_s0 + $0x88] sm:$0xe]  ;;  %v3510_v12 = vld [vmem:[%s5685_s0 + $0x10] sm:$0xf] }
  0x77   :  { %3966 = vmatprep.subr.bf16.mxu0 %v4145_v5  ;;  %3950 = vmatprep.mubr.bf16.mxu1 %v3466_v34  ;;  %v3418_v51 = vcombine.low %v1409_v31, %v1423_v27  ;;  %v1469_v24 = vrot.slane %v1467_v3, 4  ;;  %v1472_v6 = vrot.slane %v1470_v25, 5  ;;  %v1451_v29 = vsel %vm4323_vm2, %v1446_v17, %v1450_v52  ;;  %v4152_v31 = vld [vmem:[%s5686_s1 + $0x1c0] sm:$0xff]   ;;  %v4989_v3 = vld [vmem:[%s5685_s0 + $0x14] sm:$0x1] }
  0x78   :  { %4001 = vmatpush3.bf16.msra.mxu1 %v4148_v36  ;;  %v1432_v58 = vrot.slane %v1431_v49, 4  ;;  %v3458_v32 = vrot.slane %v3442_v30, 9  ;;  %v1815_v35 = vrot.slane %v3407_v62, 5  ;;  %v3459_v48 = vrot.slane %v3443_v21, 9  ;;  %v3512_v25 = vld [vmem:[%s5685_s0 + $0x18] sm:$0xf] }
  0x79   :  { %3918 = vmatprep.mubr.bf16.mxu0 %v3418_v51  ;;  %4002 = vmatprep.subr.bf16.mxu1 %v4150_v0  ;;  %v1473_v40 = vor.u32 %v1472_v6, %v1469_v24  ;;  %v1481_v43 = vshrl.u32 %v3410_v28, 16  ;;  %v1484_v34 = vshll.u32 %v3410_v28, 16  ;;  %v1490_v60 = vshll.u32 %v3411_v37, 16 }
  0x7a   :  { %3967 = vmatpush3.bf16.msra.mxu0 %v4145_v5  ;;  %v3409_v5 = vld [vmem:[%s5685_s0 + $0x84] sm:$0x1]  ;;  %v1437_v14 = vsel %vm4323_vm2, %v1432_v58, %v1436_v39  ;;  %3951 = vmatmul.mubr.bf16.gmra.mxu1 %v3467_v18  ;;  %v1816_v36 = vsel %vm4544_vm5, %v3458_v32, %v1815_v35  ;;  %v1495_v39 = vshrl.u32 %v3412_v38, 16  ;;  %v1498_v27 = vshll.u32 %v3412_v38, 16 }
  0x7b   :  { %3968 = vmatprep.subr.bf16.mxu0 %v4147_v8  ;;  %v1476_v26 = vshll.u32 %v3409_v5, 16  ;;  %v3419_v9 = vcombine.low %v1437_v14, %v1451_v29  ;;  %v1819_v41 = vrot.slane %v3409_v5, 5  ;;  %v1474_v1 = vrot.slane %v1473_v40, 4  ;;  %v5011_v38 = vld [vmem:[%s5685_s0 + $0x24] sm:$0x1] }
  0x7c   :  { %4003 = vmatpush3.bf16.msra.mxu1 %v4150_v0  ;;  %v1483_v46 = vrot.slane %v1481_v43, 4  ;;  %v1486_v33 = vrot.slane %v1484_v34, 5  ;;  %v1492_v51 = vrot.slane %v1490_v60, 5  ;;  %v1497_v52 = vrot.slane %v1495_v39, 4 }
  0x7d   :  { %v1478_v13 = vrot.slane %v1476_v26, 5  ;;  %3919 = vmatmul.mubr.bf16.gmra.mxu0 %v3419_v9  ;;  %v1820_v47 = vsel %vm4544_vm5, %v3459_v48, %v1819_v41  ;;  %4004 = vmatprep.subr.bf16.mxu1 %v4152_v31  ;;  %v1500_v55 = vrot.slane %v1498_v27, 5  ;;  %v1504_v56 = vshll.u32 %v3413_v15, 16  ;;  %v5019_v48 = vld [vmem:[%s5685_s0 + $0x2c] sm:$0x1] }
  0x7e   :  { %3969 = vmatpush3.bf16.msra.mxu0 %v4147_v8  ;;  %v1459_v8 = vor.u32 %v1458_v20, %v1455_v19  ;;  %v3468_v50 = vcombine.low %v1816_v36, %v1820_v47  ;;  %v1487_v58 = vor.u32 %v1486_v33, %v1483_v46  ;;  %v3460_v59 = vrot.slane %v3444_v7, 9  ;;  %v4999_v19 = vld [vmem:[%s5685_s0 + $0x1c] sm:$0x1] }
  0x7f   :  { %3970 = vmatprep.subr.bf16.mxu0 %v4149_v57  ;;  %v1479_v49 = vsel %vm4323_vm2, %v1474_v1, %v1478_v13  ;;  %v1823_v61 = vrot.slane %v3411_v37, 5  ;;  %v3461_v62 = vrot.slane %v3445_v44, 9  ;;  %v1501_v63 = vor.u32 %v1500_v55, %v1497_v52  ;;  %v3514_v37 = vld [vmem:[%s5685_s0 + $0x20] sm:$0xf]  ;;  %v3516_v13 = vld [vmem:[%s5685_s0 + $0x28] sm:$0xf] }
  0x80   :  { %v1460_v53 = vrot.slane %v1459_v8, 4  ;;  %4005 = vmatpush3.bf16.msra.mxu1 %v4152_v31  ;;  %3954 = vmatprep.mubr.bf16.mxu1 %v3468_v50  ;;  %v1506_v4 = vrot.slane %v1504_v56, 5  ;;  %v1827_v5 = vrot.slane %v3413_v15, 5  ;;  %v1488_v10 = vrot.slane %v1487_v58, 4  ;;  %v4154_v44 = vld [vmem:[%s5685_s0 + $0x20] ss:$8 sps:$4 sm:$0xff]  }
  0x81   :  { %v1824_v11 = vsel %vm4544_vm5, %v3460_v59, %v1823_v61  ;;  %v1502_v0 = vrot.slane %v1501_v63, 4  ;;  %v2313_v30 = vshrl.u32 %v3510_v12, 16  ;;  %v2316_v20 = vshll.u32 %v3510_v12, 16  ;;  %v5031_v50 = vld [vmem:[%s5686_s1 + $0x230] sm:$0xff]   ;;  %v3520_v59 = vld [vmem:[%s5685_s0 + $0x38] sm:$0xf] }
  0x82   :  { %3971 = vmatpush3.bf16.msra.mxu0 %v4149_v57  ;;  %v1465_v45 = vsel %vm4323_vm2, %v1460_v53, %v1464_v23  ;;  %v4972_v57 = vld [vmem:[%s5686_s1 + $0x238] sm:$0xff]   ;;  %v1828_v14 = vsel %vm4544_vm5, %v3461_v62, %v1827_v5  ;;  %v1493_v17 = vsel %vm4323_vm2, %v1488_v10, %v1492_v51  ;;  %v2322_v21 = vshll.u32 %v4989_v3, 16  ;;  %v3518_v52 = vld [vmem:[%s5685_s0 + $0x30] sm:$0xf]  ;;  %v5044_v58 = vld [vmem:[%s5685_s0 + $0x34] sm:$0x1] }
  0x83   :  { %3972 = vmatprep.subr.bf16.mxu0 %v4151_v22  ;;  %v3420_v54 = vcombine.low %v1465_v45, %v1479_v49  ;;  %4054 = vmatprep.subr.bf16.mxu1 %v4972_v57  ;;  %v3469_v18 = vcombine.low %v1824_v11, %v1828_v14  ;;  %v2315_v23 = vrot.slane %v2313_v30, 4  ;;  %v2327_v24 = vshrl.u32 %v3512_v25, 16  ;;  %v5052_v61 = vld [vmem:[%s5685_s0 + $0x3c] sm:$0x1] }
  0x84   :  { %v2330_v6 = vshll.u32 %v3512_v25, 16  ;;  %v2318_v28 = vrot.slane %v2316_v20, 5  ;;  %v2324_v29 = vrot.slane %v2322_v21, 5  ;;  %v2336_v8 = vshll.u32 %v4999_v19, 16 }
  0x85   :  { %3922 = vmatprep.mubr.bf16.mxu0 %v3420_v54  ;;  %3955 = vmatmul.mubr.bf16.gmra.mxu1 %v3469_v18  ;;  %v2329_v32 = vrot.slane %v2327_v24, 4  ;;  %v2341_v15 = vshrl.u32 %v3514_v37, 16  ;;  %v2344_v36 = vshll.u32 %v3514_v37, 16  ;;  %v2350_v41 = vshll.u32 %v5011_v38, 16  ;;  %v4157_v54 = vld [vmem:[%s5685_s0 + $0x30] ss:$8 sps:$4 sm:$0xff]  }
  0x86   :  { %3973 = vmatpush3.bf16.msra.mxu0 %v4151_v22  ;;  %v1507_v22 = vsel %vm4323_vm2, %v1502_v0, %v1506_v4  ;;  %v2332_v35 = vrot.slane %v2330_v6, 5  ;;  %v2319_v9 = vor.u32 %v2318_v28, %v2315_v23  ;;  %v2338_v40 = vrot.slane %v2336_v8, 5  ;;  %v3522_v23 = vld [vmem:[%s5685_s0 + $0x40] sm:$0xf]  ;;  %v5071_v24 = vld [vmem:[%s5686_s1 + $0x228] sm:$0xff]  }
  0x87   :  { %4022 = vmatprep.subr.bf16.mxu0 %v4972_v57  ;;  %v3421_v26 = vcombine.low %v1493_v17, %v1507_v22  ;;  %v2355_v43 = vshrl.u32 %v3516_v13, 16  ;;  %v2343_v31 = vrot.slane %v2341_v15, 4  ;;  %v2358_v1 = vshll.u32 %v3516_v13, 16  ;;  %v4158_v22 = vld [vmem:[%s5685_s0 + $0x40] ss:$8 sps:$4 sm:$0xff]  }
  0x88   :  { %v2333_v53 = vor.u32 %v2332_v35, %v2329_v32  ;;  %v2320_v7 = vrot.slane %v2319_v9, 4  ;;  %v2364_v34 = vshll.u32 %v5019_v48, 16  ;;  %v2346_v39 = vrot.slane %v2344_v36, 5  ;;  %v5076_v28 = vld [vmem:[%s5685_s0 + $0x44] sm:$0x1] }
  0x89   :  { %3923 = vmatmul.mubr.bf16.gmra.mxu0 %v3421_v26  ;;  %v2352_v45 = vrot.slane %v2350_v41, 5  ;;  %v2357_v47 = vrot.slane %v2355_v43, 4  ;;  %v2360_v27 = vrot.slane %v2358_v1, 5  ;;  %v2369_v63 = vshrl.u32 %v3518_v52, 16  ;;  %v5084_v8 = vld [vmem:[%s5685_s0 + $0x4c] sm:$0x1] }
  0x8a   :  { %3974 = vmatprep.mubr.bf16.mxu0 %v4153_v2  ;;  %v2334_v60 = vrot.slane %v2333_v53, 4  ;;  %v2325_v46 = vsel %vm4323_vm2, %v2320_v7, %v2324_v29  ;;  %v2366_v49 = vrot.slane %v2364_v34, 5  ;;  %v2347_v51 = vor.u32 %v2346_v39, %v2343_v31  ;;  %v3524_v29 = vld [vmem:[%s5685_s0 + $0x48] sm:$0xf] }
  0x8b   :  { %v2361_v56 = vor.u32 %v2360_v27, %v2357_v47  ;;  %v2372_v4 = vshll.u32 %v3518_v52, 16  ;;  %v2378_v5 = vshll.u32 %v5044_v58, 16  ;;  %v2383_v11 = vshrl.u32 %v3520_v59, 16  ;;  %v5107_v47 = vld [vmem:[%s5686_s1 + $0x218] sm:$0xff]   ;;  %v5126_v52 = vld [vmem:[%s5685_s0 + $0x6c] sm:$0x1] }
  0x8c   :  { %v2339_v33 = vsel %vm4323_vm2, %v2334_v60, %v2338_v40  ;;  %v2348_v62 = vrot.slane %v2347_v51, 4  ;;  %v2386_v12 = vshll.u32 %v3520_v59, 16  ;;  %v2392_v0 = vshll.u32 %v5052_v61, 16  ;;  %v5090_v40 = vld [vmem:[%s5686_s1 + $0x220] sm:$0xff]   ;;  %v3528_v51 = vld [vmem:[%s5685_s0 + $0x68] sm:$0xf] }
  0x8d   :  { %v3542_v55 = vcombine.low %v2325_v46, %v2339_v33  ;;  %v2362_v10 = vrot.slane %v2361_v56, 4  ;;  %v2371_v2 = vrot.slane %v2369_v63, 4  ;;  %v2374_v25 = vrot.slane %v2372_v4, 5  ;;  %v5116_v33 = vld [vmem:[%s5685_s0 + $0x64] sm:$0x1] }
  0x8e   :  { %v2353_v14 = vsel %vm4323_vm2, %v2348_v62, %v2352_v45  ;;  %v2380_v30 = vrot.slane %v2378_v5, 5  ;;  %v2385_v18 = vrot.slane %v2383_v11, 4  ;;  %v2388_v20 = vrot.slane %v2386_v12, 5 }
  0x8f   :  { %4006 = vmatprep.mubr.bf16.mxu1 %v3542_v55  ;;  %v2367_v17 = vsel %vm4323_vm2, %v2362_v10, %v2366_v49  ;;  %v2394_v21 = vrot.slane %v2392_v0, 5  ;;  %v2375_v26 = vor.u32 %v2374_v25, %v2371_v2  ;;  %v2397_v35 = vshrl.u32 %v3522_v23, 16  ;;  %v3526_v49 = vld [vmem:[%s5685_s0 + $0x60] sm:$0xf] }
  0x90   :  { %v3543_v6 = vcombine.low %v2353_v14, %v2367_v17  ;;  %v2389_v32 = vor.u32 %v2388_v20, %v2385_v18  ;;  %v2400_v37 = vshll.u32 %v3522_v23, 16  ;;  %v2406_v9 = vshll.u32 %v5076_v28, 16  ;;  %v5142_v17 = vld [vmem:[%s5686_s1 + $0x210] sm:$0xff]   ;;  %v3532_v23 = vld [vmem:[%s5685_s0 + $0x78] sm:$0xf] }
  0x91   :  { %3975 = vmatmul.mubr.bf16.vlgmr.msra.gmra.mxu0 %v4154_v44  ;;  %v2376_v13 = vrot.slane %v2375_v26, 4  ;;  %v2411_v15 = vshrl.u32 %v3524_v29, 16  ;;  %v2414_v53 = vshll.u32 %v3524_v29, 16  ;;  %v2420_v36 = vshll.u32 %v5084_v8, 16 }
  0x92   :  { %4023 = vmatpush3.bf16.msra.mxu0 %v4972_v57  ;;  %3978 = vmatprep.mubr.bf16.mxu0 %v4157_v54  ;;  %v2390_v41 = vrot.slane %v2389_v32, 4  ;;  %v2399_v43 = vrot.slane %v2397_v35, 4  ;;  %v2402_v7 = vrot.slane %v2400_v37, 5  ;;  %v2408_v44 = vrot.slane %v2406_v9, 5 }
  0x93   :  { %4024 = vmatprep.subr.bf16.mxu0 %v5031_v50  ;;  %4007 = vmatmul.mubr.bf16.vlgmr.msra.gmra.mxu1 %v3543_v6  ;;  %v2381_v31 = vsel %vm4323_vm2, %v2376_v13, %v2380_v30  ;;  %v2413_v1 = vrot.slane %v2411_v15, 4  ;;  %v2416_v34 = vrot.slane %v2414_v53, 5  ;;  %v2422_v60 = vrot.slane %v2420_v36, 5  ;;  %v4162_v30 = vld [vmem:[%s5685_s0 + $0x70] ss:$8 sps:$4 sm:$0xff]  }
  0x94   :  { %4062 = vmatpush3.bf16.msra.mxu1 %v4972_v57  ;;  %v2395_v39 = vsel %vm4323_vm2, %v2390_v41, %v2394_v21  ;;  %v2403_v45 = vor.u32 %v2402_v7, %v2399_v43  ;;  %v4161_v57 = vld [vmem:[%s5685_s0 + $0x60] ss:$8 sps:$4 sm:$0xff]   ;;  %v2425_v55 = vshrl.u32 %v3526_v49, 16  ;;  %v2428_v56 = vshll.u32 %v3526_v49, 16  ;;  %v3530_v21 = vld [vmem:[%s5685_s0 + $0x70] sm:$0xf] }
  0x95   :  { %4055 = vmatprep.subr.bf16.mxu1 %v5031_v50  ;;  %v3544_v46 = vcombine.low %v2381_v31, %v2395_v39  ;;  %v2417_v27 = vor.u32 %v2416_v34, %v2413_v1  ;;  %v2434_v59 = vshll.u32 %v5116_v33, 16  ;;  %v2439_v63 = vshrl.u32 %v3528_v51, 16  ;;  %v5173_v1 = vld [vmem:[%s5686_s1 + $0x208] sm:$0xff]   ;;  %v5189_v49 = vld [vmem:[%s5686_s1 + $0x200] sm:$0xff]  }
  0x96   :  { %4025 = vmatpush3.bf16.msra.mxu0 %v5031_v50  ;;  %v2404_v54 = vrot.slane %v2403_v45, 4  ;;  %v2442_v4 = vshll.u32 %v3528_v51, 16  ;;  %v2427_v10 = vrot.slane %v2425_v55, 4  ;;  %v2430_v11 = vrot.slane %v2428_v56, 5  ;;  %v3536_v55 = vld [vmem:[%s5685_s0 + $0x88] sm:$0xf] }
  0x97   :  { %4026 = vmatprep.subr.bf16.mxu0 %v5071_v24  ;;  %4010 = vmatprep.mubr.bf16.mxu1 %v3544_v46  ;;  %v2418_v62 = vrot.slane %v2417_v27, 4  ;;  %v2436_v12 = vrot.slane %v2434_v59, 5  ;;  %v2441_v14 = vrot.slane %v2439_v63, 4  ;;  %v2453_v26 = vshrl.u32 %v3530_v21, 16  ;;  %v4165_v46 = vld [vmem:[%s5685_s0 + $0x80] ss:$8 sps:$4 sm:$0xff]  }
  0x98   :  { %4063 = vmatpush3.bf16.msra.mxu1 %v5031_v50  ;;  %v2448_v50 = vshll.u32 %v5126_v52, 16  ;;  %v2409_v5 = vsel %vm4323_vm2, %v2404_v54, %v2408_v44  ;;  %v2444_v2 = vrot.slane %v2442_v4, 5  ;;  %v2431_v20 = vor.u32 %v2430_v11, %v2427_v10  ;;  %v3534_v27 = vld [vmem:[%s5685_s0 + $0x80] sm:$0xf]  ;;  %v5195_v54 = vld [vmem:[%s5685_s0 + $0x84] sm:$0x1] }
  0x99   :  { %3979 = vmatmul.mubr.bf16.gmra.mxu0 %v4158_v22  ;;  %4056 = vmatprep.subr.bf16.mxu1 %v5071_v24  ;;  %v2423_v0 = vsel %vm4323_vm2, %v2418_v62, %v2422_v60  ;;  %v5151_v22 = vld [vmem:[%s5685_s0 + $0x74] sm:$0x1]  ;;  %v2456_v29 = vshll.u32 %v3530_v21, 16  ;;  %v2467_v37 = vshrl.u32 %v3532_v23, 16  ;;  %v2470_v9 = vshll.u32 %v3532_v23, 16 }
  0x9a   :  { %4027 = vmatpush3.bf16.msra.mxu0 %v5071_v24  ;;  %3982 = vmatprep.mubr.bf16.mxu0 %v4161_v57  ;;  %v2450_v25 = vrot.slane %v2448_v50, 5  ;;  %v3545_v18 = vcombine.low %v2409_v5, %v2423_v0  ;;  %v2445_v6 = vor.u32 %v2444_v2, %v2441_v14  ;;  %v2462_v32 = vshll.u32 %v5151_v22, 16  ;;  %v5204_v62 = vld [vmem:[%s5685_s0 + $0x8c] sm:$0x1]  ;;  %v3538_v21 = vld [vmem:[%s5685_s0 + $0x90] sm:$0xf] }
  0x9b   :  { %4028 = vmatprep.subr.bf16.mxu0 %v5090_v40  ;;  %v2432_v35 = vrot.slane %v2431_v20, 4  ;;  %v2455_v53 = vrot.slane %v2453_v26, 4  ;;  %v2458_v36 = vrot.slane %v2456_v29, 5  ;;  %v2469_v7 = vrot.slane %v2467_v37, 4  ;;  %v4166_v20 = vld [vmem:[%s5685_s0 + $0x90] ss:$8 sps:$4 sm:$0xff]  }
  0x9c   :  { %4064 = vmatpush3.bf16.msra.mxu1 %v5071_v24  ;;  %v5161_v24 = vld [vmem:[%s5685_s0 + $0x7c] sm:$0x1]  ;;  %v2446_v15 = vrot.slane %v2445_v6, 4  ;;  %v2464_v41 = vrot.slane %v2462_v32, 5  ;;  %v2472_v44 = vrot.slane %v2470_v9, 5  ;;  %v2835_v39 = vrot.slane %v5151_v22, 5 }
  0x9d   :  { %4057 = vmatprep.subr.bf16.mxu1 %v5090_v40  ;;  %4011 = vmatmul.mubr.bf16.gmra.mxu1 %v3545_v18  ;;  %v2476_v13 = vshll.u32 %v5161_v24, 16  ;;  %v2437_v43 = vsel %vm4323_vm2, %v2432_v35, %v2436_v12  ;;  %v2459_v60 = vor.u32 %v2458_v36, %v2455_v53  ;;  %v2481_v56 = vshrl.u32 %v3534_v27, 16  ;;  %v5225_v6 = vld [vmem:[%s5685_s0 + $0x94] sm:$0x1]  ;;  %v3540_v26 = vld [vmem:[%s5685_s0 + $0x98] sm:$0xf] }
  0x9e   :  { %4029 = vmatpush3.bf16.msra.mxu0 %v5090_v40  ;;  %v2451_v34 = vsel %vm4323_vm2, %v2446_v15, %v2450_v25  ;;  %v2473_v57 = vor.u32 %v2472_v44, %v2469_v7  ;;  %v2484_v63 = vshll.u32 %v3534_v27, 16  ;;  %v2490_v4 = vshll.u32 %v5195_v54, 16  ;;  %v5233_v29 = vld [vmem:[%s5685_s0 + $0x9c] sm:$0x1]  ;;  %v3559_v27 = vld [vmem:[%s5685_s0 + $0x18] sm:$0xe] }
  0x9f   :  { %4030 = vmatprep.subr.bf16.mxu0 %v5107_v47  ;;  %v2478_v31 = vrot.slane %v2476_v13, 5  ;;  %v3546_v45 = vcombine.low %v2437_v43, %v2451_v34  ;;  %v2460_v51 = vrot.slane %v2459_v60, 4  ;;  %v2495_v50 = vshrl.u32 %v3536_v55, 16 }
  0xa0   :  { %4065 = vmatpush3.bf16.msra.mxu1 %v5090_v40  ;;  %v2839_v40 = vrot.slane %v5161_v24, 5  ;;  %v2474_v59 = vrot.slane %v2473_v57, 4  ;;  %v2483_v10 = vrot.slane %v2481_v56, 4  ;;  %v2498_v11 = vshll.u32 %v3536_v55, 16 }
  0xa1   :  { %3983 = vmatmul.mubr.bf16.gmra.mxu0 %v4162_v30  ;;  %4058 = vmatprep.subr.bf16.mxu1 %v5107_v47  ;;  %v2465_v5 = vsel %vm4323_vm2, %v2460_v51, %v2464_v41  ;;  %v2504_v12 = vshll.u32 %v5204_v62, 16  ;;  %v2486_v0 = vrot.slane %v2484_v63, 5  ;;  %v2492_v14 = vrot.slane %v2490_v4, 5  ;;  %v3566_v4 = vld [vmem:[%s5685_s0 + $0x60] sm:$0xe] }
  0xa2   :  { %4031 = vmatpush3.bf16.msra.mxu0 %v5107_v47  ;;  %4014 = vmatprep.mubr.bf16.mxu1 %v3546_v45  ;;  %v2497_v2 = vrot.slane %v2495_v50, 4  ;;  %v2500_v30 = vrot.slane %v2498_v11, 5  ;;  %v2512_v35 = vshll.u32 %v3538_v21, 16  ;;  %v2518_v37 = vshll.u32 %v5225_v6, 16  ;;  %v3567_v50 = vld [vmem:[%s5685_s0 + $0x68] sm:$0xe] }
  0xa3   :  { %4032 = vmatprep.subr.bf16.mxu0 %v5142_v17  ;;  %3986 = vmatprep.mubr.bf16.mxu0 %v4165_v46  ;;  %v2506_v18 = vrot.slane %v2504_v12, 5  ;;  %v2487_v23 = vor.u32 %v2486_v0, %v2483_v10  ;;  %v2523_v13 = vshrl.u32 %v3540_v26, 16  ;;  %v2526_v15 = vshll.u32 %v3540_v26, 16  ;;  %v3558_v46 = vld [vmem:[%s5685_s0 + $0x10] sm:$0xe] }
  0xa4   :  { %4066 = vmatpush3.bf16.msra.mxu1 %v5107_v47  ;;  %v2479_v47 = vsel %vm4323_vm2, %v2474_v59, %v2478_v31  ;;  %v2501_v32 = vor.u32 %v2500_v30, %v2497_v2  ;;  %v2532_v53 = vshll.u32 %v5233_v29, 16  ;;  %v2514_v43 = vrot.slane %v2512_v35, 5  ;;  %v3568_v2 = vld [vmem:[%s5685_s0 + $0x70] sm:$0xe] }
  0xa5   :  { %4059 = vmatprep.subr.bf16.mxu1 %v5142_v17  ;;  %v3547_v25 = vcombine.low %v2465_v5, %v2479_v47  ;;  %v2488_v9 = vrot.slane %v2487_v23, 4  ;;  %v2520_v7 = vrot.slane %v2518_v37, 5  ;;  %v2525_v31 = vrot.slane %v2523_v13, 4 }
  0xa6   :  { %4033 = vmatpush3.bf16.msra.mxu0 %v5142_v17  ;;  %v2502_v36 = vrot.slane %v2501_v32, 4  ;;  %v2528_v34 = vrot.slane %v2526_v15, 5  ;;  %v2534_v60 = vrot.slane %v2532_v53, 5  ;;  %v2795_v51 = vrot.slane %v4989_v3, 5  ;;  %v3560_v3 = vld [vmem:[%s5685_s0 + $0x20] sm:$0xe] }
  0xa7   :  { %4034 = vmatprep.subr.bf16.mxu0 %v5173_v1  ;;  %4015 = vmatmul.mubr.bf16.gmra.mxu1 %v3547_v25  ;;  %v2493_v44 = vsel %vm4323_vm2, %v2488_v9, %v2492_v14  ;;  %v2799_v55 = vrot.slane %v4999_v19, 5  ;;  %v3574_v59 = vrot.slane %v3558_v46, 9  ;;  %v3575_v63 = vrot.slane %v3559_v27, 9 }
  0xa8   :  { %4067 = vmatpush3.bf16.msra.mxu1 %v5142_v17  ;;  %v2509_v17 = vshrl.u32 %v3538_v21, 16  ;;  %v2507_v45 = vsel %vm4323_vm2, %v2502_v36, %v2506_v18  ;;  %v3582_v10 = vrot.slane %v3566_v4, 9  ;;  %v2827_v11 = vrot.slane %v5116_v33, 5  ;;  %v3561_v33 = vld [vmem:[%s5685_s0 + $0x28] sm:$0xe] }
  0xa9   :  { %3987 = vmatmul.mubr.bf16.gmra.mxu0 %v4166_v20  ;;  %4060 = vmatprep.subr.bf16.mxu1 %v5173_v1  ;;  %v3548_v56 = vcombine.low %v2493_v44, %v2507_v45  ;;  %v3583_v12 = vrot.slane %v3567_v50, 9  ;;  %v2796_v47 = vsel %vm4544_vm5, %v3574_v59, %v2795_v51  ;;  %v2800_v0 = vsel %vm4544_vm5, %v3575_v63, %v2799_v55  ;;  %v3562_v20 = vld [vmem:[%s5685_s0 + $0x30] sm:$0xe] }
  0xaa   :  { %4035 = vmatpush3.bf16.msra.mxu0 %v5173_v1  ;;  %v2511_v41 = vrot.slane %v2509_v17, 4  ;;  %v2831_v14 = vrot.slane %v5126_v52, 5  ;;  %v2828_v30 = vsel %vm4544_vm5, %v3582_v10, %v2827_v11  ;;  %v3576_v18 = vrot.slane %v3560_v3, 9  ;;  %v3569_v52 = vld [vmem:[%s5685_s0 + $0x78] sm:$0xe] }
  0xab   :  { %4036 = vmatprep.subr.bf16.mxu0 %v5189_v49  ;;  %4018 = vmatprep.mubr.bf16.mxu1 %v3548_v56  ;;  %v2803_v26 = vrot.slane %v5011_v38, 5  ;;  %v3577_v32 = vrot.slane %v3561_v33, 9  ;;  %v3563_v17 = vld [vmem:[%s5685_s0 + $0x38] sm:$0xe]  ;;  %v2807_v9 = vrot.slane %v5019_v48, 5  ;;  %v3584_v13 = vrot.slane %v3568_v2, 9 }
  0xac   :  { %4068 = vmatpush3.bf16.msra.mxu1 %v5173_v1  ;;  %v2515_v57 = vor.u32 %v2514_v43, %v2511_v41  ;;  %v2529_v1 = vor.u32 %v2528_v34, %v2525_v31  ;;  %v2832_v23 = vsel %vm4544_vm5, %v3583_v12, %v2831_v14  ;;  %v3585_v53 = vrot.slane %v3569_v52, 9  ;;  %v3571_v41 = vld [vmem:[%s5685_s0 + $0x88] sm:$0xe] }
  0xad   :  { %4061 = vmatprep.subr.bf16.mxu1 %v5189_v49  ;;  %v3594_v37 = vcombine.low %v2828_v30, %v2832_v23  ;;  %v2804_v15 = vsel %vm4544_vm5, %v3576_v18, %v2803_v26  ;;  %v3578_v38 = vrot.slane %v3562_v20, 9  ;;  %v2811_v36 = vrot.slane %v5044_v58, 5  ;;  %v3564_v58 = vld [vmem:[%s5685_s0 + $0x40] sm:$0xe]  ;;  %v3565_v31 = vld [vmem:[%s5685_s0 + $0x48] sm:$0xe] }
  0xae   :  { %4037 = vmatpush3.bf16.msra.mxu0 %v5189_v49  ;;  %v2516_v5 = vrot.slane %v2515_v57, 4  ;;  %v2530_v19 = vrot.slane %v2529_v1, 4  ;;  %v2808_v48 = vsel %vm4544_vm5, %v3577_v32, %v2807_v9  ;;  %v2836_v43 = vsel %vm4544_vm5, %v3584_v13, %v2835_v39 }
  0xaf   :  { %v2815_v44 = vrot.slane %v5052_v61, 5  ;;  %v3591_v34 = vcombine.low %v2804_v15, %v2808_v48  ;;  %v2840_v22 = vsel %vm4544_vm5, %v3585_v53, %v2839_v40  ;;  %v2812_v39 = vsel %vm4544_vm5, %v3578_v38, %v2811_v36  ;;  %v3572_v61 = vld [vmem:[%s5685_s0 + $0x90] sm:$0xe] }
  0xb0   :  { %4069 = vmatpush3.bf16.msra.mxu1 %v5189_v49  ;;  %v2521_v25 = vsel %vm4323_vm2, %v2516_v5, %v2520_v7  ;;  %v3590_v49 = vcombine.low %v2796_v47, %v2800_v0  ;;  %v2535_v21 = vsel %vm4323_vm2, %v2530_v19, %v2534_v60  ;;  %v3579_v7 = vrot.slane %v3563_v17, 9 }
  0xb1   :  { %v3549_v35 = vcombine.low %v2521_v25, %v2535_v21  ;;  %v3586_v60 = vrot.slane %v3570_v42, 9 }
  0xb2   :  { %4038 = vmatprep.mubr.bf16.mxu0 %v3590_v49 }
  0xb3   :  { %4019 = vmatmul.mubr.bf16.gmra.mxu1 %v3549_v35 }
  0xb4   :  { %4046 = vmatprep.mubr.bf16.mxu1 %v3594_v37 }
  0xb5   :  { %11 = vsyncpa [#allocation3], 0  ;;  %v3595_v45 = vcombine.low %v2836_v43, %v2840_v22  ;;  %v2816_v57 = vsel %vm4544_vm5, %v3579_v7, %v2815_v44  ;;  %v2843_v46 = vrot.slane %v5195_v54, 5  ;;  %v3587_v27 = vrot.slane %v3571_v41, 9  ;;  %v3573_v24 = vld [vmem:[%s5685_s0 + $0x98] sm:$0xe]  ;;  %4039 = vmatmul.mubr.bf16.vlgmr.msra.gmra.mxu0 %v3591_v34 }
  0xb6   :  { %v3592_v40 = vcombine.low %v2812_v39, %v2816_v57  ;;  %v2847_v51 = vrot.slane %v5204_v62, 5  ;;  %v3580_v55 = vrot.slane %v3564_v58, 9  ;;  %v2819_v56 = vrot.slane %v5076_v28, 5  ;;  %s4195_s8 = smov [#allocation2]  }
  0xb7   :  { %v2844_v1 = vsel %vm4544_vm5, %v3586_v60, %v2843_v46  ;;  %v3581_v59 = vrot.slane %v3565_v31, 9  ;;  %v2823_v63 = vrot.slane %v5084_v8, 5  ;;  %v3588_v4 = vrot.slane %v3572_v61, 9  ;;  %s3275_s9 = sshll.u32 %s4195_s8, 4  ;;  %s3276_s9 = int_to_ptr.vmem [resolvable:$true] %s3275_s9 }
  0xb8   :  { %4042 = vmatprep.mubr.bf16.mxu0 %v3592_v40  ;;  %v2848_v54 = vsel %vm4544_vm5, %v3587_v27, %v2847_v51  ;;  %v2820_v50 = vsel %vm4544_vm5, %v3580_v55, %v2819_v56  ;;  %v2851_v5 = vrot.slane %v5225_v6, 5  ;;  %v3589_v62 = vrot.slane %v3573_v24, 9  ;;  %p4178_p1 = scmp.lt.s32.totalorder %s3276_s9, %s3276_s9 }
  0xb9   :  { %v3596_v10 = vcombine.low %v2844_v1, %v2848_v54  ;;  %v2824_v28 = vsel %vm4544_vm5, %v3581_v59, %v2823_v63  ;;  %v2855_v11 = vrot.slane %v5233_v29, 5 }
  0xba   :  { %v3593_v12 = vcombine.low %v2820_v50, %v2824_v28  ;;  %v2852_v8 = vsel %vm4544_vm5, %v3588_v4, %v2851_v5 }
  0xbb   :  { %4047 = vmatmul.mubr.bf16.vlgmr.msra.gmra.mxu1 %v3595_v45  ;;  %v2856_v3 = vsel %vm4544_vm5, %v3589_v62, %v2855_v11 }
  0xbc   :  { %4050 = vmatprep.mubr.bf16.mxu1 %v3596_v10  ;;  %v3597_v19 = vcombine.low %v2852_v8, %v2856_v3 }
  0xbd   :  { %4043 = vmatmul.mubr.bf16.gmra.mxu0 %v3593_v12 }
  0xc3   :  { %4051 = vmatmul.mubr.bf16.gmra.mxu1 %v3597_v19 }
  0xe2   :  { %v3784_v6 = vpop.f32.mrf.mxu0 }
  0xe3   :  { %v3816_v47 = vpop.f32.mrf.mxu1 }
  0xe4   :  { %v632_v0 = vadd.f32 %v3816_v47, %v3784_v6  ;;  %v430_v14 = vpop.f32.mrf.mxu0 }
  0xe5   :  { %v623_v33 = vpop.f32.mrf.mxu1 }
  0xe6   :  { %v624_v2 = vadd.f32 %v623_v33, %v430_v14  ;;  %v3785_v25 = vpop.f32.mrf.mxu0 }
  0xe7   :  { %v3817_v29 = vpop.f32.mrf.mxu1 }
  0xe8   :  { %v635_v49 = vadd.f32 %v3817_v29, %v3785_v25  ;;  %v433_v30 = vpop.f32.mrf.mxu0 }
  0xe9   :  { %v626_v18 = vpop.f32.mrf.mxu1 }
  0xea   :  { %v627_v52 = vadd.f32 %v626_v18, %v433_v30  ;;  %v3788_v21 = vpop.f32.mrf.mxu0 }
  0xeb   :  { %v3820_v20 = vpop.f32.mrf.mxu1 }
  0xec   :  { %v648_v16 = vadd.f32 %v3820_v20, %v3788_v21  ;;  %v446_v26 = vpop.f32.mrf.mxu0 }
  0xed   :  { %v639_v23 = vpop.f32.mrf.mxu1 }
  0xee   :  { %v640_v17 = vadd.f32 %v639_v23, %v446_v26  ;;  %v3789_v35 = vpop.f32.mrf.mxu0 }
  0xef   :  { %v3821_v32 = vpop.f32.mrf.mxu1 }
  0xf0   :  { %v651_v9 = vadd.f32 %v3821_v32, %v3789_v35  ;;  %v449_v13 = vpop.f32.mrf.mxu0 }
  0xf1   :  { %v642_v37 = vpop.f32.mrf.mxu1 }
  0xf2   :  { %v643_v15 = vadd.f32 %v642_v37, %v449_v13 }
  0xf3   :  { %v3824_v42 = vpop.f32.mrf.mxu1 }
  0xf5   :  { %v655_v53 = vpop.f32.mrf.mxu1 }
  0xf6   :  { %v3792_v36 = vpop.f32.mrf.mxu0 }
  0xf7   :  { %v3825_v38 = vpop.f32.mrf.mxu1  ;;  %v664_v41 = vadd.f32 %v3824_v42, %v3792_v36 }
  0xf8   :  { %v462_v43 = vpop.f32.mrf.mxu0 }
  0xf9   :  { %v658_v48 = vpop.f32.mrf.mxu1  ;;  %v656_v7 = vadd.f32 %v655_v53, %v462_v43 }
  0xfa   :  { %v3793_v44 = vpop.f32.mrf.mxu0 }
  0xfb   :  { %v667_v58 = vadd.f32 %v3825_v38, %v3793_v44  ;;  %v3828_v31 = vpop.f32.mrf.mxu1 }
  0xfc   :  { %v465_v34 = vpop.f32.mrf.mxu0 }
  0xfd   :  { %v659_v22 = vadd.f32 %v658_v48, %v465_v34  ;;  %v671_v39 = vpop.f32.mrf.mxu1 }
  0xff   :  { %v3829_v60 = vpop.f32.mrf.mxu1 }
 0x101   :  { %v3796_v61 = vpop.f32.mrf.mxu0  ;;  %v674_v45 = vpop.f32.mrf.mxu1 }
 0x102   :  { %v680_v57 = vadd.f32 %v3828_v31, %v3796_v61 }
 0x103   :  { %v478_v46 = vpop.f32.mrf.mxu0  ;;  %v3880_v27 = vpop.f32.mrf.mxu1 }
 0x104   :  { %v672_v24 = vadd.f32 %v671_v39, %v478_v46 }
 0x105   :  { %v3797_v40 = vpop.f32.mrf.mxu0  ;;  %v1173_v51 = vpop.f32.mrf.mxu1 }
 0x106   :  { %v683_v55 = vadd.f32 %v3829_v60, %v3797_v40 }
 0x107   :  { %v481_v56 = vpop.f32.mrf.mxu0  ;;  %v3881_v1 = vpop.f32.mrf.mxu1 }
 0x108   :  { %v675_v59 = vadd.f32 %v674_v45, %v481_v56 }
 0x109   :  { %v3848_v63 = vpop.f32.mrf.mxu0  ;;  %v1176_v4 = vpop.f32.mrf.mxu1 }
 0x10a   :  { %v996_v54 = vadd.f32 %v3848_v63, %v632_v0 }
 0x10b   :  { %v931_v50 = vpop.f32.mrf.mxu0  ;;  %v3884_v5 = vpop.f32.mrf.mxu1 }
 0x10c   :  { %v1238_v62 = vadd.f32 %v3880_v27, %v996_v54  ;;  %v994_v10 = vadd.f32 %v931_v50, %v624_v2 }
 0x10d   :  { %v3849_v28 = vpop.f32.mrf.mxu0  ;;  %v1189_v11 = vpop.f32.mrf.mxu1 }
 0x10e   :  { %v5349_v12 = vadd.f32 %v1173_v51, %v994_v10  ;;  %v997_v8 = vadd.f32 %v3849_v28, %v635_v49 }
 0x10f   :  { %v934_v3 = vpop.f32.mrf.mxu0  ;;  %v3885_v19 = vpop.f32.mrf.mxu1 }
 0x110   :  { %v5351_v6 = vadd.f32 %v3881_v1, %v997_v8  ;;  %v995_v47 = vadd.f32 %v934_v3, %v627_v52 }
 0x111   :  { %v3852_v14 = vpop.f32.mrf.mxu0  ;;  %v1192_v33 = vpop.f32.mrf.mxu1 }
 0x112   :  { %v5353_v25 = vadd.f32 %v1176_v4, %v995_v47  ;;  %v1000_v29 = vadd.f32 %v3852_v14, %v648_v16 }
 0x113   :  { %v947_v0 = vpop.f32.mrf.mxu0  ;;  %v3888_v30 = vpop.f32.mrf.mxu1 }
 0x114   :  { %v1242_v18 = vadd.f32 %v3884_v5, %v1000_v29  ;;  %v998_v20 = vadd.f32 %v947_v0, %v640_v17 }
 0x115   :  { %v3853_v2 = vpop.f32.mrf.mxu0  ;;  %v1205_v21 = vpop.f32.mrf.mxu1 }
 0x116   :  { %v5355_v23 = vadd.f32 %v1189_v11, %v998_v20  ;;  %v1001_v26 = vadd.f32 %v3853_v2, %v651_v9 }
 0x117   :  { %v950_v49 = vpop.f32.mrf.mxu0  ;;  %v3889_v32 = vpop.f32.mrf.mxu1 }
 0x118   :  { %v5357_v35 = vadd.f32 %v3885_v19, %v1001_v26  ;;  %v999_v37 = vadd.f32 %v950_v49, %v643_v15 }
 0x119   :  { %v3856_v52 = vpop.f32.mrf.mxu0  ;;  %v1208_v13 = vpop.f32.mrf.mxu1 }
 0x11a   :  { %v5359_v42 = vadd.f32 %v1192_v33, %v999_v37  ;;  %v1004_v53 = vadd.f32 %v3856_v52, %v664_v41 }
 0x11b   :  { %v963_v16 = vpop.f32.mrf.mxu0  ;;  %v3892_v38 = vpop.f32.mrf.mxu1 }
 0x11c   :  { %v1246_v36 = vadd.f32 %v3888_v30, %v1004_v53  ;;  %v1002_v48 = vadd.f32 %v963_v16, %v656_v7 }
 0x11d   :  { %v3857_v17 = vpop.f32.mrf.mxu0  ;;  %v1221_v9 = vpop.f32.mrf.mxu1 }
 0x11e   :  { %v5361_v43 = vadd.f32 %v1205_v21, %v1002_v48  ;;  %v1005_v44 = vadd.f32 %v3857_v17, %v667_v58 }
 0x11f   :  { %v966_v31 = vpop.f32.mrf.mxu0  ;;  %v3893_v46 = vpop.f32.mrf.mxu1 }
 0x120   :  { %v5363_v34 = vadd.f32 %v3889_v32, %v1005_v44  ;;  %v1003_v39 = vadd.f32 %v966_v31, %v659_v22 }
 0x121   :  { %v3860_v60 = vpop.f32.mrf.mxu0  ;;  %v1224_v1 = vpop.f32.mrf.mxu1 }
 0x122   :  { %v5365_v15 = vadd.f32 %v1208_v13, %v1003_v39  ;;  %v1008_v61 = vadd.f32 %v3860_v60, %v680_v57 }
 0x123   :  { %v979_v45 = vpop.f32.mrf.mxu0  ;;  %v5373_v22 = vpop.f32.mrf.mxu1 }
 0x124   :  { %v1250_v41 = vadd.f32 %v3892_v38, %v1008_v61  ;;  %v1006_v27 = vadd.f32 %v979_v45, %v672_v24 }
 0x125   :  { %v3861_v40 = vpop.f32.mrf.mxu0  ;;  %v5375_v54 = vpop.f32.mrf.mxu1 }
 0x126   :  { %v5367_v51 = vadd.f32 %v1221_v9, %v1006_v27  ;;  %v1009_v7 = vadd.f32 %v3861_v40, %v683_v55 }
 0x127   :  { %v982_v56 = vpop.f32.mrf.mxu0  ;;  %v5379_v24 = vpop.f32.mrf.mxu1 }
 0x128   :  { %v5369_v58 = vadd.f32 %v3893_v46, %v1009_v7  ;;  %v1007_v63 = vadd.f32 %v982_v56, %v675_v59 }
 0x129   :  { %v3912_v57 = vpop.f32.mrf.mxu0  ;;  %v5381_v28 = vpop.f32.mrf.mxu1 }
 0x12a   :  { %5696 = vst [vmem:[#allocation5_spill] sm:$0xff] %v5369_v58  ;;  %v5371_v4 = vadd.f32 %v1224_v1, %v1007_v63  ;;  %v5377_v50 = vadd.f32 %v3912_v57, %v1238_v62 }
 0x12b   :  { %v1638_v5 = vpop.f32.mrf.mxu0 }
 0x12c   :  { %5697 = vst [vmem:[#allocation6_spill] sm:$0xff] %v5371_v4 }
 0x12d   :  { %v3913_v10 = vpop.f32.mrf.mxu0 }
 0x12e   :  { %v5383_v11 = vpop.f32.mrf.mxu1 }
 0x12f   :  { %v1641_v55 = vpop.f32.mrf.mxu0 }
 0x130   :  { %v5385_v8 = vpop.f32.mrf.mxu1 }
 0x131   :  { %v3916_v59 = vpop.f32.mrf.mxu0 }
 0x132   :  { %v5387_v3 = vadd.f32 %v3916_v59, %v1242_v18  ;;  %v5389_v47 = vpop.f32.mrf.mxu1 }
 0x133   :  { %v1654_v19 = vpop.f32.mrf.mxu0 }
 0x134   :  { %v5393_v62 = vpop.f32.mrf.mxu1 }
 0x135   :  { %v5391_v14 = vpop.f32.mrf.mxu0 }
 0x137   :  { %v5395_v33 = vpop.f32.mrf.mxu0 }
 0x13a   :  { %v5397_v29 = vpop.f32.mrf.mxu1 }
 0x13c   :  { %v5399_v0 = vpop.f32.mrf.mxu1 }
 0x13d   :  { %v3920_v30 = vpop.f32.mrf.mxu0 }
 0x13e   :  { %v5401_v20 = vadd.f32 %v3920_v30, %v1246_v36  ;;  %v5405_v18 = vpop.f32.mrf.mxu1 }
 0x13f   :  { %v5403_v2 = vpop.f32.mrf.mxu0 }
 0x140   :  { %v5409_v26 = vpop.f32.mrf.mxu1 }
 0x141   :  { %v5407_v21 = vpop.f32.mrf.mxu0 }
 0x143   :  { %v5411_v49 = vpop.f32.mrf.mxu0 }
 0x145   :  { %v5413_v32 = vpop.f32.mrf.mxu1 }
 0x146   :  { %5698 = vst [vmem:[#allocation7_spill] sm:$0xff] %v5413_v32 }
 0x147   :  { %v5417_v13 = vpop.f32.mrf.mxu1 }
 0x148   :  { %5700 = vst [vmem:[#allocation9_spill] sm:$0xff] %v5417_v13  ;;  %v1701_v13 = vadd.f32 %v1638_v5, %v5349_v12 }
 0x149   :  { %v3924_v37 = vpop.f32.mrf.mxu0  ;;  %v5423_v38 = vpop.f32.mrf.mxu1 }
 0x14a   :  { %v5415_v52 = vadd.f32 %v3924_v37, %v1250_v41  ;;  %5702 = vst [vmem:[#allocation11_spill] sm:$0xff] %v5423_v38 }
 0x14b   :  { %v5419_v53 = vpop.f32.mrf.mxu0  ;;  %v5427_v17 = vpop.f32.mrf.mxu1 }
 0x14c   :  { %5699 = vst [vmem:[#allocation8_spill] sm:$0xff] %v5415_v52  ;;  %5704 = vst [vmem:[#allocation13_spill] sm:$0xff] %v5427_v17 }
 0x14d   :  { %v5421_v16 = vpop.f32.mrf.mxu0 }
 0x14e   :  { %5701 = vst [vmem:[#allocation10_spill] sm:$0xff] %v5421_v16 }
 0x14f   :  { %v5425_v36 = vpop.f32.mrf.mxu0 }
 0x150   :  { %5703 = vst [vmem:[#allocation12_spill] sm:$0xff] %v5425_v36 }
 0x151   :  { %v3976_v48 = vpop.f32.mrf.mxu0 }
 0x153   :  { %v2201_v44 = vpop.f32.mrf.mxu0  ;;  %v4008_v9 = vpop.f32.mrf.mxu1 }
 0x155   :  { %v3977_v31 = vpop.f32.mrf.mxu0  ;;  %v2666_v60 = vpop.f32.mrf.mxu1 }
 0x157   :  { %v2204_v39 = vpop.f32.mrf.mxu0  ;;  %v4009_v45 = vpop.f32.mrf.mxu1 }
 0x159   :  { %v3980_v61 = vpop.f32.mrf.mxu0  ;;  %v2669_v41 = vpop.f32.mrf.mxu1 }
 0x15b   :  { %v2217_v46 = vpop.f32.mrf.mxu0 }
 0x15d   :  { %v5429_v27 = vpop.f32.mrf.mxu0  ;;  %v5431_v7 = vpop.f32.mrf.mxu1 }
 0x15f   :  { %v2220_v40 = vpop.f32.mrf.mxu0  ;;  %v2682_v1 = vpop.f32.mrf.mxu1 }
 0x161   :  { %v5433_v56 = vpop.f32.mrf.mxu0  ;;  %v5437_v57 = vpop.f32.mrf.mxu1 }
 0x162   :  { %5705 = vst [vmem:[#allocation14_spill] sm:$0xff] %v5433_v56 }
 0x163   :  { %v5435_v63 = vpop.f32.mrf.mxu0  ;;  %v5441_v30 = vpop.f32.mrf.mxu1 }
 0x165   :  { %v5439_v59 = vpop.f32.mrf.mxu0 }
 0x166   :  { %5706 = vst [vmem:[#allocation15_spill] sm:$0xff] %v5439_v59  ;;  %v1702_v59 = vadd.f32 %v1641_v55, %v5353_v25 }
 0x167   :  { %v5443_v37 = vpop.f32.mrf.mxu0  ;;  %v5445_v38 = vpop.f32.mrf.mxu1 }
 0x168   :  { %5707 = vst [vmem:[#allocation16_spill] sm:$0xff] %v5445_v38  ;;  %v2022_v38 = vadd.f32 %v5375_v54, %v1701_v13 }
 0x169   :  { %v5447_v32 = vpop.f32.mrf.mxu0  ;;  %v5449_v52 = vpop.f32.mrf.mxu1 }
 0x16a   :  { %5708 = vst [vmem:[#allocation17_spill] sm:$0xff] %v5447_v32  ;;  %v1704_v32 = vadd.f32 %v3913_v10, %v5351_v6  ;;  %v2264_v12 = vadd.f32 %v2201_v44, %v2022_v38 }
 0x16b   :  { %v5451_v17 = vpop.f32.mrf.mxu0  ;;  %v5453_v16 = vpop.f32.mrf.mxu1 }
 0x16c   :  { %5709 = vst [vmem:[#allocation18_spill] sm:$0xff] %v5451_v17  ;;  %5710 = vst [vmem:[#allocation19_spill] sm:$0xff] %v5453_v16  ;;  %v1705_v17 = vadd.f32 %v1654_v19, %v5355_v23  ;;  %v2024_v16 = vadd.f32 %v5373_v22, %v5377_v50  ;;  %v2025_v25 = vadd.f32 %v5379_v24, %v1704_v32 }
 0x16d   :  { %v5455_v58 = vpop.f32.mrf.mxu0  ;;  %v5458_v56 = vpop.f32.mrf.mxu1  ;;  %v1706_v23 = vadd.f32 %v5395_v33, %v5359_v42  ;;  %v1708_v22 = vadd.f32 %v5391_v14, %v5357_v35  ;;  %v2729_v50 = vadd.f32 %v2666_v60, %v2264_v12  ;;  %v1709_v35 = vadd.f32 %v5403_v2, %v5361_v43 }
 0x16e   :  { %5711 = vst [vmem:[#allocation20_spill] sm:$0xff] %v5455_v58  ;;  %5712 = vst [vmem:[#allocation21_spill] sm:$0xff] %v5458_v56  ;;  %v2023_v58 = vadd.f32 %v5381_v28, %v1702_v59  ;;  %v2266_v55 = vadd.f32 %v3976_v48, %v2024_v16  ;;  %v2026_v6 = vadd.f32 %v5385_v8, %v1705_v17 }
 0x16f   :  { %v5461_v36 = vpop.f32.mrf.mxu0  ;;  %v2267_v28 = vadd.f32 %v3977_v31, %v2025_v25  ;;  %v2028_v8 = vadd.f32 %v5383_v11, %v5387_v3  ;;  %v2027_v42 = vadd.f32 %v5393_v62, %v1706_v23  ;;  %v2029_v33 = vadd.f32 %v5389_v47, %v1708_v22 }
 0x170   :  { %5713 = vst [vmem:[#allocation22_spill] sm:$0xff] %v5461_v36  ;;  %v2265_v36 = vadd.f32 %v2204_v39, %v2023_v58  ;;  %v2268_v13 = vadd.f32 %v2217_v46, %v2026_v6  ;;  %v2731_v24 = vadd.f32 %v4008_v9, %v2266_v55  ;;  %v1710_v31 = vadd.f32 %v5411_v49, %v5365_v15 }
 0x171   :  { %v2732_v48 = vadd.f32 %v4009_v45, %v2267_v28  ;;  %v2270_v9 = vadd.f32 %v3980_v61, %v2028_v8  ;;  %v2269_v11 = vadd.f32 %v2220_v40, %v2027_v42  ;;  %v2032_v15 = vadd.f32 %v5397_v29, %v5401_v20 }
 0x172   :  { %v2730_v32 = vadd.f32 %v2669_v41, %v2265_v36  ;;  %v2733_v39 = vadd.f32 %v2682_v1, %v2268_v13  ;;  %v2030_v49 = vadd.f32 %v5399_v0, %v1709_v35  ;;  %v2271_v61 = vadd.f32 %v5429_v27, %v2029_v33  ;;  %v5714_v13 = vld [vmem:[#allocation6_spill] sm:$0xff]  ;;  %v5717_v35 = vld [vmem:[#allocation9_spill] sm:$0xff]  ;;  %v5718_v33 = vld [vmem:[#allocation15_spill] sm:$0xff] }
 0x173   :  { %v5465_v4 = vpop.f32.mrf.mxu1  ;;  %v1712_v59 = vadd.f32 %v5407_v21, %v5363_v34  ;;  %v2031_v12 = vadd.f32 %v5409_v26, %v1710_v31  ;;  %v2735_v29 = vadd.f32 %v5431_v7, %v2270_v9  ;;  %v2734_v27 = vadd.f32 %v5441_v30, %v2269_v11 }
 0x174   :  { %v2272_v0 = vadd.f32 %v5435_v63, %v2030_v49  ;;  %v1713_v23 = vadd.f32 %v5419_v53, %v5367_v51  ;;  %v2736_v34 = vadd.f32 %v5437_v57, %v2271_v61  ;;  %v5715_v51 = vld [vmem:[#allocation12_spill] sm:$0xff]  ;;  %v5716_v57 = vld [vmem:[#allocation14_spill] sm:$0xff] }
 0x175   :  { %v5471_v5 = vpop.f32.mrf.mxu1  ;;  %v4040_v56 = vpop.f32.mrf.mxu0  ;;  %v2273_v21 = vadd.f32 %v5443_v37, %v2031_v12  ;;  %v2033_v28 = vadd.f32 %v5405_v18, %v1712_v59  ;;  %v1714_v53 = vadd.f32 %v5715_v51, %v5714_v13  ;;  %v5719_v18 = vld [vmem:[#allocation21_spill] sm:$0xff]  ;;  %v5723_v61 = vld [vmem:[#allocation16_spill] sm:$0xff] }
 0x176   :  { %v5493_v17 = vadd.f32 %v4040_v56, %v2731_v24  ;;  %v2737_v37 = vadd.f32 %v5449_v52, %v2272_v0  ;;  %v5726_v0 = vld [vmem:[#allocation7_spill] sm:$0xff] }
 0x177   :  { %v5474_v54 = vpop.f32.mrf.mxu1  ;;  %v2987_v10 = vpop.f32.mrf.mxu0  ;;  %v2738_v31 = vadd.f32 %v5719_v18, %v2273_v21 }
 0x178   :  { %v5485_v16 = vadd.f32 %v2987_v10, %v2729_v50  ;;  %v3090_v46 = vmul.f32 %v5493_v17, %v5493_v17 }
 0x179   :  { %v5481_v19 = vpop.f32.mrf.mxu1  ;;  %v4041_v38 = vpop.f32.mrf.mxu0 }
 0x17a   :  { %v3088_v62 = vmul.f32 %v5485_v16, %v5485_v16  ;;  %v5501_v43 = vadd.f32 %v4041_v38, %v2732_v48  ;;  %v2274_v38 = vadd.f32 %v5716_v57, %v2032_v15  ;;  %v2275_v48 = vadd.f32 %v5718_v33, %v2033_v28  ;;  %v5722_v15 = vld [vmem:[#allocation13_spill] sm:$0xff] }
 0x17b   :  { %v5483_v58 = vpop.f32.mrf.mxu1  ;;  %v2990_v14 = vpop.f32.mrf.mxu0  ;;  %v2035_v49 = vadd.f32 %v5722_v15, %v1714_v53 }
 0x17c   :  { %v5495_v36 = vadd.f32 %v2990_v14, %v2730_v32  ;;  %v3091_v25 = vmul.f32 %v5501_v43, %v5501_v43  ;;  %v2034_v14 = vadd.f32 %v5717_v35, %v1713_v23 }
 0x17d   :  { %v3019_v44 = vpop.f32.mrf.mxu1  ;;  %v4044_v3 = vpop.f32.mrf.mxu0 }
 0x17e   :  { %v3066_v47 = vadd.f32 %v5495_v36, %v5485_v16  ;;  %v3089_v60 = vmul.f32 %v5495_v36, %v5495_v36  ;;  %v5531_v26 = vadd.f32 %v4044_v3, %v2735_v29  ;;  %v5725_v29 = vld [vmem:[#allocation8_spill] sm:$0xff] }
 0x17f   :  { %v5503_v2 = vpop.f32.mrf.mxu1  ;;  %v3003_v45 = vpop.f32.mrf.mxu0 }
 0x180   :  { %v3067_v41 = vadd.f32 %v3066_v47, %v5493_v17  ;;  %v3104_v40 = vadd.f32 %v3089_v60, %v3088_v62  ;;  %v5516_v1 = vadd.f32 %v3003_v45, %v2733_v39  ;;  %v5551_v39 = vadd.f32 %v3019_v44, %v2737_v37  ;;  %v5720_v62 = vld [vmem:[#allocation5_spill] sm:$0xff]  ;;  %v5721_v47 = vld [vmem:[#allocation10_spill] sm:$0xff] }
 0x181   :  { %v3022_v56 = vpop.f32.mrf.mxu1  ;;  %v4045_v20 = vpop.f32.mrf.mxu0  ;;  %v3094_v52 = vmul.f32 %v5531_v26, %v5531_v26  ;;  %v1716_v60 = vadd.f32 %v5721_v47, %v5720_v62  ;;  %v2739_v45 = vadd.f32 %v5723_v61, %v2274_v38  ;;  %v5731_v38 = vld [vmem:[#allocation20_spill] sm:$0xff] }
 0x182   :  { %v3105_v55 = vadd.f32 %v3104_v40, %v3090_v46  ;;  %v3068_v6 = vadd.f32 %v3067_v41, %v5501_v43  ;;  %v3092_v30 = vmul.f32 %v5516_v1, %v5516_v1  ;;  %v5543_v32 = vadd.f32 %v4045_v20, %v2736_v34  ;;  %v5724_v46 = vld [vmem:[#allocation18_spill] sm:$0xff] }
 0x183   :  { %v4052_v7 = vpop.f32.mrf.mxu1  ;;  %v3006_v63 = vpop.f32.mrf.mxu0  ;;  %v2276_v41 = vadd.f32 %v5724_v46, %v2034_v14  ;;  %v5561_v40 = vadd.f32 %v3022_v56, %v2738_v31  ;;  %v2036_v20 = vadd.f32 %v5726_v0, %v5725_v29  ;;  %v5571_v34 = vadd.f32 %v5483_v58, %v2739_v45 }
 0x184   :  { %v3069_v10 = vadd.f32 %v3068_v6, %v5516_v1  ;;  %v3106_v22 = vadd.f32 %v3105_v55, %v3091_v25  ;;  %v5536_v50 = vadd.f32 %v3006_v63, %v2734_v27  ;;  %v3095_v44 = vmul.f32 %v5543_v32, %v5543_v32  ;;  %v5727_v27 = vld [vmem:[#allocation19_spill] sm:$0xff]  ;;  %v5728_v55 = vld [vmem:[#allocation22_spill] sm:$0xff] }
 0x185   :  { %v3035_v9 = vpop.f32.mrf.mxu1  ;;  %v2740_v25 = vadd.f32 %v5727_v27, %v2275_v48  ;;  %v2277_v6 = vadd.f32 %v5728_v55, %v2035_v49  ;;  %v3096_v56 = vmul.f32 %v5551_v39, %v5551_v39  ;;  %v2741_v13 = vadd.f32 %v5471_v5, %v2276_v41 }
 0x186   :  { %v3107_v24 = vadd.f32 %v3106_v22, %v3092_v30  ;;  %v3070_v8 = vadd.f32 %v3069_v10, %v5536_v50  ;;  %v3093_v42 = vmul.f32 %v5536_v50, %v5536_v50  ;;  %v5729_v10 = vld [vmem:[#allocation11_spill] sm:$0xff]  ;;  %v5730_v22 = vld [vmem:[#allocation17_spill] sm:$0xff]  ;;  %v3097_v53 = vmul.f32 %v5561_v40, %v5561_v40 }
 0x187   :  { %v4053_v23 = vpop.f32.mrf.mxu1  ;;  %v2037_v30 = vadd.f32 %v5729_v10, %v1716_v60  ;;  %v2278_v28 = vadd.f32 %v5730_v22, %v2036_v20  ;;  %v5580_v51 = vadd.f32 %v5503_v2, %v2740_v25  ;;  %v5589_v35 = vadd.f32 %v3035_v9, %v2741_v13 }
 0x188   :  { %v3071_v11 = vadd.f32 %v3070_v8, %v5531_v26  ;;  %v3108_v3 = vadd.f32 %v3107_v24, %v3093_v42  ;;  %v2742_v24 = vadd.f32 %v5481_v19, %v2277_v6  ;;  %v3098_v42 = vmul.f32 %v5571_v34, %v5571_v34 }
 0x189   :  { %v2279_v37 = vadd.f32 %v5731_v38, %v2037_v30  ;;  %v3038_v8 = vpop.f32.mrf.mxu1  ;;  %v2743_v14 = vadd.f32 %v5465_v4, %v2278_v28  ;;  %v3099_v33 = vmul.f32 %v5580_v51, %v5580_v51  ;;  %v3100_v9 = vmul.f32 %v5589_v35, %v5589_v35 }
 0x18a   :  { %v3072_v59 = vadd.f32 %v3071_v11, %v5543_v32  ;;  %v3109_v12 = vadd.f32 %v3108_v3, %v3094_v52  ;;  %v3063_v48 = vadd.f32 %v3038_v8, %v2742_v24  ;;  %v3147_v24 = vlaneseq  ;;  %v3129_v8 = vld [vmem:[%s5688_s3] sm:$0x1] }
 0x18b   :  { %v2744_v19 = vadd.f32 %v5474_v54, %v2279_v37  ;;  %v5597_v52 = vadd.f32 %v4052_v7, %v2743_v14 }
 0x18c   :  { %v3073_v21 = vadd.f32 %v3072_v59, %v5551_v39  ;;  %v3110_v63 = vadd.f32 %v3109_v12, %v3095_v44  ;;  %v3101_v47 = vmul.f32 %v3063_v48, %v3063_v48 }
 0x18d   :  { %v5602_v62 = vadd.f32 %v4053_v23, %v2744_v19  ;;  %v3102_v15 = vmul.f32 %v5597_v52, %v5597_v52  ;;  %v3128_v23 = vld [vmem:[%s5687_s2] sm:$0x1] }
 0x18e   :  { %v3111_v58 = vadd.f32 %v3110_v63, %v3096_v56  ;;  %v3074_v57 = vadd.f32 %v3073_v21, %v5561_v40  ;;  %v3132_v30 = vmul.f32 %v3128_v23, %v3128_v23 }
 0x18f   :  { %v3103_v54 = vmul.f32 %v5602_v62, %v5602_v62 }
 0x190   :  { %v3075_v5 = vadd.f32 %v3074_v57, %v5571_v34  ;;  %v3112_v2 = vadd.f32 %v3111_v58, %v3097_v53 }
 0x192   :  { %v3076_v18 = vadd.f32 %v3075_v5, %v5580_v51  ;;  %v3113_v31 = vadd.f32 %v3112_v2, %v3098_v42  ;;  %v3148_v42 = vshrl.u32 %v3147_v24, 7  ;;  %v3131_v5 = vmul.f32 %v3129_v8, %v3128_v23  ;;  %v3197_v23 = vld [vmem:[%s5690_s5 + $0x38] sm:$0xff] }
 0x194   :  { %v3077_v11 = vadd.f32 %v3076_v18, %v5589_v35  ;;  %v3114_v3 = vadd.f32 %v3113_v31, %v3099_v33  ;;  %v3149_v2 = vsub.s32 0, %v3148_v42  ;;  %v3130_v18 = vld [vmem:[%s5689_s4] sm:$0x1] }
 0x196   :  { %v3078_v4 = vadd.f32 %v3077_v11, %v3063_v48  ;;  %v3115_v60 = vadd.f32 %v3114_v3, %v3100_v9 }
 0x198   :  { %v3079_v49 = vadd.f32 %v3078_v4, %v5597_v52  ;;  %v3116_v61 = vadd.f32 %v3115_v60, %v3101_v47 }
 0x19a   :  { %v3080_v7 = vadd.f32 %v3079_v49, %v5602_v62  ;;  %v3117_v45 = vadd.f32 %v3116_v61, %v3102_v15 }
 0x19c   :  { %v3081_v46 = vrot.slane %v3080_v7, 4  ;;  %v3118_v41 = vadd.f32 %v3117_v45, %v3103_v54 }
 0x19e   :  { %v3082_v44 = vadd.f32 %v3081_v46, %v3080_v7  ;;  %v3119_v59 = vrot.slane %v3118_v41, 4 }
 0x1a0   :  { %v3083_v12 = vrot.slane %v3082_v44, 2  ;;  %v3120_v29 = vadd.f32 %v3119_v59, %v3118_v41 }
 0x1a2   :  { %v3084_v0 = vadd.f32 %v3083_v12, %v3082_v44  ;;  %v3121_v20 = vrot.slane %v3120_v29, 2  ;;  %v3193_v12 = vld [vmem:[%s5690_s5 + $0x18] sm:$0xff] }
 0x1a4   :  { %v3085_v27 = vrot.slane %v3084_v0, 1  ;;  %v3122_v25 = vadd.f32 %v3121_v20, %v3120_v29  ;;  %v3194_v29 = vld [vmem:[%s5690_s5 + $0x20] sm:$0xff] }
 0x1a6   :  { %v3086_v55 = vadd.f32 %v3085_v27, %v3084_v0  ;;  %v3123_v6 = vrot.slane %v3122_v25, 1  ;;  %v3195_v0 = vld [vmem:[%s5690_s5 + $0x28] sm:$0xff] }
 0x1a8   :  { %v3087_v56 = vmul.f32 0.0078125, %v3086_v55  ;;  %v3124_v21 = vadd.f32 %v3123_v6, %v3122_v25  ;;  %v3196_v6 = vld [vmem:[%s5690_s5 + $0x30] sm:$0xff] }
 0x1aa   :  { %v3125_v63 = vmul.f32 0.0078125, %v3124_v21  ;;  %v3126_v10 = vmul.f32 %v3087_v56, %v3087_v56 }
 0x1ac   :  { %v3127_v22 = vsub.f32 %v3125_v63, %v3126_v10 }
 0x1ae   :  { %v3133_v28 = vmul.f32 %v3132_v30, %v3127_v22  ;;  %v3199_v22 = vld [vmem:[%s5690_s5 + $0x48] sm:$0xff] }
 0x1b0   :  { %v3134_v13 = vadd.f32 1e-05, %v3133_v28  ;;  %v3200_v28 = vld [vmem:[%s5690_s5 + $0x50] sm:$0xff] }
 0x1b2   :  { %4169 = vrsqrt.f32 %v3134_v13  ;;  %vm3137_vm6 = vcmp.eq.f32.partialorder %v3134_v13, inf  ;;  %v3140_v57 = vand.u32 2147483648, %v3134_v13  ;;  %vm3139_vm7 = vcmp.eq.f32.partialorder %v3134_v13, 0.0 }
 0x1bf   :  { %v4170_v53 = vpop.eup %4169 }
 0x1c0   :  { %v3136_v58 = vmul.f32 %v4170_v53, %v3134_v13  ;;  %v3202_v53 = vld [vmem:[%s5690_s5 + $0x60] sm:$0xff] }
 0x1c2   :  { %v3138_v38 = vsel %vm3137_vm6, %v3134_v13, %v3136_v58  ;;  %v3201_v13 = vld [vmem:[%s5690_s5 + $0x58] sm:$0xff]  ;;  %v3204_v58 = vld [vmem:[%s5690_s5 + $0x70] sm:$0xff] }
 0x1c3   :  { %v3141_v37 = vsel %vm3139_vm7, %v3140_v57, %v3138_v38  ;;  %v3205_v57 = vld [vmem:[%s5690_s5 + $0x78] sm:$0xff] }
 0x1c4   :  { %4171 = vrcp.f32 %v3141_v37 }
 0x1d1   :  { %v4172_v14 = vpop.eup %4171 }
 0x1d2   :  { %v3143_v33 = vmul.f32 %v4172_v14, %v3131_v5 }
 0x1d4   :  { %v3144_v31 = vmul.f32 %v3143_v33, %v3087_v56  ;;  %v3150_v19 = vrot.slane %v3143_v33, %v3149_v2  ;;  %v3198_v56 = vld [vmem:[%s5690_s5 + $0x40] sm:$0xff] }
 0x1d6   :  { %v3145_v9 = vsub.f32 %v3130_v18, %v3144_v31  ;;  %v3165_v11 = vmul.f32 %v3150_v19, %v3063_v48  ;;  %v3152_v3 = vmul.f32 %v3150_v19, %v5485_v16  ;;  %v3153_v4 = vmul.f32 %v3150_v19, %v5495_v36  ;;  %v3203_v16 = vld [vmem:[%s5690_s5 + $0x68] sm:$0xff] }
 0x1d7   :  { %v3154_v47 = vmul.f32 %v3150_v19, %v5493_v17  ;;  %v3155_v60 = vmul.f32 %v3150_v19, %v5501_v43  ;;  %v3156_v15 = vmul.f32 %v3150_v19, %v5516_v1  ;;  %v3157_v49 = vmul.f32 %v3150_v19, %v5536_v50 }
 0x1d8   :  { %v3172_v61 = vrot.slane %v3145_v9, %v3149_v2  ;;  %v3158_v54 = vmul.f32 %v3150_v19, %v5531_v26  ;;  %v3159_v7 = vmul.f32 %v3150_v19, %v5543_v32  ;;  %v3160_v45 = vmul.f32 %v3150_v19, %v5551_v39 }
 0x1d9   :  { %v3161_v36 = vmul.f32 %v3150_v19, %v5561_v40  ;;  %v3162_v17 = vmul.f32 %v3150_v19, %v5571_v34  ;;  %v3163_v43 = vmul.f32 %v3150_v19, %v5580_v51  ;;  %v3164_v1 = vmul.f32 %v3150_v19, %v5589_v35  ;;  %v3190_v40 = vld [vmem:[%s5690_s5] sm:$0xff]  ;;  %v3191_v34 = vld [vmem:[%s5690_s5 + $0x8] sm:$0xff]  ;;  %v3192_v51 = vld [vmem:[%s5690_s5 + $0x10] sm:$0xff]  ;;  %s4173_s5 = scalar_lea.vmem %s3276_s9, 2048 }
 0x1da   :  { %v3187_v50 = vadd.f32 %v3172_v61, %v3165_v11  ;;  %v3166_v48 = vmul.f32 %v3150_v19, %v5597_v52  ;;  %v3167_v26 = vmul.f32 %v3150_v19, %v5602_v62  ;;  %v3174_v32 = vadd.f32 %v3172_v61, %v3152_v3  ;;  %p4174_p0 = scmp.ne.s32.totalorder %s3276_s9, %s4173_s5  ;;  %p4179_p2 = scmp.lt.s32.totalorder %s4173_s5, %s4173_s5 }
 0x1db   :  { %v3175_v46 = vadd.f32 %v3172_v61, %v3153_v4  ;;  %v3176_v39 = vadd.f32 %v3172_v61, %v3154_v47  ;;  %v3177_v41 = vadd.f32 %v3172_v61, %v3155_v60  ;;  %v3178_v44 = vadd.f32 %v3172_v61, %v3156_v15 }
 0x1dc   :  { %v3219_v35 = vadd.f32 %v3203_v16, %v3187_v50  ;;  %v3179_v52 = vadd.f32 %v3172_v61, %v3157_v49  ;;  %v3180_v62 = vadd.f32 %v3172_v61, %v3158_v54  ;;  %v3181_v59 = vadd.f32 %v3172_v61, %v3159_v7  ;;  %p4180_p3 = por %p4179_p2, %p4178_p1 }
 0x1dd   :  { %v3182_v20 = vadd.f32 %v3172_v61, %v3160_v45  ;;  %v3183_v27 = vadd.f32 %v3172_v61, %v3161_v36  ;;  %v3184_v25 = vadd.f32 %v3172_v61, %v3162_v17  ;;  %v3185_v55 = vadd.f32 %v3172_v61, %v3163_v43 }
 0x1de   :  { %v3619_v21 = vclamps-f32 %v3219_v35, 1.0  ;;  %v3186_v63 = vadd.f32 %v3172_v61, %v3164_v1  ;;  %v3188_v10 = vadd.f32 %v3172_v61, %v3166_v48  ;;  %v3189_v30 = vadd.f32 %v3172_v61, %v3167_v26  ;;  %p4181_p4 = pnand %p4180_p3, %p4174_p0 }
 0x1df   :  { %v3206_v38 = vadd.f32 %v3190_v40, %v3174_v32  ;;  %v3207_v37 = vadd.f32 %v3191_v34, %v3175_v46  ;;  %v3208_v24 = vadd.f32 %v3192_v51, %v3176_v39  ;;  %v3209_v8 = vadd.f32 %v3193_v12, %v3177_v41 }
 0x1e0   :  { %3267 = vst [vmem:[#allocation2 + $0x68] sm:$0xff] %v3619_v21  ;;  %v3210_v42 = vadd.f32 %v3194_v29, %v3178_v44  ;;  %v3211_v5 = vadd.f32 %v3195_v0, %v3179_v52  ;;  %v3212_v2 = vadd.f32 %v3196_v6, %v3180_v62  ;;  %v3213_v14 = vadd.f32 %v3197_v23, %v3181_v59 }
 0x1e1   :  { %v3214_v33 = vadd.f32 %v3198_v56, %v3182_v20  ;;  %v3215_v18 = vadd.f32 %v3199_v22, %v3183_v27  ;;  %v3216_v31 = vadd.f32 %v3200_v28, %v3184_v25  ;;  %v3217_v19 = vadd.f32 %v3201_v13, %v3185_v55 }
 0x1e2   :  { %v3218_v9 = vadd.f32 %v3202_v53, %v3186_v63  ;;  %v3220_v11 = vadd.f32 %v3204_v58, %v3188_v10  ;;  %v3221_v3 = vadd.f32 %v3205_v57, %v3189_v30  ;;  %v3606_v4 = vclamps-f32 %v3206_v38, 1.0 }
 0x1e3   :  { %v3607_v47 = vclamps-f32 %v3207_v37, 1.0  ;;  %v3608_v60 = vclamps-f32 %v3208_v24, 1.0  ;;  %v3609_v15 = vclamps-f32 %v3209_v8, 1.0  ;;  %v3610_v49 = vclamps-f32 %v3210_v42, 1.0 }
 0x1e4   :  { %v3611_v61 = vclamps-f32 %v3211_v5, 1.0  ;;  %v3612_v54 = vclamps-f32 %v3212_v2, 1.0  ;;  %v3613_v7 = vclamps-f32 %v3213_v14, 1.0  ;;  %v3614_v45 = vclamps-f32 %v3214_v33, 1.0  ;;  %3254 = vst [vmem:[#allocation2] sm:$0xff] %v3606_v4 }
 0x1e5   :  { %v3615_v16 = vclamps-f32 %v3215_v18, 1.0  ;;  %v3616_v36 = vclamps-f32 %v3216_v31, 1.0  ;;  %v3617_v17 = vclamps-f32 %v3217_v19, 1.0  ;;  %v3618_v43 = vclamps-f32 %v3218_v9, 1.0  ;;  %3255 = vst [vmem:[#allocation2 + $0x8] sm:$0xff] %v3607_v47  ;;  %3256 = vst [vmem:[#allocation2 + $0x10] sm:$0xff] %v3608_v60 }
 0x1e6   :  { %3257 = vst [vmem:[#allocation2 + $0x18] sm:$0xff] %v3609_v15  ;;  %3258 = vst [vmem:[#allocation2 + $0x20] sm:$0xff] %v3610_v49  ;;  %v3620_v1 = vclamps-f32 %v3220_v11, 1.0  ;;  %v3621_v50 = vclamps-f32 %v3221_v3, 1.0 }
 0x1e7   :  { %3259 = vst [vmem:[#allocation2 + $0x28] sm:$0xff] %v3611_v61  ;;  %3260 = vst [vmem:[#allocation2 + $0x30] sm:$0xff] %v3612_v54 }
 0x1e8   :  { %3261 = vst [vmem:[#allocation2 + $0x38] sm:$0xff] %v3613_v7  ;;  %3262 = vst [vmem:[#allocation2 + $0x40] sm:$0xff] %v3614_v45 }
 0x1e9   :  { %3263 = vst [vmem:[#allocation2 + $0x48] sm:$0xff] %v3615_v16  ;;  %3264 = vst [vmem:[#allocation2 + $0x50] sm:$0xff] %v3616_v36 }
 0x1ea   :  { %3265 = vst [vmem:[#allocation2 + $0x58] sm:$0xff] %v3617_v17  ;;  %3266 = vst [vmem:[#allocation2 + $0x60] sm:$0xff] %v3618_v43 }
 0x1eb   :  { %3268 = vst [vmem:[#allocation2 + $0x70] sm:$0xff] %v3620_v1  ;;  %3269 = vst [vmem:[#allocation2 + $0x78] sm:$0xff] %v3621_v50 }
 0x1ec   :  { %4184 = shalt.err (!%p4181_p4)
}
 0x1ed   :  { %s4196_s1 = smov 128   ;;  %s4197_s10 = smov 8  }
 0x1ee   :  { %3281 = dma.vmem_to_hbm [thread:$0]  %s3276_s9, 2048, %s5691_s6, [#allocation3], %s4196_s1, %s4196_s1, %s4197_s10  }
 0x1ef   :  { %4193 = dma.done.wait [#allocation3], 2048  }
 0x1f0   :  { %4194 = vsyncadd [#allocation3], 4294965248 }
 0x1f1   :  { %3285 = vsyncpa [#allocation3], 1 }

</bundles_post_ra>
